<compile_context>
chip_gen: v7x
topology: tpu7x:2x2x1
jax: 0.10.0
libtpu: 0.0.40
codegen_flags: <defaults>
</compile_context>

<pallas_src>
import numpy as np
import jax
import jax.numpy as jnp
from jax import lax
from jax.experimental import pallas as pl
from jax.experimental.pallas import tpu as pltpu

K = 5            # conv kernel size (both layers)
C1 = 32          # conv1 out channels
C2 = 64          # conv2 out channels
HIN = 28         # input spatial size required by the Linear(1024, 512) head (64*4*4)
H1 = HIN - K + 1 # 24 : conv1 output spatial
P1 = H1 // 2     # 12 : pooled conv1 spatial
H2 = P1 - K + 1  # 8  : conv2 output spatial
P2 = H2 // 2     # 4  : pooled conv2 spatial
LANEPAD = 128    # (W * Cin) padded lane width of the input rows
NCLS_PAD = 128   # padded logits width (lane-dense output store)


# --------------------------------------------------------------------------------------
# Fused kernel: conv1 -> pool -> relu -> conv2 -> pool -> relu -> fc1 -> relu -> fc2
#               -> log_softmax, for one batch tile.
# --------------------------------------------------------------------------------------
def _cnn_kernel(x_ref, w1_ref, b1_ref, w2_ref, b2_ref,
                wf1_ref, bf1_ref, wf2_ref, bf2_ref, o_ref):
    tb = x_ref.shape[1]
    x = x_ref[...]                                                       # (28, tb, 128) bf16

    # ---- conv1: 5 row-shifted copies on lanes (128-aligned) -> one banded matmul ----
    lhs1 = jnp.concatenate([x[kh:kh + H1] for kh in range(K)], axis=-1)  # (24, tb, 640)
    y1 = jnp.dot(lhs1.reshape(H1 * tb, K * LANEPAD), w1_ref[...],
                 preferred_element_type=jnp.float32)                     # (24*tb, 768)
    # 2x2 max-pool: rows via the (12, 2) split, cols via the two 384-lane (col-parity) halves
    y1 = y1.reshape(P1, 2, tb, 2 * P1 * C1)
    y1 = jnp.maximum(y1[:, 0], y1[:, 1])                                 # (12, tb, 768)
    y1 = jnp.maximum(y1[..., :P1 * C1], y1[..., P1 * C1:])               # (12, tb, 384)
    z1 = jnp.maximum(y1 + b1_ref[...], 0.0).astype(jnp.bfloat16)         # (12, tb, 384)

    # ---- conv2: same structure on the pooled 12x12x32 activation ----
    lhs2 = jnp.concatenate([z1[kh:kh + H2] for kh in range(K)], axis=-1)  # (8, tb, 1920)
    y2 = jnp.dot(lhs2.reshape(H2 * tb, K * P1 * C1), w2_ref[...],
                 preferred_element_type=jnp.float32)                     # (8*tb, 512)
    y2 = y2.reshape(P2, 2, tb, 2 * P2 * C2)
    y2 = jnp.maximum(y2[:, 0], y2[:, 1])                                 # (4, tb, 512)
    y2 = jnp.maximum(y2[..., :P2 * C2], y2[..., P2 * C2:])               # (4, tb, 256)
    z2 = jnp.maximum(y2 + b2_ref[...], 0.0).astype(jnp.bfloat16)         # (4, tb, 256)

    # ---- flatten (4 pooled-row blocks on lanes) + fc1 + relu ----
    flat = jnp.concatenate([z2[r] for r in range(P2)], axis=-1)          # (tb, 1024)
    h = jnp.dot(flat, wf1_ref[...], preferred_element_type=jnp.float32)
    h = jnp.maximum(h + bf1_ref[...], 0.0).astype(jnp.bfloat16)          # (tb, 512)

    # ---- fc2 (padded to 128 lanes; pad logits = -1e30) + log_softmax ----
    logits = jnp.dot(h, wf2_ref[...], preferred_element_type=jnp.float32) + bf2_ref[...]
    m = jnp.max(logits, axis=-1, keepdims=True)
    s = logits - m
    lse = jnp.log(jnp.sum(jnp.exp(s), axis=-1, keepdims=True))
    o_ref[...] = s - lse                                                 # (tb, 128) f32


# --------------------------------------------------------------------------------------
# Glue: weight / layout plumbing (small einsums against constant one-hot banding masks)
# --------------------------------------------------------------------------------------
def _conv1_toeplitz(conv1_w):
    """(640, 768) bf16:  row = kh*128 + w*Cin + ci,  col = jp*384 + V*32 + co
       value = conv1_w[co, ci, kh, w - (2V + jp)] on the band, else 0."""
    ci_n, co_n = conv1_w.shape[1], conv1_w.shape[0]
    oh = np.zeros((K, HIN, 2, P1), np.float32)
    kw, jp, V = np.indices((K, 2, P1))
    oh[kw, 2 * V + jp + kw, jp, V] = 1.0
    w1p = jnp.transpose(conv1_w.astype(jnp.float32), (2, 3, 1, 0))       # (kh, kw, ci, co)
    w6 = jnp.einsum('kwjv,hkcd->hwcjvd', oh, w1p,
                    precision=lax.Precision.HIGHEST)                     # (5,28,ci,2,12,co)
    w6 = w6.reshape(K, HIN * ci_n, 2 * P1 * co_n)
    w6 = jnp.pad(w6, ((0, 0), (0, LANEPAD - HIN * ci_n), (0, 0)))
    return w6.reshape(K * LANEPAD, 2 * P1 * co_n).astype(jnp.bfloat16)


def _conv2_toeplitz(conv2_w):
    """(1920, 512) bf16:  row = kh*384 + V*32 + c1,  col = tp*256 + T*64 + c2
       value = conv2_w[c2, c1, kh, V - (2T + tp)] on the band, else 0."""
    c1_n, c2_n = conv2_w.shape[1], conv2_w.shape[0]
    oh = np.zeros((K, P1, 2, P2), np.float32)
    kw, tp, T = np.indices((K, 2, P2))
    oh[kw, 2 * T + tp + kw, tp, T] = 1.0
    w2p = jnp.transpose(conv2_w.astype(jnp.float32), (2, 3, 1, 0))       # (kh, kw, c1, c2)
    w6 = jnp.einsum('kvpt,hkcd->hvcptd', oh, w2p,
                    precision=lax.Precision.HIGHEST)                     # (5,12,32,2,4,64)
    return w6.reshape(K * P1 * c1_n, 2 * P2 * c2_n).astype(jnp.bfloat16)


def cnn_forward(x_nchw, conv1_w, conv1_b, conv2_w, conv2_b,
                fc1_w, fc1_b, fc2_w, fc2_b):
    """Parameters in PyTorch convention: conv*_w (Cout, Cin, KH, KW), fc*_w (out, in)."""
    B, Cin, H, W = x_nchw.shape
    assert H == HIN and W == HIN, "fc expects 28x28 input (64*4*4 = 1024 features)"
    assert HIN * Cin <= LANEPAD, "n_channels must satisfy 28*Cin <= 128"
    ncls = fc2_w.shape[0]
    hidden = fc1_w.shape[0]
    assert ncls <= NCLS_PAD

    # Batch tile: cap at 32, keep >= 2 grid steps once B >= 16 (v7x megacore), pad B up.
    tb = 32 if B >= 64 else (8 if B <= 16 else 16)
    BP = ((B + tb - 1) // tb) * tb
    nsteps = BP // tb

    f32 = jnp.float32
    # Input layout: (H, batch, W*Cin padded to 128) -- rows are (h, n), lanes are (w, ci).
    xr = jnp.transpose(x_nchw.astype(f32), (2, 0, 3, 1)).reshape(HIN, B, HIN * Cin)
    xr = jnp.pad(xr, ((0, 0), (0, BP - B), (0, LANEPAD - HIN * Cin))).astype(jnp.bfloat16)

    w1t = _conv1_toeplitz(conv1_w)                                       # (640, 768)
    w2t = _conv2_toeplitz(conv2_w)                                       # (1920, 512)
    b1v = jnp.tile(conv1_b.astype(f32), P1).reshape(1, P1 * C1)          # (1, 384)
    b2v = jnp.tile(conv2_b.astype(f32), P2).reshape(1, P2 * C2)          # (1, 256)

    # fc1 weight rows permuted once: torch flatten order (c2, R, T) -> kernel order (R, T, c2)
    wf1 = jnp.transpose(fc1_w.astype(f32).reshape(hidden, C2, P2, P2),
                        (2, 3, 1, 0)).reshape(P2 * P2 * C2, hidden).astype(jnp.bfloat16)
    bf1 = fc1_b.reshape(1, hidden).astype(f32)
    wf2 = jnp.zeros((hidden, NCLS_PAD), f32).at[:, :ncls].set(
        fc2_w.astype(f32).T).astype(jnp.bfloat16)
    bf2 = jnp.full((1, NCLS_PAD), -1e30, f32).at[0, :ncls].set(fc2_b.astype(f32))

    flops = 2 * BP * (H1 * (K * LANEPAD) * (2 * P1 * C1)
                      + H2 * (K * P1 * C1) * (2 * P2 * C2)
                      + (P2 * P2 * C2) * hidden + hidden * NCLS_PAD)
    bytes_accessed = int(xr.size * 2 + (w1t.size + w2t.size + wf1.size + wf2.size) * 2
                         + (b1v.size + b2v.size + bf1.size + bf2.size) * 4
                         + BP * NCLS_PAD * 4)

    out = pl.pallas_call(
        _cnn_kernel,
        out_shape=jax.ShapeDtypeStruct((BP, NCLS_PAD), jnp.float32),
        grid=(nsteps,),
        in_specs=[
            pl.BlockSpec((HIN, tb, LANEPAD), lambda i: (0, i, 0)),       # input batch tile
            pl.BlockSpec(w1t.shape, lambda i: (0, 0)),                   # resident weights
            pl.BlockSpec(b1v.shape, lambda i: (0, 0)),
            pl.BlockSpec(w2t.shape, lambda i: (0, 0)),
            pl.BlockSpec(b2v.shape, lambda i: (0, 0)),
            pl.BlockSpec(wf1.shape, lambda i: (0, 0)),
            pl.BlockSpec(bf1.shape, lambda i: (0, 0)),
            pl.BlockSpec(wf2.shape, lambda i: (0, 0)),
            pl.BlockSpec(bf2.shape, lambda i: (0, 0)),
        ],
        out_specs=pl.BlockSpec((tb, NCLS_PAD), lambda i: (i, 0)),
        compiler_params=pltpu.CompilerParams(
            dimension_semantics=("parallel",),
            vmem_limit_bytes=48 * 1024 * 1024),
        cost_estimate=pl.CostEstimate(flops=int(flops),
                                      transcendentals=int(BP * (NCLS_PAD + 1)),
                                      bytes_accessed=bytes_accessed),
    )(xr, w1t, b1v, w2t, b2v, wf1, bf1, wf2, bf2)

    return out[:B, :ncls]


# --------------------------------------------------------------------------------------
# Pure-JAX/XLA reference for a numerical sanity check
# --------------------------------------------------------------------------------------
def _reference_forward(x_nchw, conv1_w, conv1_b, conv2_w, conv2_b,
                       fc1_w, fc1_b, fc2_w, fc2_b):
    hp = lax.Precision.HIGHEST

    def conv(x, w, b):
        y = lax.conv_general_dilated(x, w, (1, 1), 'VALID',
                                     dimension_numbers=('NCHW', 'OIHW', 'NCHW'),
                                     precision=hp)
        return y + b[None, :, None, None]

    def maxpool2(x):
        return lax.reduce_window(x, -jnp.inf, lax.max, (1, 1, 2, 2), (1, 1, 2, 2), 'VALID')

    y = jax.nn.relu(maxpool2(conv(x_nchw, conv1_w, conv1_b)))
    y = jax.nn.relu(maxpool2(conv(y, conv2_w, conv2_b)))
    y = y.reshape(y.shape[0], -1)
    h = jax.nn.relu(jnp.dot(y, fc1_w.T, precision=hp) + fc1_b)
    logits = jnp.dot(h, fc2_w.T, precision=hp) + fc2_b
    return jax.nn.log_softmax(logits, axis=-1)


if __name__ == "__main__":
    key = jax.random.PRNGKey(0)
    B, C, H, W = 16, 4, 28, 28       # 28x28 input => 64*4*4 = 1024 flatten, as the fc requires
    n_classes = 10

    ks = jax.random.split(key, 10)
    conv1_w = jax.random.normal(ks[0], (32, C, 5, 5), jnp.float32) * 0.05
    conv1_b = jax.random.normal(ks[1], (32,), jnp.float32) * 0.05
    conv2_w = jax.random.normal(ks[2], (64, 32, 5, 5), jnp.float32) * 0.05
    conv2_b = jax.random.normal(ks[3], (64,), jnp.float32) * 0.05
    fc1_w = jax.random.normal(ks[4], (512, 1024), jnp.float32) * 0.03
    fc1_b = jax.random.normal(ks[5], (512,), jnp.float32) * 0.03
    fc2_w = jax.random.normal(ks[6], (n_classes, 512), jnp.float32) * 0.03
    fc2_b = jax.random.normal(ks[7], (n_classes,), jnp.float32) * 0.03
    x = jax.random.normal(ks[8], (B, C, H, W), jnp.float32)

    fwd = jax.jit(cnn_forward)
    out = jax.block_until_ready(fwd(x, conv1_w, conv1_b, conv2_w, conv2_b,
                                    fc1_w, fc1_b, fc2_w, fc2_b))

    assert out.shape == (B, n_classes), out.shape
    assert bool(jnp.all(jnp.isfinite(out)))
    # log_softmax rows must exponentiate-sum to 1
    assert bool(jnp.allclose(jnp.sum(jnp.exp(out), axis=1), 1.0, atol=1e-3))
    # loose comparison vs an f32 XLA reference (bf16 matmul operands => small drift)
    ref = jax.block_until_ready(_reference_forward(
        x, conv1_w, conv1_b, conv2_w, conv2_b, fc1_w, fc1_b, fc2_w, fc2_b))
    assert float(jnp.max(jnp.abs(out - ref))) < 0.1, float(jnp.max(jnp.abs(out - ref)))
    print("KERNEL_OK")
</pallas_src>

<mosaic_0001>
module attributes {stable_mosaic.version = 11 : i64} {
  func.func @_cnn_kernel(%arg0: i32, %arg1: memref<28x8x128xbf16, #tpu.memory_space<vmem>>, %arg2: memref<640x768xbf16, #tpu.memory_space<vmem>>, %arg3: memref<1x384xf32, #tpu.memory_space<vmem>>, %arg4: memref<1920x512xbf16, #tpu.memory_space<vmem>>, %arg5: memref<1x256xf32, #tpu.memory_space<vmem>>, %arg6: memref<1024x512xbf16, #tpu.memory_space<vmem>>, %arg7: memref<1x512xf32, #tpu.memory_space<vmem>>, %arg8: memref<512x128xbf16, #tpu.memory_space<vmem>>, %arg9: memref<1x128xf32, #tpu.memory_space<vmem>>, %arg10: memref<8x128xf32, #tpu.memory_space<vmem>>) attributes {dimension_semantics = [#tpu.dimension_semantics<parallel>], iteration_bounds = array<i64: 2>, scalar_prefetch = 0 : i64, scratch_operands = 0 : i64, tpu.core_type = #tpu.core_type<tc>, window_params = [{transform_indices = @transform_0, window_bounds = array<i64: 28, 8, 128>}, {pipeline_mode = #tpu.pipeline_mode<synchronous>, transform_indices = @transform_1, window_bounds = array<i64: 640, 768>}, {pipeline_mode = #tpu.pipeline_mode<synchronous>, transform_indices = @transform_2, window_bounds = array<i64: 1, 384>}, {pipeline_mode = #tpu.pipeline_mode<synchronous>, transform_indices = @transform_3, window_bounds = array<i64: 1920, 512>}, {pipeline_mode = #tpu.pipeline_mode<synchronous>, transform_indices = @transform_4, window_bounds = array<i64: 1, 256>}, {pipeline_mode = #tpu.pipeline_mode<synchronous>, transform_indices = @transform_5, window_bounds = array<i64: 1024, 512>}, {pipeline_mode = #tpu.pipeline_mode<synchronous>, transform_indices = @transform_6, window_bounds = array<i64: 1, 512>}, {pipeline_mode = #tpu.pipeline_mode<synchronous>, transform_indices = @transform_7, window_bounds = array<i64: 512, 128>}, {pipeline_mode = #tpu.pipeline_mode<synchronous>, transform_indices = @transform_8, window_bounds = array<i64: 1, 128>}, {transform_indices = @transform_9, window_bounds = array<i64: 8, 128>}]} {
    %c0 = arith.constant 0 : index
    %c0_0 = arith.constant 0 : index
    %c0_1 = arith.constant 0 : index
    %0 = vector.load %arg1[%c0, %c0_0, %c0_1] : memref<28x8x128xbf16, #tpu.memory_space<vmem>>, vector<28x8x128xbf16>
    %1 = vector.extract_strided_slice %0 {offsets = [0, 0, 0], sizes = [24, 8, 128], strides = [1, 1, 1]} : vector<28x8x128xbf16> to vector<24x8x128xbf16>
    %2 = vector.extract_strided_slice %0 {offsets = [1, 0, 0], sizes = [24, 8, 128], strides = [1, 1, 1]} : vector<28x8x128xbf16> to vector<24x8x128xbf16>
    %3 = vector.extract_strided_slice %0 {offsets = [2, 0, 0], sizes = [24, 8, 128], strides = [1, 1, 1]} : vector<28x8x128xbf16> to vector<24x8x128xbf16>
    %4 = vector.extract_strided_slice %0 {offsets = [3, 0, 0], sizes = [24, 8, 128], strides = [1, 1, 1]} : vector<28x8x128xbf16> to vector<24x8x128xbf16>
    %5 = vector.extract_strided_slice %0 {offsets = [4, 0, 0], sizes = [24, 8, 128], strides = [1, 1, 1]} : vector<28x8x128xbf16> to vector<24x8x128xbf16>
    %6 = tpu.concatenate %1, %2, %3, %4, %5 in 2 : vector<24x8x128xbf16>, vector<24x8x128xbf16>, vector<24x8x128xbf16>, vector<24x8x128xbf16>, vector<24x8x128xbf16> -> vector<24x8x640xbf16>
    %7 = vector.shape_cast %6 : vector<24x8x640xbf16> to vector<192x640xbf16>
    %c0_2 = arith.constant 0 : index
    %c0_3 = arith.constant 0 : index
    %8 = vector.load %arg2[%c0_2, %c0_3] : memref<640x768xbf16, #tpu.memory_space<vmem>>, vector<640x768xbf16>
    %cst = arith.constant dense<0.000000e+00> : vector<192x768xf32>
    %9 = tpu.matmul %7, %8, %cst {dimension_numbers = #tpu.dot_dimension_numbers<[1], [0], [0], [1], [0, 0, 1, 1], [], []>} : vector<192x640xbf16>, vector<640x768xbf16>, vector<192x768xf32> -> vector<192x768xf32>
    %10 = vector.shape_cast %9 : vector<192x768xf32> to vector<12x2x8x768xf32>
    %11 = vector.extract_strided_slice %10 {offsets = [0, 0, 0, 0], sizes = [12, 1, 8, 768], strides = [1, 1, 1, 1]} : vector<12x2x8x768xf32> to vector<12x1x8x768xf32>
    %12 = vector.shape_cast %11 : vector<12x1x8x768xf32> to vector<12x8x768xf32>
    %13 = vector.extract_strided_slice %10 {offsets = [0, 1, 0, 0], sizes = [12, 1, 8, 768], strides = [1, 1, 1, 1]} : vector<12x2x8x768xf32> to vector<12x1x8x768xf32>
    %14 = vector.shape_cast %13 : vector<12x1x8x768xf32> to vector<12x8x768xf32>
    %15 = arith.maximumf %12, %14 : vector<12x8x768xf32>
    %16 = vector.extract_strided_slice %15 {offsets = [0, 0, 0], sizes = [12, 8, 384], strides = [1, 1, 1]} : vector<12x8x768xf32> to vector<12x8x384xf32>
    %17 = vector.extract_strided_slice %15 {offsets = [0, 0, 384], sizes = [12, 8, 384], strides = [1, 1, 1]} : vector<12x8x768xf32> to vector<12x8x384xf32>
    %18 = arith.maximumf %16, %17 : vector<12x8x384xf32>
    %c0_4 = arith.constant 0 : index
    %c0_5 = arith.constant 0 : index
    %19 = vector.load %arg3[%c0_4, %c0_5] : memref<1x384xf32, #tpu.memory_space<vmem>>, vector<1x384xf32>
    %20 = vector.shape_cast %19 : vector<1x384xf32> to vector<1x1x384xf32>
    %21 = vector.broadcast %20 : vector<1x1x384xf32> to vector<12x8x384xf32>
    %22 = arith.addf %18, %21 : vector<12x8x384xf32>
    %cst_6 = arith.constant 0.000000e+00 : f32
    %23 = vector.broadcast %cst_6 : f32 to vector<12x8x384xf32>
    %24 = arith.maximumf %22, %23 : vector<12x8x384xf32>
    %25 = arith.truncf %24 : vector<12x8x384xf32> to vector<12x8x384xbf16>
    %26 = vector.extract_strided_slice %25 {offsets = [0, 0, 0], sizes = [8, 8, 384], strides = [1, 1, 1]} : vector<12x8x384xbf16> to vector<8x8x384xbf16>
    %27 = vector.extract_strided_slice %25 {offsets = [1, 0, 0], sizes = [8, 8, 384], strides = [1, 1, 1]} : vector<12x8x384xbf16> to vector<8x8x384xbf16>
    %28 = vector.extract_strided_slice %25 {offsets = [2, 0, 0], sizes = [8, 8, 384], strides = [1, 1, 1]} : vector<12x8x384xbf16> to vector<8x8x384xbf16>
    %29 = vector.extract_strided_slice %25 {offsets = [3, 0, 0], sizes = [8, 8, 384], strides = [1, 1, 1]} : vector<12x8x384xbf16> to vector<8x8x384xbf16>
    %30 = vector.extract_strided_slice %25 {offsets = [4, 0, 0], sizes = [8, 8, 384], strides = [1, 1, 1]} : vector<12x8x384xbf16> to vector<8x8x384xbf16>
    %31 = tpu.concatenate %26, %27, %28, %29, %30 in 2 : vector<8x8x384xbf16>, vector<8x8x384xbf16>, vector<8x8x384xbf16>, vector<8x8x384xbf16>, vector<8x8x384xbf16> -> vector<8x8x1920xbf16>
    %32 = vector.shape_cast %31 : vector<8x8x1920xbf16> to vector<64x1920xbf16>
    %c0_7 = arith.constant 0 : index
    %c0_8 = arith.constant 0 : index
    %33 = vector.load %arg4[%c0_7, %c0_8] : memref<1920x512xbf16, #tpu.memory_space<vmem>>, vector<1920x512xbf16>
    %cst_9 = arith.constant dense<0.000000e+00> : vector<64x512xf32>
    %34 = tpu.matmul %32, %33, %cst_9 {dimension_numbers = #tpu.dot_dimension_numbers<[1], [0], [0], [1], [0, 0, 1, 1], [], []>} : vector<64x1920xbf16>, vector<1920x512xbf16>, vector<64x512xf32> -> vector<64x512xf32>
    %35 = vector.shape_cast %34 : vector<64x512xf32> to vector<4x2x8x512xf32>
    %36 = vector.extract_strided_slice %35 {offsets = [0, 0, 0, 0], sizes = [4, 1, 8, 512], strides = [1, 1, 1, 1]} : vector<4x2x8x512xf32> to vector<4x1x8x512xf32>
    %37 = vector.shape_cast %36 : vector<4x1x8x512xf32> to vector<4x8x512xf32>
    %38 = vector.extract_strided_slice %35 {offsets = [0, 1, 0, 0], sizes = [4, 1, 8, 512], strides = [1, 1, 1, 1]} : vector<4x2x8x512xf32> to vector<4x1x8x512xf32>
    %39 = vector.shape_cast %38 : vector<4x1x8x512xf32> to vector<4x8x512xf32>
    %40 = arith.maximumf %37, %39 : vector<4x8x512xf32>
    %41 = vector.extract_strided_slice %40 {offsets = [0, 0, 0], sizes = [4, 8, 256], strides = [1, 1, 1]} : vector<4x8x512xf32> to vector<4x8x256xf32>
    %42 = vector.extract_strided_slice %40 {offsets = [0, 0, 256], sizes = [4, 8, 256], strides = [1, 1, 1]} : vector<4x8x512xf32> to vector<4x8x256xf32>
    %43 = arith.maximumf %41, %42 : vector<4x8x256xf32>
    %c0_10 = arith.constant 0 : index
    %c0_11 = arith.constant 0 : index
    %44 = vector.load %arg5[%c0_10, %c0_11] : memref<1x256xf32, #tpu.memory_space<vmem>>, vector<1x256xf32>
    %45 = vector.shape_cast %44 : vector<1x256xf32> to vector<1x1x256xf32>
    %46 = vector.broadcast %45 : vector<1x1x256xf32> to vector<4x8x256xf32>
    %47 = arith.addf %43, %46 : vector<4x8x256xf32>
    %cst_12 = arith.constant 0.000000e+00 : f32
    %48 = vector.broadcast %cst_12 : f32 to vector<4x8x256xf32>
    %49 = arith.maximumf %47, %48 : vector<4x8x256xf32>
    %50 = arith.truncf %49 : vector<4x8x256xf32> to vector<4x8x256xbf16>
    %51 = vector.extract_strided_slice %50 {offsets = [0, 0, 0], sizes = [1, 8, 256], strides = [1, 1, 1]} : vector<4x8x256xbf16> to vector<1x8x256xbf16>
    %52 = vector.shape_cast %51 : vector<1x8x256xbf16> to vector<8x256xbf16>
    %53 = vector.extract_strided_slice %50 {offsets = [1, 0, 0], sizes = [1, 8, 256], strides = [1, 1, 1]} : vector<4x8x256xbf16> to vector<1x8x256xbf16>
    %54 = vector.shape_cast %53 : vector<1x8x256xbf16> to vector<8x256xbf16>
    %55 = vector.extract_strided_slice %50 {offsets = [2, 0, 0], sizes = [1, 8, 256], strides = [1, 1, 1]} : vector<4x8x256xbf16> to vector<1x8x256xbf16>
    %56 = vector.shape_cast %55 : vector<1x8x256xbf16> to vector<8x256xbf16>
    %57 = vector.extract_strided_slice %50 {offsets = [3, 0, 0], sizes = [1, 8, 256], strides = [1, 1, 1]} : vector<4x8x256xbf16> to vector<1x8x256xbf16>
    %58 = vector.shape_cast %57 : vector<1x8x256xbf16> to vector<8x256xbf16>
    %59 = tpu.concatenate %52, %54, %56, %58 in 1 : vector<8x256xbf16>, vector<8x256xbf16>, vector<8x256xbf16>, vector<8x256xbf16> -> vector<8x1024xbf16>
    %c0_13 = arith.constant 0 : index
    %c0_14 = arith.constant 0 : index
    %60 = vector.load %arg6[%c0_13, %c0_14] : memref<1024x512xbf16, #tpu.memory_space<vmem>>, vector<1024x512xbf16>
    %cst_15 = arith.constant dense<0.000000e+00> : vector<8x512xf32>
    %61 = tpu.matmul %59, %60, %cst_15 {dimension_numbers = #tpu.dot_dimension_numbers<[1], [0], [0], [1], [0, 0, 1, 1], [], []>} : vector<8x1024xbf16>, vector<1024x512xbf16>, vector<8x512xf32> -> vector<8x512xf32>
    %c0_16 = arith.constant 0 : index
    %c0_17 = arith.constant 0 : index
    %62 = vector.load %arg7[%c0_16, %c0_17] : memref<1x512xf32, #tpu.memory_space<vmem>>, vector<1x512xf32>
    %63 = vector.broadcast %62 : vector<1x512xf32> to vector<8x512xf32>
    %64 = arith.addf %61, %63 : vector<8x512xf32>
    %cst_18 = arith.constant 0.000000e+00 : f32
    %65 = vector.broadcast %cst_18 : f32 to vector<8x512xf32>
    %66 = arith.maximumf %64, %65 : vector<8x512xf32>
    %67 = arith.truncf %66 : vector<8x512xf32> to vector<8x512xbf16>
    %c0_19 = arith.constant 0 : index
    %c0_20 = arith.constant 0 : index
    %68 = vector.load %arg8[%c0_19, %c0_20] : memref<512x128xbf16, #tpu.memory_space<vmem>>, vector<512x128xbf16>
    %cst_21 = arith.constant dense<0.000000e+00> : vector<8x128xf32>
    %69 = tpu.matmul %67, %68, %cst_21 {dimension_numbers = #tpu.dot_dimension_numbers<[1], [0], [0], [1], [0, 0, 1, 1], [], []>} : vector<8x512xbf16>, vector<512x128xbf16>, vector<8x128xf32> -> vector<8x128xf32>
    %c0_22 = arith.constant 0 : index
    %c0_23 = arith.constant 0 : index
    %70 = vector.load %arg9[%c0_22, %c0_23] : memref<1x128xf32, #tpu.memory_space<vmem>>, vector<1x128xf32>
    %71 = vector.broadcast %70 : vector<1x128xf32> to vector<8x128xf32>
    %72 = arith.addf %69, %71 : vector<8x128xf32>
    %cst_24 = arith.constant dense<0xFF800000> : vector<8xf32>
    %73 = vector.multi_reduction <maximumf>, %72, %cst_24 [1] : vector<8x128xf32> to vector<8xf32>
    %74 = vector.shape_cast %73 : vector<8xf32> to vector<8x1xf32>
    %75 = vector.broadcast %74 : vector<8x1xf32> to vector<8x128xf32>
    %76 = arith.subf %72, %75 : vector<8x128xf32>
    %77 = math.exp %76 : vector<8x128xf32>
    %cst_25 = arith.constant dense<0.000000e+00> : vector<8xf32>
    %78 = vector.multi_reduction <add>, %77, %cst_25 [1] : vector<8x128xf32> to vector<8xf32>
    %79 = vector.shape_cast %78 : vector<8xf32> to vector<8x1xf32>
    %80 = math.log %79 : vector<8x1xf32>
    %81 = vector.broadcast %80 : vector<8x1xf32> to vector<8x128xf32>
    %82 = arith.subf %76, %81 : vector<8x128xf32>
    %c0_26 = arith.constant 0 : index
    %c0_27 = arith.constant 0 : index
    %83 = vector.load %arg10[%c0_26, %c0_27] : memref<8x128xf32, #tpu.memory_space<vmem>>, vector<8x128xf32>
    tpu.vector_store %arg10[%c0_26, %c0_27], %82 {strides = array<i32>} : memref<8x128xf32, #tpu.memory_space<vmem>>, vector<8x128xf32>,
    return
  }
  func.func @transform_0(%arg0: i32) -> (i32, i32, i32) {
    %c0_i32 = arith.constant 0 : i32
    %c0_i32_0 = arith.constant 0 : i32
    %c0_i32_1 = arith.constant 0 : i32
    return %c0_i32, %arg0, %c0_i32_0 : i32, i32, i32
  }
  func.func @transform_1(%arg0: i32) -> (i32, i32) {
    %c0_i32 = arith.constant 0 : i32
    %c0_i32_0 = arith.constant 0 : i32
    %c0_i32_1 = arith.constant 0 : i32
    return %c0_i32, %c0_i32_0 : i32, i32
  }
  func.func @transform_2(%arg0: i32) -> (i32, i32) {
    %c0_i32 = arith.constant 0 : i32
    %c0_i32_0 = arith.constant 0 : i32
    %c0_i32_1 = arith.constant 0 : i32
    return %c0_i32, %c0_i32_0 : i32, i32
  }
  func.func @transform_3(%arg0: i32) -> (i32, i32) {
    %c0_i32 = arith.constant 0 : i32
    %c0_i32_0 = arith.constant 0 : i32
    %c0_i32_1 = arith.constant 0 : i32
    return %c0_i32, %c0_i32_0 : i32, i32
  }
  func.func @transform_4(%arg0: i32) -> (i32, i32) {
    %c0_i32 = arith.constant 0 : i32
    %c0_i32_0 = arith.constant 0 : i32
    %c0_i32_1 = arith.constant 0 : i32
    return %c0_i32, %c0_i32_0 : i32, i32
  }
  func.func @transform_5(%arg0: i32) -> (i32, i32) {
    %c0_i32 = arith.constant 0 : i32
    %c0_i32_0 = arith.constant 0 : i32
    %c0_i32_1 = arith.constant 0 : i32
    return %c0_i32, %c0_i32_0 : i32, i32
  }
  func.func @transform_6(%arg0: i32) -> (i32, i32) {
    %c0_i32 = arith.constant 0 : i32
    %c0_i32_0 = arith.constant 0 : i32
    %c0_i32_1 = arith.constant 0 : i32
    return %c0_i32, %c0_i32_0 : i32, i32
  }
  func.func @transform_7(%arg0: i32) -> (i32, i32) {
    %c0_i32 = arith.constant 0 : i32
    %c0_i32_0 = arith.constant 0 : i32
    %c0_i32_1 = arith.constant 0 : i32
    return %c0_i32, %c0_i32_0 : i32, i32
  }
  func.func @transform_8(%arg0: i32) -> (i32, i32) {
    %c0_i32 = arith.constant 0 : i32
    %c0_i32_0 = arith.constant 0 : i32
    %c0_i32_1 = arith.constant 0 : i32
    return %c0_i32, %c0_i32_0 : i32, i32
  }
  func.func @transform_9(%arg0: i32) -> (i32, i32) {
    %c0_i32 = arith.constant 0 : i32
    %c0_i32_0 = arith.constant 0 : i32
    return %arg0, %c0_i32 : i32, i32
  }
}

</mosaic_0001>

<bundles_post_ra>
// kernel: tile.13
= control target key start
LH: loop header
LB: loop body
LE: loop exit
PB: predicated region body
PF: predicated region fallthrough
CT: control target
= control target key end

     0   :  { %s28_s0 = inlined_call_operand.vmem [shape: f32[32], index: 0, kind: input, shape index: {}]   ;;  %s29_s1 = inlined_call_operand.vmem [shape: f32[12,32], index: 1, kind: output, shape index: {}]  }
   0x1   :  { %v4_v0 = vld [vmem:[%s28_s0] ss:$0 sm:$0xff] }
   0x2   :  { %5 = vst [vmem:[%s29_s1] sm:$0xff] %v4_v0  ;;  %8 = vst [vmem:[%s29_s1 + $0x8] sm:$0xff] %v4_v0 }

// kernel: tile.14
= control target key start
LH: loop header
LB: loop body
LE: loop exit
PB: predicated region body
PF: predicated region fallthrough
CT: control target
= control target key end

     0   :  { %s49_s8 = smov 96   ;;  %vm3_vm0 = vcmask 261120   ;;  %s51_s15 = smov 64   ;;  %vm9_vm1 = vcmask 1048320   ;;  %vm15_vm2 = vcmask 785920   ;;  %vm21_vm3 = vcmask 523520   ;;  %s83_s0 = inlined_call_operand.vmem [shape: f32[12,32], index: 0, kind: input, shape index: {}]   ;;  %s84_s1 = inlined_call_operand.vmem [shape: f32[1,384], index: 1, kind: output, shape index: {}]  }
   0x1   :  { %v41_v0 = vld [vmem:[%s83_s0 + $0x3] ss:$4 sm:$0x7]   ;;  %v42_v1 = vld [vmem:[%s83_s0 + $0x2] ss:$4 sm:$0x7]  }
   0x2   :  { %7 = vrot.lane.b32.xlu0 %v41_v0, %s49_s8  ;;  %v43_v2 = vld [vmem:[%s83_s0 + $0x1] ss:$4 sm:$0x7]   ;;  %v2_v3 = vld [vmem:[%s83_s0] ss:$4 sm:$0x7]  }
   0x3   :  { %s50_s0 = smov 32   ;;  %4 = vst.msk [vmem:[#allocation0] ss:$8 sm:$0x7] %vm3_vm0, %v2_v3  }
   0x4   :  { %19 = vrot.lane.b32.xlu1 %v43_v2, %s50_s0 }
   0x6   :  { %13 = vrot.lane.b32.xlu0 %v42_v1, %s51_s15 }
  0x74   :  { %v8_v4 = vpop.permute.xlu0 %7  }
  0x75   :  { %10 = vst.msk [vmem:[#allocation0] ss:$8 sm:$0x7] %vm9_vm1, %v8_v4  }
  0x76   :  { %v20_v5 = vpop.permute.xlu1 %19  }
  0x78   :  { %v14_v6 = vpop.permute.xlu0 %13  }
  0x79   :  { %16 = vst.msk [vmem:[#allocation0] ss:$8 sm:$0x7] %vm15_vm2, %v14_v6  }
  0x7a   :  { %22 = vst.msk [vmem:[#allocation0] ss:$8 sm:$0x7] %vm21_vm3, %v20_v5  }
  0x81   :  { %v26_v7 = vld [vmem:[#allocation0] sm:$0x1]  ;;  %v30_v8 = vld [vmem:[#allocation0 + $0x8] sm:$0x1]  ;;  %v35_v9 = vld [vmem:[#allocation0 + $0x10] sm:$0x1] }
  0x82   :  { %28 = vst [vmem:[%s84_s1] sm:$0x1] %v26_v7  ;;  %44 = vst [vmem:[%s84_s1 + $0x1] sm:$0x1] %v30_v8 }
  0x83   :  { %45 = vst [vmem:[%s84_s1 + $0x2] sm:$0x1] %v35_v9 }

// kernel: tile.18
= control target key start
LH: loop header
LB: loop body
LE: loop exit
PB: predicated region body
PF: predicated region fallthrough
CT: control target
= control target key end

     0   :  { %s22_s0 = inlined_call_operand.vmem [shape: f32[64], index: 0, kind: input, shape index: {}]   ;;  %s23_s1 = inlined_call_operand.vmem [shape: f32[4,64], index: 1, kind: output, shape index: {}]  }
   0x1   :  { %v4_v0 = vld [vmem:[%s22_s0] ss:$0 sm:$0xff] }
   0x2   :  { %5 = vst [vmem:[%s23_s1] sm:$0xf] %v4_v0 }

// kernel: tile.19
= control target key start
LH: loop header
LB: loop body
LE: loop exit
PB: predicated region body
PF: predicated region fallthrough
CT: control target
= control target key end

     0   :  { %s6_s8 = smov 3  ;;  %vm8_vm0 = vcmask 523264   ;;  %s30_s9 = smov 64   ;;  %vm15_vm1 = vcmask 1048064   ;;  %s50_s0 = inlined_call_operand.vmem [shape: f32[4,64], index: 0, kind: input, shape index: {}]   ;;  %s51_s1 = inlined_call_operand.vmem [shape: f32[1,256], index: 1, kind: output, shape index: {}]  }
   0x1   :  { %v4_v0 = vld [vmem:[%s50_s0] sm:$0xf]  ;;  %s11_s0 = smov 3 }
   0x2   :  { %5 = vst [vmem:[#allocation1] sm:$0xf] %v4_v0 }
   0x9   :  { %v12_v1 = vld [vmem:[#allocation1 + $0x1] ss:$2 sm:%s11_s0]   ;;  %v7_v2 = vld [vmem:[#allocation1] ss:$2 sm:%s6_s8]  }
   0xa   :  { %13 = vrot.lane.b32.xlu0 %v12_v1, %s30_s9  ;;  %9 = vst.msk [vmem:[#allocation0] ss:$8 sm:$0x3] %vm8_vm0, %v7_v2  }
  0x7c   :  { %v14_v3 = vpop.permute.xlu0 %13  }
  0x7d   :  { %16 = vst.msk [vmem:[#allocation0] ss:$8 sm:$0x3] %vm15_vm1, %v14_v3  }
  0x84   :  { %v20_v4 = vld [vmem:[#allocation0] sm:$0x1]  ;;  %v24_v5 = vld [vmem:[#allocation0 + $0x8] sm:$0x1] }
  0x85   :  { %22 = vst [vmem:[%s51_s1] sm:$0x1] %v20_v4  ;;  %28 = vst [vmem:[%s51_s1 + $0x1] sm:$0x1] %v24_v5 }

// kernel: cnn_forward.1
= control target key start
LH: loop header
LB: loop body
LE: loop exit
PB: predicated region body
PF: predicated region fallthrough
CT: control target
= control target key end

     0   :  { %14 = vsyncpa [#allocation4], 0  ;;  %s17939_s0 = inlined_call_operand.vmem [shape: bf16[28,16,128], index: 0, kind: input, shape index: {}]   ;;  %s17940_s1 = inlined_call_operand.vmem [shape: bf16[640,768], index: 1, kind: input, shape index: {}]   ;;  %s17941_s2 = inlined_call_operand.vmem [shape: f32[1,384], index: 2, kind: input, shape index: {}]   ;;  %s17942_s3 = inlined_call_operand.vmem [shape: bf16[1920,512], index: 3, kind: input, shape index: {}]   ;;  %s17943_s4 = inlined_call_operand.vmem [shape: f32[1,256], index: 4, kind: input, shape index: {}]   ;;  %s17944_s5 = inlined_call_operand.vmem [shape: bf16[1024,512], index: 5, kind: input, shape index: {}]   ;;  %s17945_s6 = inlined_call_operand.vmem [shape: f32[1,512], index: 6, kind: input, shape index: {}]   ;;  %s17946_s7 = inlined_call_operand.vmem [shape: bf16[512,128], index: 7, kind: input, shape index: {}]   ;;  %s17947_s8 = inlined_call_operand.vmem [shape: f32[1,128], index: 8, kind: input, shape index: {}]   ;;  %s17948_s9 = inlined_call_operand.hbm [shape: f32[16,128], index: 9, kind: output, shape index: {}]  }
   0x1   :  { %16 = vsyncpa [#allocation4 + $0x1], 0  ;;  %s13623_s30 = smov 0   ;;  %s13625_s10 = smov 0  }
   0x2   :  { %s13627_s11 = smov 0   ;;  %s13629_s12 = smov 0  }
   0x3 LB: > { %s10241_s13 = sadd.s32 4294967295, %s13569_s12   ;;  %s10242_s14 = sadd.s32 4294967294, %s13569_s12   ;;  %s13569_s12 = sphi %s13629_s12, %s18161_s12   ;;  %s13565_s11 = sphi %s13627_s11, %s18160_s11   ;;  %s13561_s10 = sphi %s13625_s10, %s18159_s10   ;;  %s13557_s30 = sphi %s13623_s30, %s18158_s30  }
   0x4   : > { %s13646_s15 = sadd.s32 1, %s13569_s12   ;;  %s29_s16 = sadd.s32 1, %s13565_s11 }
   0x5   : > { %s26_s17 = ssub.s32 %s13569_s12, %s13646_s15  ;;  %p36_p0 = scmp.ne.s32.totalorder %s13565_s11, %s13561_s10 }
   0x6   : > { %p27_p1 = scmp.eq.s32.totalorder %s26_s17, 0  ;;  %p37_p2 = scmp.eq.s32.totalorder %s13569_s12, 0 }
   0x7   : > { %p234_p3 = scmp.eq.s32.totalorder %s10241_s13, 1  ;;  %p239_p4 = scmp.ne.s32.totalorder %s13561_s10, %s13557_s30 }
   0x8   : > { %s13659_s18 = scalar_select %p27_p1, %s13565_s11, %s29_s16  }
   0x9   : > { %p38_p5 = por %p37_p2, %p36_p0  ;;  %p13661_p6 = por %p234_p3, %p36_p0 }
   0xa   : > { %p240_p7 = scmp.eq.s32.totalorder %s10242_s14, 1  ;;  %p10244_p9 = scmp.ge.s32.totalorder %s13569_s12, 2 }
   0xc   : > { %p13665_p8 = por %p240_p7, %p239_p4  ;;  %280 = sbr.rel (%p10244_p9) target bundleno = 42 (0x2a), region = 48 }
  0x13   : > { %283 = sbr.rel (!%p38_p5) target bundleno = 42 (0x2a), region = 52  ;;  %s285_s21 = sand.u32 (%p38_p5), 1, %s13565_s11  }
  0x14   : > { %s10245_s22 = sshll.u32 (%p38_p5), %s13569_s12, 2  ;;  %s11938_s23 = smul.u32 (%p38_p5), 112, %s285_s21 }
  0x15   : > { %s13677_s26 = scalar_lea.vmem (%p38_p5), %s17939_s0, %s10245_s22 }
  0x16   : > { %v305_v0 = vld [vmem:[%s13677_s26] sm:$0xf] (%p38_p5)  ;;  %v307_v1 = vld [vmem:[%s13677_s26 + $0x8] sm:$0xf] (%p38_p5)  ;;  %v309_v2 = vld [vmem:[%s13677_s26 + $0x10] sm:$0xf] (%p38_p5) }
  0x17   : > { %v311_v3 = vld [vmem:[%s13677_s26 + $0x18] sm:$0xf] (%p38_p5)  ;;  %v313_v4 = vld [vmem:[%s13677_s26 + $0x20] sm:$0xf] (%p38_p5)  ;;  %s13684_s27 = scalar_lea.vmem (%p38_p5), [#allocation2], %s11938_s23 }
  0x18   : > { %306 = vst [vmem:[%s13684_s27] sm:$0xf] (%p38_p5), %v305_v0  ;;  %308 = vst [vmem:[%s13684_s27 + $0x4] sm:$0xf] (%p38_p5), %v307_v1  ;;  %v315_v5 = vld [vmem:[%s13677_s26 + $0x28] sm:$0xf] (%p38_p5) }
  0x19   : > { %310 = vst [vmem:[%s13684_s27 + $0x8] sm:$0xf] (%p38_p5), %v309_v2  ;;  %312 = vst [vmem:[%s13684_s27 + $0xc] sm:$0xf] (%p38_p5), %v311_v3  ;;  %v317_v6 = vld [vmem:[%s13677_s26 + $0x30] sm:$0xf] (%p38_p5) }
  0x1a   : > { %314 = vst [vmem:[%s13684_s27 + $0x10] sm:$0xf] %v313_v4  ;;  %v319_v7 = vld [vmem:[%s13677_s26 + $0x38] sm:$0xf]  ;;  %316 = vst [vmem:[%s13684_s27 + $0x14] sm:$0xf] %v315_v5 }
  0x1b   : > { %318 = vst [vmem:[%s13684_s27 + $0x18] sm:$0xf] %v317_v6  ;;  %320 = vst [vmem:[%s13684_s27 + $0x1c] sm:$0xf] %v319_v7  ;;  %v321_v8 = vld [vmem:[%s13677_s26 + $0x40] sm:$0xf] }
  0x1c   : > { %v323_v9 = vld [vmem:[%s13677_s26 + $0x48] sm:$0xf]  ;;  %v325_v10 = vld [vmem:[%s13677_s26 + $0x50] sm:$0xf]  ;;  %322 = vst [vmem:[%s13684_s27 + $0x20] sm:$0xf] %v321_v8 }
  0x1d   : > { %324 = vst [vmem:[%s13684_s27 + $0x24] sm:$0xf] %v323_v9  ;;  %326 = vst [vmem:[%s13684_s27 + $0x28] sm:$0xf] %v325_v10  ;;  %v327_v11 = vld [vmem:[%s13677_s26 + $0x58] sm:$0xf] }
  0x1e   : > { %v329_v12 = vld [vmem:[%s13677_s26 + $0x60] sm:$0xf]  ;;  %v331_v13 = vld [vmem:[%s13677_s26 + $0x68] sm:$0xf]  ;;  %328 = vst [vmem:[%s13684_s27 + $0x2c] sm:$0xf] %v327_v11 }
  0x1f   : > { %330 = vst [vmem:[%s13684_s27 + $0x30] sm:$0xf] %v329_v12  ;;  %332 = vst [vmem:[%s13684_s27 + $0x34] sm:$0xf] %v331_v13  ;;  %v333_v14 = vld [vmem:[%s13677_s26 + $0x70] sm:$0xf] }
  0x20   : > { %v335_v15 = vld [vmem:[%s13677_s26 + $0x78] sm:$0xf]  ;;  %v337_v16 = vld [vmem:[%s13677_s26 + $0x80] sm:$0xf]  ;;  %334 = vst [vmem:[%s13684_s27 + $0x38] sm:$0xf] %v333_v14 }
  0x21   : > { %336 = vst [vmem:[%s13684_s27 + $0x3c] sm:$0xf] %v335_v15  ;;  %338 = vst [vmem:[%s13684_s27 + $0x40] sm:$0xf] %v337_v16  ;;  %v339_v17 = vld [vmem:[%s13677_s26 + $0x88] sm:$0xf] }
  0x22   : > { %v341_v18 = vld [vmem:[%s13677_s26 + $0x90] sm:$0xf]  ;;  %v343_v19 = vld [vmem:[%s13677_s26 + $0x98] sm:$0xf]  ;;  %340 = vst [vmem:[%s13684_s27 + $0x44] sm:$0xf] %v339_v17 }
  0x23   : > { %342 = vst [vmem:[%s13684_s27 + $0x48] sm:$0xf] %v341_v18  ;;  %344 = vst [vmem:[%s13684_s27 + $0x4c] sm:$0xf] %v343_v19  ;;  %v345_v20 = vld [vmem:[%s13677_s26 + $0xa0] sm:$0xf] }
  0x24   : > { %v347_v21 = vld [vmem:[%s13677_s26 + $0xa8] sm:$0xf]  ;;  %v349_v22 = vld [vmem:[%s13677_s26 + $0xb0] sm:$0xf]  ;;  %346 = vst [vmem:[%s13684_s27 + $0x50] sm:$0xf] %v345_v20 }
  0x25   : > { %348 = vst [vmem:[%s13684_s27 + $0x54] sm:$0xf] %v347_v21  ;;  %350 = vst [vmem:[%s13684_s27 + $0x58] sm:$0xf] %v349_v22  ;;  %v351_v23 = vld [vmem:[%s13677_s26 + $0xb8] sm:$0xf] }
  0x26   : > { %v353_v24 = vld [vmem:[%s13677_s26 + $0xc0] sm:$0xf]  ;;  %v355_v25 = vld [vmem:[%s13677_s26 + $0xc8] sm:$0xf]  ;;  %352 = vst [vmem:[%s13684_s27 + $0x5c] sm:$0xf] %v351_v23 }
  0x27   : > { %354 = vst [vmem:[%s13684_s27 + $0x60] sm:$0xf] %v353_v24  ;;  %356 = vst [vmem:[%s13684_s27 + $0x64] sm:$0xf] %v355_v25  ;;  %v357_v26 = vld [vmem:[%s13677_s26 + $0xd0] sm:$0xf] }
  0x28   : > { %v359_v27 = vld [vmem:[%s13677_s26 + $0xd8] sm:$0xf]  ;;  %358 = vst [vmem:[%s13684_s27 + $0x68] sm:$0xf] %v357_v26 }
  0x29   : > { %360 = vst [vmem:[%s13684_s27 + $0x6c] sm:$0xf] %v359_v27 }
  0x2a PF: > { %p10246_p10 = scmp.ge.s32.totalorder %s13569_s12, 1  ;;  %p438_p11 = scmp.lt.s32.totalorder %s13569_s12, 3 }
  0x2c   : > { %p439_p12 = pnand %p10246_p10, %p438_p11 }
  0x2e   : > { %442 = sbr.rel (%p439_p12) target bundleno = 2788 (0xae4), region = 93 }
  0x35   : > { %v11980_v28 = vld [vmem:[%s17940_s1 + $0x4] ss:$24 sps:$4 sm:$0xff]   ;;  %v11982_v29 = vld [vmem:[%s17940_s1] ss:$24 sps:$4 sm:$0xff]   ;;  %v11983_v30 = vld [vmem:[%s17940_s1 + $0x34] ss:$24 sps:$4 sm:$0xff]  }
  0x36   : > { %2059 = vmatprep.subr.bf16.mxu0 %v11980_v28  ;;  %v11985_v31 = vld [vmem:[%s17940_s1 + $0x30] ss:$24 sps:$4 sm:$0xff]   ;;  %v11986_v32 = vld [vmem:[%s17940_s1 + $0x64] ss:$24 sps:$4 sm:$0xff]   ;;  %v11988_v33 = vld [vmem:[%s17940_s1 + $0x60] ss:$24 sps:$4 sm:$0xff]  }
  0x37   : > { %2060 = vmatpush1.bf16.msra.mxu0 %v11982_v29  ;;  %v11989_v34 = vld [vmem:[%s17940_s1 + $0x94] ss:$24 sps:$4 sm:$0xff]   ;;  %v11991_v35 = vld [vmem:[%s17940_s1 + $0x90] ss:$24 sps:$4 sm:$0xff]   ;;  %s13764_s17 = sand.u32 1, %s13561_s10   ;;  %s11318_s26 = sshll.u32 %s10241_s13, 7 }
  0x38   : > { %2061 = vmatprep.subr.bf16.mxu0 %v11983_v30  ;;  %v11992_v36 = vld [vmem:[%s17940_s1 + $0xc4] ss:$24 sps:$4 sm:$0xff]   ;;  %s11939_s23 = smul.u32 112, %s13764_s17  ;;  %v11994_v37 = vld [vmem:[%s17940_s1 + $0xc0] ss:$24 sps:$4 sm:$0xff]   ;;  %s10247_s25 = sshll.u32 %s13764_s17, 3 }
  0x39   : > { %v11995_v38 = vld [vmem:[%s17940_s1 + $0xf4] ss:$24 sps:$4 sm:$0xff]   ;;  %v11997_v39 = vld [vmem:[%s17940_s1 + $0xf0] ss:$24 sps:$4 sm:$0xff]   ;;  %v11998_v40 = vld [vmem:[%s17940_s1 + $0x124] ss:$24 sps:$4 sm:$0xff]   ;;  %s17895_s14 = scalar_lea.hbm %s17948_s9, %s11318_s26 }
  0x3a   : > { %s13782_s21 = scalar_lea.vmem [#allocation2], %s11939_s23  ;;  %v12000_v46 = vld [vmem:[%s17940_s1 + $0x120] ss:$24 sps:$4 sm:$0xff]   ;;  %v12001_v48 = vld [vmem:[%s17940_s1 + $0x154] ss:$24 sps:$4 sm:$0xff]   ;;  %s479_s27 = scalar_lea.vmem [#allocation3], %s10247_s25 }
  0x3b   : > { %2062 = vmatpush1.bf16.msra.mxu0 %v11985_v31  ;;  %v482_v41 = vld [vmem:[%s13782_s21 + $0x4] sm:$0xf]  ;;  %v13786_v42 = vld [vmem:[%s13782_s21 + $0x8] sm:$0xf]  ;;  %v13789_v43 = vld [vmem:[%s13782_s21 + $0xc] sm:$0xf] }
  0x3c   : > { %2063 = vmatprep.subr.bf16.mxu0 %v11986_v32  ;;  %v13792_v44 = vld [vmem:[%s13782_s21 + $0x10] sm:$0xf]  ;;  %v13795_v45 = vcombine.low %v482_v41, %v13786_v42  ;;  %v12004_v50 = vld [vmem:[%s17940_s1 + $0x184] ss:$24 sps:$4 sm:$0xff]   ;;  %v12007_v52 = vld [vmem:[%s17940_s1 + $0x1b4] ss:$24 sps:$4 sm:$0xff]   ;;  %v13899_v16 = vcombine.low %v13786_v42, %v13789_v43 }
  0x3d   : > { %v13802_v47 = vcombine.low %v13789_v43, %v13792_v44  ;;  %v12003_v49 = vld [vmem:[%s17940_s1 + $0x150] ss:$24 sps:$4 sm:$0xff]   ;;  %v12006_v51 = vld [vmem:[%s17940_s1 + $0x180] ss:$24 sps:$4 sm:$0xff]   ;;  %v12010_v54 = vld [vmem:[%s17940_s1 + $0x1e4] ss:$24 sps:$4 sm:$0xff]  }
  0x3e   : > { %2091 = vmatprep.mubr.bf16.mxu0 %v13795_v45  ;;  %v12009_v53 = vld [vmem:[%s17940_s1 + $0x1b0] ss:$24 sps:$4 sm:$0xff]   ;;  %v12012_v55 = vld [vmem:[%s17940_s1 + $0x1e0] ss:$24 sps:$4 sm:$0xff]   ;;  %v12013_v56 = vld [vmem:[%s17940_s1 + $0x214] ss:$24 sps:$4 sm:$0xff]  }
  0x3f   : > { %2064 = vmatpush1.bf16.msra.mxu0 %v11988_v33  ;;  %2703 = vmatprep.mubr.bf16.mxu1 %v13802_v47  ;;  %v12015_v57 = vld [vmem:[%s17940_s1 + $0x210] ss:$24 sps:$4 sm:$0xff]   ;;  %v12016_v58 = vld [vmem:[%s17940_s1 + $0x244] ss:$24 sps:$4 sm:$0xff]   ;;  %v12018_v59 = vld [vmem:[%s17940_s1 + $0x240] ss:$24 sps:$4 sm:$0xff]  }
  0x40   : > { %2065 = vmatprep.subr.bf16.mxu0 %v11989_v34  ;;  %v12019_v60 = vld [vmem:[%s17940_s1 + $0x274] ss:$24 sps:$4 sm:$0xff]   ;;  %v12021_v61 = vld [vmem:[%s17940_s1 + $0x270] ss:$24 sps:$4 sm:$0xff]   ;;  %v12022_v62 = vld [vmem:[%s17940_s1 + $0x2a4] ss:$24 sps:$4 sm:$0xff]  }
  0x41   : > { %v12024_v63 = vld [vmem:[%s17940_s1 + $0x2a0] ss:$24 sps:$4 sm:$0xff]   ;;  %v12025_v0 = vld [vmem:[%s17940_s1 + $0x2d4] ss:$24 sps:$4 sm:$0xff]   ;;  %v12027_v1 = vld [vmem:[%s17940_s1 + $0x2d0] ss:$24 sps:$4 sm:$0xff]  }
  0x42   : > { %v481_v2 = vld [vmem:[%s13782_s21] sm:$0xf]  ;;  %v12039_v3 = vld [vmem:[%s17940_s1 + $0x304] ss:$24 sps:$4 sm:$0xff]   ;;  %v12042_v6 = vld [vmem:[%s17940_s1 + $0x334] ss:$24 sps:$4 sm:$0xff]  }
  0x43   : > { %2066 = vmatpush1.bf16.msra.mxu0 %v11991_v35  ;;  %v12037_v4 = vld [vmem:[%s17940_s1 + $0x300] ss:$24 sps:$4 sm:$0xff]   ;;  %v13867_v5 = vcombine.low %v481_v2, %v482_v41  ;;  %v12109_v7 = vld [vmem:[%s17940_s1 + $0x30c] ss:$24 sps:$4 sm:$0xff]   ;;  %v12040_v11 = vld [vmem:[%s17940_s1 + $0x330] ss:$24 sps:$4 sm:$0xff]  }
  0x44   : > { %2067 = vmatprep.subr.bf16.mxu0 %v11992_v36  ;;  %v12111_v8 = vld [vmem:[%s17940_s1 + $0x308] ss:$24 sps:$4 sm:$0xff]   ;;  %v486_v9 = vld [vmem:[%s13782_s21 + $0x14] sm:$0xf]  ;;  %2671 = vmatprep.subr.bf16.mxu1 %v12109_v7  ;;  %v12117_v14 = vld [vmem:[%s17940_s1 + $0x338] ss:$24 sps:$4 sm:$0xff]  }
  0x45   : > { %v487_v10 = vld [vmem:[%s13782_s21 + $0x18] sm:$0xf]  ;;  %v12045_v12 = vld [vmem:[%s17940_s1 + $0x364] ss:$24 sps:$4 sm:$0xff]   ;;  %2672 = vmatpush1.bf16.msra.mxu1 %v12111_v8  ;;  %v12048_v17 = vld [vmem:[%s17940_s1 + $0x394] ss:$24 sps:$4 sm:$0xff]   ;;  %v13932_v28 = vcombine.low %v13792_v44, %v486_v9 }
  0x46   : > { %v12115_v13 = vld [vmem:[%s17940_s1 + $0x33c] ss:$24 sps:$4 sm:$0xff]   ;;  %v12043_v15 = vld [vmem:[%s17940_s1 + $0x360] ss:$24 sps:$4 sm:$0xff]   ;;  %v13904_v18 = vcombine.low %v486_v9, %v487_v10  ;;  %v12118_v19 = vld [vmem:[%s17940_s1 + $0x36c] ss:$24 sps:$4 sm:$0xff]  }
  0x47   : > { %2068 = vmatpush1.bf16.msra.mxu0 %v11994_v37  ;;  %2673 = vmatprep.subr.bf16.mxu1 %v12115_v13  ;;  %v12046_v20 = vld [vmem:[%s17940_s1 + $0x390] ss:$24 sps:$4 sm:$0xff]   ;;  %v488_v22 = vld [vmem:[%s13782_s21 + $0x1c] sm:$0xf]  ;;  %v12049_v27 = vld [vmem:[%s17940_s1 + $0x3c0] ss:$24 sps:$4 sm:$0xff]  }
  0x48   : > { %2069 = vmatprep.subr.bf16.mxu0 %v11995_v38  ;;  %v12120_v21 = vld [vmem:[%s17940_s1 + $0x368] ss:$24 sps:$4 sm:$0xff]   ;;  %v12051_v24 = vld [vmem:[%s17940_s1 + $0x3c4] ss:$24 sps:$4 sm:$0xff]   ;;  %v12123_v26 = vld [vmem:[%s17940_s1 + $0x398] ss:$24 sps:$4 sm:$0xff]  }
  0x49   : > { %2674 = vmatpush1.bf16.msra.mxu1 %v12117_v14  ;;  %v489_v23 = vld [vmem:[%s13782_s21 + $0x20] sm:$0xf]  ;;  %v12121_v25 = vld [vmem:[%s17940_s1 + $0x39c] ss:$24 sps:$4 sm:$0xff]   ;;  %v12127_v31 = vld [vmem:[%s17940_s1 + $0x3cc] ss:$24 sps:$4 sm:$0xff]  }
  0x4a   : > { %2675 = vmatprep.subr.bf16.mxu1 %v12118_v19  ;;  %v12054_v29 = vld [vmem:[%s17940_s1 + $0x3f4] ss:$24 sps:$4 sm:$0xff]   ;;  %v13937_v30 = vcombine.low %v488_v22, %v489_v23  ;;  %v12052_v32 = vld [vmem:[%s17940_s1 + $0x3f0] ss:$24 sps:$4 sm:$0xff]   ;;  %v12058_v36 = vld [vmem:[%s17940_s1 + $0x424] ss:$24 sps:$4 sm:$0xff]  }
  0x4b   : > { %2070 = vmatpush1.bf16.msra.mxu0 %v11997_v39  ;;  %v12129_v33 = vld [vmem:[%s17940_s1 + $0x3c8] ss:$24 sps:$4 sm:$0xff]   ;;  %v490_v34 = vld [vmem:[%s13782_s21 + $0x24] sm:$0xf]  ;;  %v12132_v38 = vld [vmem:[%s17940_s1 + $0x3f8] ss:$24 sps:$4 sm:$0xff]  }
  0x4c   : > { %2071 = vmatprep.subr.bf16.mxu0 %v11998_v40  ;;  %v491_v35 = vld [vmem:[%s13782_s21 + $0x28] sm:$0xf]  ;;  %v12130_v37 = vld [vmem:[%s17940_s1 + $0x3fc] ss:$24 sps:$4 sm:$0xff]   ;;  %v13964_v40 = vcombine.low %v487_v10, %v488_v22  ;;  %v12133_v43 = vld [vmem:[%s17940_s1 + $0x42c] ss:$24 sps:$4 sm:$0xff]  }
  0x4d   : > { %2676 = vmatpush1.bf16.msra.mxu1 %v12120_v21  ;;  %v12056_v39 = vld [vmem:[%s17940_s1 + $0x420] ss:$24 sps:$4 sm:$0xff]   ;;  %v12063_v41 = vld [vmem:[%s17940_s1 + $0x454] ss:$24 sps:$4 sm:$0xff]   ;;  %v13969_v42 = vcombine.low %v490_v34, %v491_v35  ;;  %v12079_v10 = vld [vmem:[%s17940_s1 + $0x510] ss:$24 sps:$4 sm:$0xff]  }
  0x4e   : > { %2677 = vmatprep.subr.bf16.mxu1 %v12121_v25  ;;  %v12135_v44 = vld [vmem:[%s17940_s1 + $0x428] ss:$24 sps:$4 sm:$0xff]   ;;  %v496_v8 = vld [vmem:[%s13782_s21 + $0x3c] sm:$0xf]  ;;  %v12156_v13 = vld [vmem:[%s17940_s1 + $0x518] ss:$24 sps:$4 sm:$0xff]  }
  0x4f   : > { %2072 = vmatpush1.bf16.msra.mxu0 %v12000_v46  ;;  %v492_v46 = vld [vmem:[%s13782_s21 + $0x2c] sm:$0xf]  ;;  %v12153_v7 = vld [vmem:[%s17940_s1 + $0x4e8] ss:$24 sps:$4 sm:$0xff]   ;;  %v498_v22 = vld [vmem:[%s13782_s21 + $0x44] sm:$0xf] }
  0x50   : > { %2073 = vmatprep.subr.bf16.mxu0 %v12001_v48  ;;  %v493_v48 = vld [vmem:[%s13782_s21 + $0x30] sm:$0xf]  ;;  %v14028_v2 = vcombine.low %v491_v35, %v492_v46  ;;  %v497_v9 = vld [vmem:[%s13782_s21 + $0x40] sm:$0xf]  ;;  %s10164_s16 = scalar_lea.sflag [#allocation4], %s13764_s17  ;;  %s13572_s13 = smov [#allocation3]  }
  0x51   : > { %2678 = vmatpush1.bf16.msra.mxu1 %v12123_v26  ;;  %v12084_v14 = vld [vmem:[%s17940_s1 + $0x540] ss:$24 sps:$4 sm:$0xff]   ;;  %v14065_v19 = vcombine.low %v496_v8, %v497_v9  ;;  %v12087_v25 = vld [vmem:[%s17940_s1 + $0x570] ss:$24 sps:$4 sm:$0xff]   ;;  %v12094_v26 = vld [vmem:[%s17940_s1 + $0x5a4] ss:$24 sps:$4 sm:$0xff]  }
  0x52   : > { %2679 = vmatprep.subr.bf16.mxu1 %v12127_v31  ;;  %v12159_v21 = vld [vmem:[%s17940_s1 + $0x548] ss:$24 sps:$4 sm:$0xff]   ;;  %s13511_s24 = sshll.u32 %s13572_s13, 4  ;;  %s13512_s24 = int_to_ptr.vmem [resolvable:$false] %s13511_s24 }
  0x53   : > { %2074 = vmatpush1.bf16.msra.mxu0 %v12003_v49  ;;  %v12061_v49 = vld [vmem:[%s17940_s1 + $0x450] ss:$24 sps:$4 sm:$0xff]   ;;  %s13513_s23 = scalar_lea.vmem %s13512_s24, 256 }
  0x54   : > { %2075 = vmatprep.subr.bf16.mxu0 %v12004_v50  ;;  %v12068_v50 = vld [vmem:[%s17940_s1 + $0x484] ss:$24 sps:$4 sm:$0xff]   ;;  %v12097_v35 = vld [vmem:[%s17940_s1 + $0x5d0] ss:$24 sps:$4 sm:$0xff]  }
  0x55   : > { %2680 = vmatpush1.bf16.msra.mxu1 %v12129_v33 }
  0x56   : > { %2681 = vmatprep.subr.bf16.mxu1 %v12130_v37  ;;  %v500_v37 = vld [vmem:[%s13782_s21 + $0x4c] sm:$0xf] }
  0x57   : > { %2076 = vmatpush1.bf16.msra.mxu0 %v12006_v51  ;;  %v12139_v51 = vld [vmem:[%s17940_s1 + $0x45c] ss:$24 sps:$4 sm:$0xff]  }
  0x58   : > { %2077 = vmatprep.subr.bf16.mxu0 %v12007_v52  ;;  %v12141_v52 = vld [vmem:[%s17940_s1 + $0x458] ss:$24 sps:$4 sm:$0xff]  }
  0x59   : > { %2682 = vmatpush1.bf16.msra.mxu1 %v12132_v38  ;;  %v501_v38 = vld [vmem:[%s13782_s21 + $0x50] sm:$0xf] }
  0x5a   : > { %2683 = vmatprep.subr.bf16.mxu1 %v12133_v43  ;;  %v12173_v43 = vld [vmem:[%s17940_s1 + $0x5d8] ss:$24 sps:$4 sm:$0xff]  }
  0x5b   : > { %2078 = vmatpush1.bf16.msra.mxu0 %v12009_v53  ;;  %v12066_v53 = vld [vmem:[%s17940_s1 + $0x480] ss:$24 sps:$4 sm:$0xff]  }
  0x5c   : > { %2079 = vmatprep.subr.bf16.mxu0 %v12010_v54  ;;  %v13996_v54 = vcombine.low %v489_v23, %v490_v34  ;;  %v499_v23 = vld [vmem:[%s13782_s21 + $0x48] sm:$0xf]  ;;  %v12168_v34 = vld [vmem:[%s17940_s1 + $0x5ac] ss:$24 sps:$4 sm:$0xff]  }
  0x5d   : > { %2684 = vmatpush1.bf16.msra.mxu1 %v12135_v44  ;;  %v14097_v33 = vcombine.low %v498_v22, %v499_v23  ;;  %v14121_v44 = vcombine.low %v497_v9, %v498_v22  ;;  %v12150_v9 = vld [vmem:[%s17940_s1 + $0x724] ss:$24 sps:$4 sm:$0xff]  }
  0x5e   : > { %2685 = vmatprep.subr.bf16.mxu1 %v12139_v51  ;;  %v12221_v22 = vld [vmem:[%s17940_s1 + $0x66c] ss:$24 sps:$4 sm:$0xff]  }
  0x5f   : > { %2080 = vmatpush1.bf16.msra.mxu0 %v12012_v55  ;;  %v12071_v55 = vld [vmem:[%s17940_s1 + $0x4b4] ss:$24 sps:$4 sm:$0xff]  }
  0x60   : > { %2081 = vmatprep.subr.bf16.mxu0 %v12013_v56  ;;  %v14001_v56 = vcombine.low %v492_v46, %v493_v48  ;;  %v14123_v46 = vcombine.low %v500_v37, %v501_v38 }
  0x61   : > { %2686 = vmatpush1.bf16.msra.mxu1 %v12141_v52  ;;  %v504_v52 = vld [vmem:[%s13782_s21 + $0x5c] sm:$0xf] }
  0x63   : > { %2082 = vmatpush1.bf16.msra.mxu0 %v12015_v57  ;;  %v12142_v57 = vld [vmem:[%s17940_s1 + $0x48c] ss:$24 sps:$4 sm:$0xff]  }
  0x64   : > { %2083 = vmatprep.subr.bf16.mxu0 %v12016_v58  ;;  %v12069_v58 = vld [vmem:[%s17940_s1 + $0x4b0] ss:$24 sps:$4 sm:$0xff]   ;;  %2687 = vmatprep.subr.bf16.mxu1 %v12142_v57 }
  0x67   : > { %2084 = vmatpush1.bf16.msra.mxu0 %v12018_v59  ;;  %v12144_v59 = vld [vmem:[%s17940_s1 + $0x488] ss:$24 sps:$4 sm:$0xff]  }
  0x68   : > { %2085 = vmatprep.subr.bf16.mxu0 %v12019_v60  ;;  %v494_v60 = vld [vmem:[%s13782_s21 + $0x34] sm:$0xf]  ;;  %2688 = vmatpush1.bf16.msra.mxu1 %v12144_v59  ;;  %v12100_v59 = vld [vmem:[%s17940_s1 + $0x600] ss:$24 sps:$4 sm:$0xff]  }
  0x6b   : > { %2086 = vmatpush1.bf16.msra.mxu0 %v12021_v61  ;;  %v495_v61 = vld [vmem:[%s13782_s21 + $0x38] sm:$0xf] }
  0x6c   : > { %2087 = vmatprep.subr.bf16.mxu0 %v12022_v62  ;;  %v12076_v62 = vld [vmem:[%s17940_s1 + $0x4e4] ss:$24 sps:$4 sm:$0xff]   ;;  %v14092_v31 = vcombine.low %v495_v61, %v496_v8  ;;  %v12136_v8 = vld [vmem:[%s17940_s1 + $0x6f0] ss:$24 sps:$4 sm:$0xff]  }
  0x6f   : > { %2088 = vmatpush1.bf16.msra.mxu0 %v12024_v63  ;;  %v12145_v63 = vld [vmem:[%s17940_s1 + $0x4bc] ss:$24 sps:$4 sm:$0xff]  }
  0x70   : > { %2089 = vmatprep.subr.bf16.mxu0 %v12025_v0  ;;  %v12147_v0 = vld [vmem:[%s17940_s1 + $0x4b8] ss:$24 sps:$4 sm:$0xff]   ;;  %2689 = vmatprep.subr.bf16.mxu1 %v12145_v63 }
  0x71   : > { %2690 = vmatpush1.bf16.msra.mxu1 %v12147_v0  ;;  %v12106_v63 = vld [vmem:[%s17940_s1 + $0x660] ss:$24 sps:$4 sm:$0xff]   ;;  %v12114_v0 = vld [vmem:[%s17940_s1 + $0x694] ss:$24 sps:$4 sm:$0xff]  }
  0x73   : > { %2090 = vmatpush1.bf16.msra.mxu0 %v12027_v1  ;;  %v12074_v1 = vld [vmem:[%s17940_s1 + $0x4e0] ss:$24 sps:$4 sm:$0xff]  }
  0x74   : > { %2212 = vmatprep.subr.bf16.mxu0 %v12039_v3  ;;  %v12081_v3 = vld [vmem:[%s17940_s1 + $0x514] ss:$24 sps:$4 sm:$0xff]  }
  0x76   : > { %2092 = vmatmul.mubr.bf16.vlgmr.msra.gmra.mrb[0].mxu0 %v13867_v5 }
  0x77   : > { %2213 = vmatpush1.bf16.msra.mxu0 %v12037_v4  ;;  %2101 = vmatprep.mubr.bf16.mxu0 %v13802_v47  ;;  %v14033_v4 = vcombine.low %v494_v60, %v495_v61  ;;  %v12103_v61 = vld [vmem:[%s17940_s1 + $0x630] ss:$24 sps:$4 sm:$0xff]  }
  0x78   : > { %2214 = vmatprep.subr.bf16.mxu0 %v12042_v6  ;;  %v12151_v6 = vld [vmem:[%s17940_s1 + $0x4ec] ss:$24 sps:$4 sm:$0xff]  }
  0x79   : > { %2691 = vmatprep.subr.bf16.mxu1 %v12151_v6  ;;  %v12124_v6 = vld [vmem:[%s17940_s1 + $0x6c0] ss:$24 sps:$4 sm:$0xff]  }
  0x7a   : > { %2692 = vmatpush1.bf16.msra.mxu1 %v12153_v7  ;;  %v12138_v7 = vld [vmem:[%s17940_s1 + $0x6f4] ss:$24 sps:$4 sm:$0xff]  }
  0x7b   : > { %2215 = vmatpush1.bf16.msra.mxu0 %v12040_v11  ;;  %v12086_v11 = vld [vmem:[%s17940_s1 + $0x544] ss:$24 sps:$4 sm:$0xff]  }
  0x7c   : > { %2216 = vmatprep.subr.bf16.mxu0 %v12045_v12  ;;  %v12154_v12 = vld [vmem:[%s17940_s1 + $0x51c] ss:$24 sps:$4 sm:$0xff]  }
  0x7d   : > { %2693 = vmatprep.subr.bf16.mxu1 %v12154_v12  ;;  %v12160_v12 = vld [vmem:[%s17940_s1 + $0x750] ss:$24 sps:$4 sm:$0xff]  }
  0x7e   : > { %2102 = vmatmul.mubr.bf16.gmra.mrb[4].mxu0 %v13899_v16  ;;  %2694 = vmatpush1.bf16.msra.mxu1 %v12156_v13  ;;  %v12176_v13 = vld [vmem:[%s17940_s1 + $0xc] ss:$24 sps:$4 sm:$0xff]  }
  0x7f   : > { %2217 = vmatpush1.bf16.msra.mxu0 %v12043_v15  ;;  %2111 = vmatprep.mubr.bf16.mxu0 %v13904_v18  ;;  %v14060_v15 = vcombine.low %v493_v48, %v494_v60  ;;  %v502_v48 = vld [vmem:[%s13782_s21 + $0x54] sm:$0xf] }
  0x80   : > { %2218 = vmatprep.subr.bf16.mxu0 %v12048_v17  ;;  %v12089_v17 = vld [vmem:[%s17940_s1 + $0x574] ss:$24 sps:$4 sm:$0xff]  }
  0x81   : > { %v12105_v60 = vld [vmem:[%s17940_s1 + $0x634] ss:$24 sps:$4 sm:$0xff]  }
  0x83   : > { %2219 = vmatpush1.bf16.msra.mxu0 %v12046_v20  ;;  %v12157_v20 = vld [vmem:[%s17940_s1 + $0x54c] ss:$24 sps:$4 sm:$0xff]  }
  0x84   : > { %2220 = vmatprep.subr.bf16.mxu0 %v12051_v24  ;;  %2695 = vmatprep.subr.bf16.mxu1 %v12157_v20  ;;  %v12163_v24 = vld [vmem:[%s17940_s1 + $0x57c] ss:$24 sps:$4 sm:$0xff]   ;;  %v12213_v20 = vld [vmem:[%s17940_s1 + $0x638] ss:$24 sps:$4 sm:$0xff]  }
  0x85   : > { %2696 = vmatpush1.bf16.msra.mxu1 %v12159_v21  ;;  %v12215_v21 = vld [vmem:[%s17940_s1 + $0x63c] ss:$24 sps:$4 sm:$0xff]  }
  0x86   : > { %2112 = vmatmul.mubr.bf16.gmra.mrb[8].mxu0 %v13932_v28  ;;  %2697 = vmatprep.subr.bf16.mxu1 %v12163_v24  ;;  %v12222_v24 = vld [vmem:[%s17940_s1 + $0x698] ss:$24 sps:$4 sm:$0xff]  }
  0x87   : > { %2121 = vmatprep.mubr.bf16.mxu0 %v13937_v30  ;;  %2221 = vmatpush1.bf16.msra.mxu0 %v12049_v27  ;;  %v12165_v27 = vld [vmem:[%s17940_s1 + $0x578] ss:$24 sps:$4 sm:$0xff]  }
  0x88   : > { %2222 = vmatprep.subr.bf16.mxu0 %v12054_v29  ;;  %v12092_v29 = vld [vmem:[%s17940_s1 + $0x5a0] ss:$24 sps:$4 sm:$0xff]  }
  0x89   : > { %2698 = vmatpush1.bf16.msra.mxu1 %v12165_v27  ;;  %v14256_v27 = vld [vmem:[%s13782_s21 + $0x68] sm:$0xf] }
  0x8a   : > { %2699 = vmatprep.subr.bf16.mxu1 %v12168_v34 }
  0x8b   : > { %2223 = vmatpush1.bf16.msra.mxu0 %v12052_v32  ;;  %v12099_v32 = vld [vmem:[%s17940_s1 + $0x5d4] ss:$24 sps:$4 sm:$0xff]  }
  0x8c   : > { %2224 = vmatprep.subr.bf16.mxu0 %v12058_v36  ;;  %v12170_v36 = vld [vmem:[%s17940_s1 + $0x5a8] ss:$24 sps:$4 sm:$0xff]  }
  0x8d   : > { %2700 = vmatpush1.bf16.msra.mxu1 %v12170_v36  ;;  %v12236_v36 = vld [vmem:[%s17940_s1 + $0x6fc] ss:$24 sps:$4 sm:$0xff]  }
  0x8e   : > { %2122 = vmatmul.mubr.bf16.gmra.mrb[12].mxu0 %v13964_v40 }
  0x8f   : > { %2131 = vmatprep.mubr.bf16.mxu0 %v13969_v42  ;;  %2225 = vmatpush1.bf16.msra.mxu0 %v12056_v39  ;;  %v12102_v39 = vld [vmem:[%s17940_s1 + $0x604] ss:$24 sps:$4 sm:$0xff]  }
  0x90   : > { %2226 = vmatprep.subr.bf16.mxu0 %v12063_v41  ;;  %v12171_v41 = vld [vmem:[%s17940_s1 + $0x5dc] ss:$24 sps:$4 sm:$0xff]  }
  0x91   : > { %2701 = vmatprep.subr.bf16.mxu1 %v12171_v41  ;;  %v12244_v41 = vld [vmem:[%s17940_s1 + $0x758] ss:$24 sps:$4 sm:$0xff]  }
  0x92   : > { %2702 = vmatpush1.bf16.msra.mxu1 %v12173_v43  ;;  %v12246_v43 = vld [vmem:[%s17940_s1 + $0x75c] ss:$24 sps:$4 sm:$0xff]  }
  0x93   : > { %2227 = vmatpush1.bf16.msra.mxu0 %v12061_v49  ;;  %v503_v49 = vld [vmem:[%s13782_s21 + $0x58] sm:$0xf] }
  0x94   : > { %2228 = vmatprep.subr.bf16.mxu0 %v12068_v50  ;;  %v14131_v50 = vcombine.low %v499_v23, %v500_v37  ;;  %v14133_v51 = vcombine.low %v502_v48, %v503_v49  ;;  %v12219_v23 = vld [vmem:[%s17940_s1 + $0x668] ss:$24 sps:$4 sm:$0xff]   ;;  %v12240_v37 = vld [vmem:[%s17940_s1 + $0x72c] ss:$24 sps:$4 sm:$0xff]  }
  0x95   : > { %2704 = vmatmul.mubr.bf16.vlgmr.msra.gmra.mrb[0].mxu1 %v13899_v16 }
  0x96   : > { %2132 = vmatmul.mubr.bf16.gmra.mrb[16].mxu0 %v13996_v54  ;;  %2713 = vmatprep.mubr.bf16.mxu1 %v13904_v18 }
  0x97   : > { %2141 = vmatprep.mubr.bf16.mxu0 %v14001_v56  ;;  %2229 = vmatpush1.bf16.msra.mxu0 %v12066_v53  ;;  %v14138_v53 = vld [vmem:[%s13782_s21 + $0x60] sm:$0xf] }
  0x98   : > { %2230 = vmatprep.subr.bf16.mxu0 %v12071_v55  ;;  %v14143_v55 = vcombine.low %v501_v38, %v502_v48  ;;  %v14146_v57 = vcombine.low %v504_v52, %v14138_v53  ;;  %v12238_v38 = vld [vmem:[%s17940_s1 + $0x728] ss:$24 sps:$4 sm:$0xff]   ;;  %v17949_v48 = vmov 0  }
  0x9b   : > { %2231 = vmatpush1.bf16.msra.mxu0 %v12069_v58  ;;  %v14152_v58 = vcombine.low %v503_v49, %v504_v52  ;;  %v12174_v49 = vld [vmem:[%s17940_s1 + $0x8] ss:$24 sps:$4 sm:$0xff]   ;;  %v12179_v52 = vld [vmem:[%s17940_s1 + $0x3c] ss:$24 sps:$4 sm:$0xff]  }
  0x9c   : > { %2232 = vmatprep.subr.bf16.mxu0 %v12076_v62  ;;  %v12108_v62 = vld [vmem:[%s17940_s1 + $0x664] ss:$24 sps:$4 sm:$0xff]  }
  0x9d   : > { %2714 = vmatmul.mubr.bf16.gmra.mrb[4].mxu1 %v13932_v28 }
  0x9e   : > { %2142 = vmatmul.mubr.bf16.gmra.mrb[20].mxu0 %v14028_v2  ;;  %2723 = vmatprep.mubr.bf16.mxu1 %v13937_v30 }
  0x9f   : > { %2151 = vmatprep.mubr.bf16.mxu0 %v14033_v4  ;;  %2233 = vmatpush1.bf16.msra.mxu0 %v12074_v1  ;;  %v12112_v1 = vld [vmem:[%s17940_s1 + $0x690] ss:$24 sps:$4 sm:$0xff]  }
  0xa0   : > { %2234 = vmatprep.subr.bf16.mxu0 %v12081_v3  ;;  %v12126_v3 = vld [vmem:[%s17940_s1 + $0x6c4] ss:$24 sps:$4 sm:$0xff]  }
  0xa3   : > { %2235 = vmatpush1.bf16.msra.mxu0 %v12079_v10  ;;  %v12148_v10 = vld [vmem:[%s17940_s1 + $0x720] ss:$24 sps:$4 sm:$0xff]  }
  0xa4   : > { %2236 = vmatprep.subr.bf16.mxu0 %v12086_v11  ;;  %v12162_v11 = vld [vmem:[%s17940_s1 + $0x754] ss:$24 sps:$4 sm:$0xff]  }
  0xa5   : > { %2724 = vmatmul.mubr.bf16.gmra.mrb[8].mxu1 %v13964_v40 }
  0xa6   : > { %2152 = vmatmul.mubr.bf16.gmra.mrb[24].mxu0 %v14060_v15  ;;  %2733 = vmatprep.mubr.bf16.mxu1 %v13969_v42 }
  0xa7   : > { %2161 = vmatprep.mubr.bf16.mxu0 %v14065_v19  ;;  %2237 = vmatpush1.bf16.msra.mxu0 %v12084_v14  ;;  %v12209_v14 = vld [vmem:[%s17940_s1 + $0x60c] ss:$24 sps:$4 sm:$0xff]  }
  0xa8   : > { %2238 = vmatprep.subr.bf16.mxu0 %v12089_v17  ;;  %v12207_v17 = vld [vmem:[%s17940_s1 + $0x608] ss:$24 sps:$4 sm:$0xff]   ;;  %2824 = vmatprep.subr.bf16.mxu1 %v12209_v14  ;;  %v12206_v14 = vld [vmem:[%s17940_s1 + $0x1ec] ss:$24 sps:$4 sm:$0xff]  }
  0xa9   : > { %2825 = vmatpush1.bf16.msra.mxu1 %v12207_v17  ;;  %v12204_v17 = vld [vmem:[%s17940_s1 + $0x1e8] ss:$24 sps:$4 sm:$0xff]  }
  0xaa   : > { %2826 = vmatprep.subr.bf16.mxu1 %v12215_v21  ;;  %v12210_v21 = vld [vmem:[%s17940_s1 + $0x218] ss:$24 sps:$4 sm:$0xff]  }
  0xab   : > { %2239 = vmatpush1.bf16.msra.mxu0 %v12087_v25  ;;  %v12224_v25 = vld [vmem:[%s17940_s1 + $0x69c] ss:$24 sps:$4 sm:$0xff]  }
  0xac   : > { %2240 = vmatprep.subr.bf16.mxu0 %v12094_v26  ;;  %v506_v26 = vld [vmem:[%s13782_s21 + $0x64] sm:$0xf] }
  0xad   : > { %2734 = vmatmul.mubr.bf16.gmra.mrb[12].mxu1 %v13996_v54  ;;  %v14267_v34 = vcombine.low %v506_v26, %v14256_v27 }
  0xae   : > { %2162 = vmatmul.mubr.bf16.gmra.mrb[28].mxu0 %v14092_v31  ;;  %2743 = vmatprep.mubr.bf16.mxu1 %v14001_v56 }
  0xaf   : > { %2171 = vmatprep.mubr.bf16.mxu0 %v14097_v33  ;;  %2241 = vmatpush1.bf16.msra.mxu0 %v12092_v29  ;;  %v12230_v29 = vld [vmem:[%s17940_s1 + $0x6cc] ss:$24 sps:$4 sm:$0xff]   ;;  %17992 = vst [vmem:[#allocation6_spill] sm:$0xff] %v14267_v34 }
  0xb0   : > { %2242 = vmatprep.subr.bf16.mxu0 %v12099_v32  ;;  %2827 = vmatpush1.bf16.msra.mxu1 %v12213_v20  ;;  %v12228_v32 = vld [vmem:[%s17940_s1 + $0x6c8] ss:$24 sps:$4 sm:$0xff]   ;;  %v12212_v20 = vld [vmem:[%s17940_s1 + $0x21c] ss:$24 sps:$4 sm:$0xff]  }
  0xb1   : > { %2828 = vmatprep.subr.bf16.mxu1 %v12221_v22  ;;  %v12218_v22 = vld [vmem:[%s17940_s1 + $0x24c] ss:$24 sps:$4 sm:$0xff]  }
  0xb3   : > { %2243 = vmatpush1.bf16.msra.mxu0 %v12097_v35  ;;  %v12234_v35 = vld [vmem:[%s17940_s1 + $0x6f8] ss:$24 sps:$4 sm:$0xff]  }
  0xb4   : > { %2365 = vmatprep.subr.bf16.mxu0 %v12102_v39  ;;  %2829 = vmatpush1.bf16.msra.mxu1 %v12219_v23  ;;  %v14285_v39 = vcombine.low %v14138_v53, %v506_v26  ;;  %v12177_v53 = vld [vmem:[%s17940_s1 + $0x38] ss:$24 sps:$4 sm:$0xff]   ;;  %v12216_v23 = vld [vmem:[%s17940_s1 + $0x248] ss:$24 sps:$4 sm:$0xff]   ;;  %v12233_v26 = vld [vmem:[%s17940_s1 + $0x2ac] ss:$24 sps:$4 sm:$0xff]  }
  0xb5   : > { %2744 = vmatmul.mubr.bf16.gmra.mrb[16].mxu1 %v14028_v2  ;;  %2830 = vmatprep.subr.bf16.mxu1 %v12224_v25  ;;  %v12225_v25 = vld [vmem:[%s17940_s1 + $0x278] ss:$24 sps:$4 sm:$0xff]  }
  0xb6   : > { %2172 = vmatmul.mubr.bf16.gmra.mrb[32].mxu0 %v14121_v44  ;;  %2753 = vmatprep.mubr.bf16.mxu1 %v14033_v4  ;;  %17993 = vst [vmem:[#allocation7_spill] sm:$0xff] %v14285_v39 }
  0xb7   : > { %2181 = vmatprep.mubr.bf16.mxu0 %v14123_v46 }
  0xb8   : > { %2831 = vmatpush1.bf16.msra.mxu1 %v12222_v24  ;;  %v12227_v24 = vld [vmem:[%s17940_s1 + $0x27c] ss:$24 sps:$4 sm:$0xff]  }
  0xb9   : > { %2832 = vmatprep.subr.bf16.mxu1 %v12230_v29  ;;  %v12231_v29 = vld [vmem:[%s17940_s1 + $0x2a8] ss:$24 sps:$4 sm:$0xff]  }
  0xbc   : > { %2833 = vmatpush1.bf16.msra.mxu1 %v12228_v32  ;;  %v508_v32 = vld [vmem:[%s13782_s21 + $0x6c] sm:$0xf]  ;;  %s10177_s21 = sshll.u32 %s479_s27, 4  ;;  %s17897_s21 = int_to_ptr.vmem [resolvable:$true] %s10177_s21 }
  0xbd   : > { %2754 = vmatmul.mubr.bf16.gmra.mrb[20].mxu1 %v14060_v15  ;;  %2834 = vmatprep.subr.bf16.mxu1 %v12236_v36  ;;  %v14433_v36 = vcombine.low %v14256_v27, %v508_v32  ;;  %v12247_v27 = vld [vmem:[%s17940_s1 + $0x10] ss:$24 sps:$4 sm:$0xff]   ;;  %s13507_s22 = scalar_lea.vmem %s17897_s21, 128  ;;  %p13514_p2 = scmp.lt.s32.totalorder %s17897_s21, %s13512_s24 }
  0xbe   : > { %2182 = vmatmul.mubr.bf16.gmra.mrb[36].mxu0 %v14131_v50  ;;  %2763 = vmatprep.mubr.bf16.mxu1 %v14065_v19  ;;  %p13508_p13 = scmp.ne.s32.totalorder %s17897_s21, %s13507_s22  ;;  %p13515_p3 = scmp.lt.s32.totalorder %s13513_s23, %s13507_s22 }
  0xbf   : > { %2191 = vmatprep.mubr.bf16.mxu0 %v14133_v51  ;;  %17994 = vst [vmem:[#allocation8_spill] sm:$0xff] %v14433_v36 }
  0xc0   : > { %2835 = vmatpush1.bf16.msra.mxu1 %v12234_v35  ;;  %v12243_v35 = vld [vmem:[%s17940_s1 + $0x2dc] ss:$24 sps:$4 sm:$0xff]   ;;  %p13509_p0 = pnand %p13508_p13, %p13661_p6  ;;  %p13516_p4 = por %p13515_p3, %p13514_p2 }
  0xc1   : > { %2836 = vmatprep.subr.bf16.mxu1 %v12240_v37  ;;  %v12241_v37 = vld [vmem:[%s17940_s1 + $0x2d8] ss:$24 sps:$4 sm:$0xff]  }
  0xc2   : > { %p13510_p1 = pneg %p13509_p0 }
  0xc4   : > { %2837 = vmatpush1.bf16.msra.mxu1 %v12238_v38  ;;  %v12249_v38 = vld [vmem:[%s17940_s1 + $0x14] ss:$24 sps:$4 sm:$0xff]   ;;  %p13517_p5 = pnand %p13516_p4, %p13510_p1 }
  0xc5   : > { %2764 = vmatmul.mubr.bf16.gmra.mrb[24].mxu1 %v14092_v31  ;;  %2838 = vmatprep.subr.bf16.mxu1 %v12246_v43  ;;  %v12250_v43 = vld [vmem:[%s17940_s1 + $0x40] ss:$24 sps:$4 sm:$0xff]  }
  0xc6   : > { %2192 = vmatmul.mubr.bf16.gmra.mrb[40].mxu0 %v14143_v55  ;;  %2773 = vmatprep.mubr.bf16.mxu1 %v14097_v33 }
  0xc7   : > { %2201 = vmatprep.mubr.bf16.mxu0 %v14146_v57 }
  0xc8   : > { %2839 = vmatpush1.bf16.msra.mxu1 %v12244_v41  ;;  %v12252_v41 = vld [vmem:[%s17940_s1 + $0x44] ss:$24 sps:$4 sm:$0xff]  }
  0xcd   : > { %2774 = vmatmul.mubr.bf16.gmra.mrb[28].mxu1 %v14121_v44 }
  0xce   : > { %2202 = vmatmul.mubr.bf16.gmra.mrb[44].mxu0 %v14152_v58  ;;  %2783 = vmatprep.mubr.bf16.mxu1 %v14123_v46 }
  0xcf   : > { %2244 = vmatprep.mubr.bf16.mxu0 %v13802_v47 }
  0xd5   : > { %2784 = vmatmul.mubr.bf16.gmra.mrb[32].mxu1 %v14131_v50 }
  0xd6   : > { %2245 = vmatmul.mubr.bf16.vlgmr.msra.gmra.mrb[0].mxu0 %v13899_v16  ;;  %2793 = vmatprep.mubr.bf16.mxu1 %v14133_v51 }
  0xd7   : > { %2366 = vmatpush1.bf16.msra.mxu0 %v12100_v59  ;;  %2254 = vmatprep.mubr.bf16.mxu0 %v13904_v18  ;;  %v12182_v59 = vld [vmem:[%s17940_s1 + $0x6c] ss:$24 sps:$4 sm:$0xff]  }
  0xd8   : > { %2367 = vmatprep.subr.bf16.mxu0 %v12105_v60  ;;  %v12180_v60 = vld [vmem:[%s17940_s1 + $0x68] ss:$24 sps:$4 sm:$0xff]  }
  0xdb   : > { %2368 = vmatpush1.bf16.msra.mxu0 %v12103_v61  ;;  %v12185_v61 = vld [vmem:[%s17940_s1 + $0x9c] ss:$24 sps:$4 sm:$0xff]  }
  0xdc   : > { %2369 = vmatprep.subr.bf16.mxu0 %v12108_v62  ;;  %v12183_v62 = vld [vmem:[%s17940_s1 + $0x98] ss:$24 sps:$4 sm:$0xff]  }
  0xdd   : > { %2794 = vmatmul.mubr.bf16.gmra.mrb[36].mxu1 %v14143_v55 }
  0xde   : > { %2255 = vmatmul.mubr.bf16.gmra.mrb[4].mxu0 %v13932_v28  ;;  %2803 = vmatprep.mubr.bf16.mxu1 %v14146_v57 }
  0xdf   : > { %2264 = vmatprep.mubr.bf16.mxu0 %v13937_v30  ;;  %2370 = vmatpush1.bf16.msra.mxu0 %v12106_v63  ;;  %v12188_v63 = vld [vmem:[%s17940_s1 + $0xcc] ss:$24 sps:$4 sm:$0xff]  }
  0xe0   : > { %2371 = vmatprep.subr.bf16.mxu0 %v12114_v0  ;;  %v12186_v0 = vld [vmem:[%s17940_s1 + $0xc8] ss:$24 sps:$4 sm:$0xff]  }
  0xe3   : > { %2372 = vmatpush1.bf16.msra.mxu0 %v12112_v1  ;;  %v12191_v1 = vld [vmem:[%s17940_s1 + $0xfc] ss:$24 sps:$4 sm:$0xff]  }
  0xe4   : > { %2373 = vmatprep.subr.bf16.mxu0 %v12126_v3  ;;  %v12189_v3 = vld [vmem:[%s17940_s1 + $0xf8] ss:$24 sps:$4 sm:$0xff]  }
  0xe5   : > { %2804 = vmatmul.mubr.bf16.gmra.mrb[40].mxu1 %v14152_v58 }
  0xe6   : > { %2265 = vmatmul.mubr.bf16.gmra.mrb[8].mxu0 %v13964_v40  ;;  %2813 = vmatprep.mubr.bf16.mxu1 %v14267_v34 }
  0xe7   : > { %2274 = vmatprep.mubr.bf16.mxu0 %v13969_v42  ;;  %2374 = vmatpush1.bf16.msra.mxu0 %v12124_v6  ;;  %v12194_v6 = vld [vmem:[%s17940_s1 + $0x12c] ss:$24 sps:$4 sm:$0xff]  }
  0xe8   : > { %2375 = vmatprep.subr.bf16.mxu0 %v12138_v7  ;;  %v12192_v7 = vld [vmem:[%s17940_s1 + $0x128] ss:$24 sps:$4 sm:$0xff]  }
  0xeb   : > { %2376 = vmatpush1.bf16.msra.mxu0 %v12136_v8  ;;  %v12197_v8 = vld [vmem:[%s17940_s1 + $0x15c] ss:$24 sps:$4 sm:$0xff]  }
  0xec   : > { %2377 = vmatprep.subr.bf16.mxu0 %v12150_v9  ;;  %v12195_v9 = vld [vmem:[%s17940_s1 + $0x158] ss:$24 sps:$4 sm:$0xff]  }
  0xed   : > { %2814 = vmatmul.mubr.bf16.gmra.mrb[44].mxu1 %v14285_v39 }
  0xee   : > { %2275 = vmatmul.mubr.bf16.gmra.mrb[12].mxu0 %v13996_v54  ;;  %2856 = vmatprep.mubr.bf16.mxu1 %v17949_v48 }
  0xef   : > { %2284 = vmatprep.mubr.bf16.mxu0 %v14001_v56  ;;  %2378 = vmatpush1.bf16.msra.mxu0 %v12148_v10  ;;  %v12200_v10 = vld [vmem:[%s17940_s1 + $0x18c] ss:$24 sps:$4 sm:$0xff]  }
  0xf0   : > { %2379 = vmatprep.subr.bf16.mxu0 %v12162_v11  ;;  %v12198_v11 = vld [vmem:[%s17940_s1 + $0x188] ss:$24 sps:$4 sm:$0xff]  }
  0xf3   : > { %2380 = vmatpush1.bf16.msra.mxu0 %v12160_v12  ;;  %v12203_v12 = vld [vmem:[%s17940_s1 + $0x1bc] ss:$24 sps:$4 sm:$0xff]  }
  0xf4   : > { %2518 = vmatprep.subr.bf16.mxu0 %v12176_v13  ;;  %v12201_v13 = vld [vmem:[%s17940_s1 + $0x1b8] ss:$24 sps:$4 sm:$0xff]  }
  0xf5   : > { %2857 = vmatmul.mubr.bf16.vlgmr.msra.gmra.mrb[0].mxu1 %v13932_v28 }
  0xf6   : > { %2285 = vmatmul.mubr.bf16.gmra.mrb[16].mxu0 %v14028_v2  ;;  %2866 = vmatprep.mubr.bf16.mxu1 %v17949_v48 }
  0xf7   : > { %2294 = vmatprep.mubr.bf16.mxu0 %v14033_v4 }
  0xfd   : > { %2867 = vmatmul.mubr.bf16.gmra.mrb[4].mxu1 %v13964_v40 }
  0xfe   : > { %2295 = vmatmul.mubr.bf16.gmra.mrb[20].mxu0 %v14060_v15  ;;  %2876 = vmatprep.mubr.bf16.mxu1 %v17949_v48 }
  0xff   : > { %2304 = vmatprep.mubr.bf16.mxu0 %v14065_v19 }
 0x105   : > { %2877 = vmatmul.mubr.bf16.gmra.mrb[8].mxu1 %v13996_v54 }
 0x106   : > { %2305 = vmatmul.mubr.bf16.gmra.mrb[24].mxu0 %v14092_v31  ;;  %2886 = vmatprep.mubr.bf16.mxu1 %v17949_v48 }
 0x107   : > { %2314 = vmatprep.mubr.bf16.mxu0 %v14097_v33 }
 0x10d   : > { %2887 = vmatmul.mubr.bf16.gmra.mrb[12].mxu1 %v14028_v2 }
 0x10e   : > { %2315 = vmatmul.mubr.bf16.gmra.mrb[28].mxu0 %v14121_v44  ;;  %2896 = vmatprep.mubr.bf16.mxu1 %v17949_v48 }
 0x10f   : > { %2324 = vmatprep.mubr.bf16.mxu0 %v14123_v46 }
 0x115   : > { %2897 = vmatmul.mubr.bf16.gmra.mrb[16].mxu1 %v14060_v15 }
 0x116   : > { %2325 = vmatmul.mubr.bf16.gmra.mrb[32].mxu0 %v14131_v50  ;;  %2906 = vmatprep.mubr.bf16.mxu1 %v17949_v48 }
 0x117   : > { %2334 = vmatprep.mubr.bf16.mxu0 %v14133_v51 }
 0x11d   : > { %2907 = vmatmul.mubr.bf16.gmra.mrb[20].mxu1 %v14092_v31 }
 0x11e   : > { %2335 = vmatmul.mubr.bf16.gmra.mrb[36].mxu0 %v14143_v55  ;;  %2916 = vmatprep.mubr.bf16.mxu1 %v17949_v48 }
 0x11f   : > { %2344 = vmatprep.mubr.bf16.mxu0 %v14146_v57 }
 0x125   : > { %2917 = vmatmul.mubr.bf16.gmra.mrb[24].mxu1 %v14121_v44 }
 0x126   : > { %2345 = vmatmul.mubr.bf16.gmra.mrb[40].mxu0 %v14152_v58  ;;  %2926 = vmatprep.mubr.bf16.mxu1 %v17949_v48 }
 0x127   : > { %2354 = vmatprep.mubr.bf16.mxu0 %v14267_v34 }
 0x12d   : > { %2927 = vmatmul.mubr.bf16.gmra.mrb[28].mxu1 %v14131_v50 }
 0x12e   : > { %2355 = vmatmul.mubr.bf16.gmra.mrb[44].mxu0 %v14285_v39  ;;  %2936 = vmatprep.mubr.bf16.mxu1 %v17949_v48 }
 0x12f   : > { %2397 = vmatprep.mubr.bf16.mxu0 %v17949_v48 }
 0x135   : > { %2937 = vmatmul.mubr.bf16.gmra.mrb[32].mxu1 %v14143_v55 }
 0x136   : > { %2398 = vmatmul.mubr.bf16.vlgmr.msra.gmra.mrb[0].mxu0 %v13932_v28  ;;  %2946 = vmatprep.mubr.bf16.mxu1 %v17949_v48 }
 0x137   : > { %2519 = vmatpush1.bf16.msra.mxu0 %v12174_v49  ;;  %2407 = vmatprep.mubr.bf16.mxu0 %v17949_v48  ;;  %v12255_v49 = vld [vmem:[%s17940_s1 + $0x74] ss:$24 sps:$4 sm:$0xff]  }
 0x138   : > { %2520 = vmatprep.subr.bf16.mxu0 %v12179_v52  ;;  %v12253_v52 = vld [vmem:[%s17940_s1 + $0x70] ss:$24 sps:$4 sm:$0xff]  }
 0x13b   : > { %2521 = vmatpush1.bf16.msra.mxu0 %v12177_v53  ;;  %v12258_v53 = vld [vmem:[%s17940_s1 + $0xa4] ss:$24 sps:$4 sm:$0xff]  }
 0x13c   : > { %2522 = vmatprep.subr.bf16.mxu0 %v12182_v59  ;;  %v12256_v59 = vld [vmem:[%s17940_s1 + $0xa0] ss:$24 sps:$4 sm:$0xff]  }
 0x13d   : > { %2947 = vmatmul.mubr.bf16.gmra.mrb[36].mxu1 %v14152_v58 }
 0x13e   : > { %2408 = vmatmul.mubr.bf16.gmra.mrb[4].mxu0 %v13964_v40  ;;  %2956 = vmatprep.mubr.bf16.mxu1 %v17949_v48 }
 0x13f   : > { %2523 = vmatpush1.bf16.msra.mxu0 %v12180_v60  ;;  %2417 = vmatprep.mubr.bf16.mxu0 %v17949_v48  ;;  %v12261_v60 = vld [vmem:[%s17940_s1 + $0xd4] ss:$24 sps:$4 sm:$0xff]  }
 0x140   : > { %2524 = vmatprep.subr.bf16.mxu0 %v12185_v61  ;;  %v12259_v61 = vld [vmem:[%s17940_s1 + $0xd0] ss:$24 sps:$4 sm:$0xff]  }
 0x143   : > { %2525 = vmatpush1.bf16.msra.mxu0 %v12183_v62  ;;  %v12264_v62 = vld [vmem:[%s17940_s1 + $0x104] ss:$24 sps:$4 sm:$0xff]  }
 0x144   : > { %2526 = vmatprep.subr.bf16.mxu0 %v12188_v63  ;;  %v12262_v63 = vld [vmem:[%s17940_s1 + $0x100] ss:$24 sps:$4 sm:$0xff]  }
 0x145   : > { %2957 = vmatmul.mubr.bf16.gmra.mrb[40].mxu1 %v14285_v39 }
 0x146   : > { %2418 = vmatmul.mubr.bf16.gmra.mrb[8].mxu0 %v13996_v54  ;;  %2966 = vmatprep.mubr.bf16.mxu1 %v17949_v48 }
 0x147   : > { %2427 = vmatprep.mubr.bf16.mxu0 %v17949_v48  ;;  %2527 = vmatpush1.bf16.msra.mxu0 %v12186_v0  ;;  %v12267_v0 = vld [vmem:[%s17940_s1 + $0x134] ss:$24 sps:$4 sm:$0xff]  }
 0x148   : > { %2528 = vmatprep.subr.bf16.mxu0 %v12191_v1  ;;  %v12265_v1 = vld [vmem:[%s17940_s1 + $0x130] ss:$24 sps:$4 sm:$0xff]  }
 0x14b   : > { %2529 = vmatpush1.bf16.msra.mxu0 %v12189_v3  ;;  %v12270_v3 = vld [vmem:[%s17940_s1 + $0x164] ss:$24 sps:$4 sm:$0xff]  }
 0x14c   : > { %2530 = vmatprep.subr.bf16.mxu0 %v12194_v6  ;;  %v12268_v6 = vld [vmem:[%s17940_s1 + $0x160] ss:$24 sps:$4 sm:$0xff]  }
 0x14d   : > { %2967 = vmatmul.mubr.bf16.gmra.mrb[44].mxu1 %v14433_v36 }
 0x14e   : > { %2428 = vmatmul.mubr.bf16.gmra.mrb[12].mxu0 %v14028_v2 }
 0x14f   : > { %2437 = vmatprep.mubr.bf16.mxu0 %v17949_v48  ;;  %2531 = vmatpush1.bf16.msra.mxu0 %v12192_v7  ;;  %v12273_v7 = vld [vmem:[%s17940_s1 + $0x194] ss:$24 sps:$4 sm:$0xff]  }
 0x150   : > { %2532 = vmatprep.subr.bf16.mxu0 %v12197_v8  ;;  %v12271_v8 = vld [vmem:[%s17940_s1 + $0x190] ss:$24 sps:$4 sm:$0xff]  }
 0x153   : > { %2533 = vmatpush1.bf16.msra.mxu0 %v12195_v9  ;;  %v12276_v9 = vld [vmem:[%s17940_s1 + $0x1c4] ss:$24 sps:$4 sm:$0xff]  }
 0x154   : > { %2534 = vmatprep.subr.bf16.mxu0 %v12200_v10  ;;  %v12274_v10 = vld [vmem:[%s17940_s1 + $0x1c0] ss:$24 sps:$4 sm:$0xff]  }
 0x156   : > { %2438 = vmatmul.mubr.bf16.gmra.mrb[16].mxu0 %v14060_v15 }
 0x157   : > { %2447 = vmatprep.mubr.bf16.mxu0 %v17949_v48  ;;  %2535 = vmatpush1.bf16.msra.mxu0 %v12198_v11  ;;  %v12279_v11 = vld [vmem:[%s17940_s1 + $0x1f4] ss:$24 sps:$4 sm:$0xff]  }
 0x158   : > { %2536 = vmatprep.subr.bf16.mxu0 %v12203_v12  ;;  %v12277_v12 = vld [vmem:[%s17940_s1 + $0x1f0] ss:$24 sps:$4 sm:$0xff]  }
 0x15b   : > { %2537 = vmatpush1.bf16.msra.mxu0 %v12201_v13  ;;  %v12282_v13 = vld [vmem:[%s17940_s1 + $0x224] ss:$24 sps:$4 sm:$0xff]  }
 0x15c   : > { %2538 = vmatprep.subr.bf16.mxu0 %v12206_v14  ;;  %v12280_v14 = vld [vmem:[%s17940_s1 + $0x220] ss:$24 sps:$4 sm:$0xff]  }
 0x15e   : > { %2448 = vmatmul.mubr.bf16.gmra.mrb[20].mxu0 %v14092_v31 }
 0x15f   : > { %2457 = vmatprep.mubr.bf16.mxu0 %v17949_v48  ;;  %2539 = vmatpush1.bf16.msra.mxu0 %v12204_v17  ;;  %v12285_v17 = vld [vmem:[%s17940_s1 + $0x254] ss:$24 sps:$4 sm:$0xff]  }
 0x160   : > { %2540 = vmatprep.subr.bf16.mxu0 %v12212_v20  ;;  %v12283_v20 = vld [vmem:[%s17940_s1 + $0x250] ss:$24 sps:$4 sm:$0xff]  }
 0x163   : > { %2541 = vmatpush1.bf16.msra.mxu0 %v12210_v21  ;;  %v12288_v21 = vld [vmem:[%s17940_s1 + $0x284] ss:$24 sps:$4 sm:$0xff]  }
 0x164   : > { %2542 = vmatprep.subr.bf16.mxu0 %v12218_v22  ;;  %v12286_v22 = vld [vmem:[%s17940_s1 + $0x280] ss:$24 sps:$4 sm:$0xff]  }
 0x166   : > { %2458 = vmatmul.mubr.bf16.gmra.mrb[24].mxu0 %v14121_v44 }
 0x167   : > { %2467 = vmatprep.mubr.bf16.mxu0 %v17949_v48  ;;  %2543 = vmatpush1.bf16.msra.mxu0 %v12216_v23  ;;  %v12291_v23 = vld [vmem:[%s17940_s1 + $0x2b4] ss:$24 sps:$4 sm:$0xff]  }
 0x168   : > { %2544 = vmatprep.subr.bf16.mxu0 %v12227_v24  ;;  %v12289_v24 = vld [vmem:[%s17940_s1 + $0x2b0] ss:$24 sps:$4 sm:$0xff]  }
 0x16b   : > { %2545 = vmatpush1.bf16.msra.mxu0 %v12225_v25  ;;  %v12294_v25 = vld [vmem:[%s17940_s1 + $0x2e4] ss:$24 sps:$4 sm:$0xff]  }
 0x16c   : > { %2546 = vmatprep.subr.bf16.mxu0 %v12233_v26  ;;  %v12292_v26 = vld [vmem:[%s17940_s1 + $0x2e0] ss:$24 sps:$4 sm:$0xff]  }
 0x16e   : > { %2468 = vmatmul.mubr.bf16.gmra.mrb[28].mxu0 %v14131_v50 }
 0x16f   : > { %2477 = vmatprep.mubr.bf16.mxu0 %v17949_v48  ;;  %2547 = vmatpush1.bf16.msra.mxu0 %v12231_v29  ;;  %v12297_v29 = vld [vmem:[%s17940_s1 + $0x314] ss:$24 sps:$4 sm:$0xff]  }
 0x170   : > { %2548 = vmatprep.subr.bf16.mxu0 %v12243_v35 }
 0x173   : > { %2549 = vmatpush1.bf16.msra.mxu0 %v12241_v37 }
 0x174   : > { %2977 = vmatprep.subr.bf16.mxu0 %v12249_v38 }
 0x176   : > { %2478 = vmatmul.mubr.bf16.gmra.mrb[32].mxu0 %v14143_v55 }
 0x177   : > { %2487 = vmatprep.mubr.bf16.mxu0 %v17949_v48 }
 0x17e   : > { %2488 = vmatmul.mubr.bf16.gmra.mrb[36].mxu0 %v14152_v58 }
 0x17f   : > { %2497 = vmatprep.mubr.bf16.mxu0 %v17949_v48 }
 0x186   : > { %2498 = vmatmul.mubr.bf16.gmra.mrb[40].mxu0 %v14285_v39 }
 0x187   : > { %2507 = vmatprep.mubr.bf16.mxu0 %v17949_v48  ;;  %v12327_v48 = vld [vmem:[%s17940_s1 + $0x4f4] ss:$24 sps:$4 sm:$0xff]  }
 0x18e   : > { %2508 = vmatmul.mubr.bf16.gmra.mrb[44].mxu0 %v14433_v36 }
 0x18f   : > { %2550 = vmatprep.mubr.bf16.mxu0 %v13795_v45 }
 0x196   : > { %2551 = vmatmul.mubr.bf16.vlgmr.msra.gmra.mrb[48].mxu0 %v13867_v5 }
 0x197   : > { %2978 = vmatpush1.bf16.msra.mxu0 %v12247_v27  ;;  %2560 = vmatprep.mubr.bf16.mxu0 %v13802_v47  ;;  %v12295_v27 = vld [vmem:[%s17940_s1 + $0x310] ss:$24 sps:$4 sm:$0xff]  }
 0x198   : > { %2979 = vmatprep.subr.bf16.mxu0 %v12252_v41 }
 0x19b   : > { %2980 = vmatpush1.bf16.msra.mxu0 %v12250_v43  ;;  %v12300_v43 = vld [vmem:[%s17940_s1 + $0x344] ss:$24 sps:$4 sm:$0xff]  }
 0x19c   : > { %2981 = vmatprep.subr.bf16.mxu0 %v12255_v49 }
 0x19e   : > { %2561 = vmatmul.mubr.bf16.gmra.mrb[52].mxu0 %v13899_v16 }
 0x19f   : > { %2982 = vmatpush1.bf16.msra.mxu0 %v12253_v52  ;;  %2570 = vmatprep.mubr.bf16.mxu0 %v13904_v18 }
 0x1a0   : > { %2983 = vmatprep.subr.bf16.mxu0 %v12258_v53 }
 0x1a3   : > { %2984 = vmatpush1.bf16.msra.mxu0 %v12256_v59  ;;  %v12303_v59 = vld [vmem:[%s17940_s1 + $0x374] ss:$24 sps:$4 sm:$0xff]  }
 0x1a4   : > { %2985 = vmatprep.subr.bf16.mxu0 %v12261_v60  ;;  %v12301_v60 = vld [vmem:[%s17940_s1 + $0x370] ss:$24 sps:$4 sm:$0xff]  }
 0x1a6   : > { %2571 = vmatmul.mubr.bf16.gmra.mrb[56].mxu0 %v13932_v28 }
 0x1a7   : > { %2580 = vmatprep.mubr.bf16.mxu0 %v13937_v30  ;;  %2986 = vmatpush1.bf16.msra.mxu0 %v12259_v61  ;;  %v12306_v61 = vld [vmem:[%s17940_s1 + $0x3a4] ss:$24 sps:$4 sm:$0xff]  }
 0x1a8   : > { %2987 = vmatprep.subr.bf16.mxu0 %v12264_v62 }
 0x1ab   : > { %2988 = vmatpush1.bf16.msra.mxu0 %v12262_v63 }
 0x1ac   : > { %2989 = vmatprep.subr.bf16.mxu0 %v12267_v0 }
 0x1ae   : > { %2581 = vmatmul.mubr.bf16.gmra.mrb[60].mxu0 %v13964_v40 }
 0x1af   : > { %2590 = vmatprep.mubr.bf16.mxu0 %v13969_v42  ;;  %2990 = vmatpush1.bf16.msra.mxu0 %v12265_v1  ;;  %v12304_v1 = vld [vmem:[%s17940_s1 + $0x3a0] ss:$24 sps:$4 sm:$0xff]  }
 0x1b0   : > { %2991 = vmatprep.subr.bf16.mxu0 %v12270_v3  ;;  %v12309_v3 = vld [vmem:[%s17940_s1 + $0x3d4] ss:$24 sps:$4 sm:$0xff]  }
 0x1b3   : > { %2992 = vmatpush1.bf16.msra.mxu0 %v12268_v6  ;;  %v12307_v6 = vld [vmem:[%s17940_s1 + $0x3d0] ss:$24 sps:$4 sm:$0xff]  }
 0x1b4   : > { %2993 = vmatprep.subr.bf16.mxu0 %v12273_v7 }
 0x1b6   : > { %2591 = vmatmul.mubr.bf16.gmra.mrb[64].mxu0 %v13996_v54 }
 0x1b7   : > { %2600 = vmatprep.mubr.bf16.mxu0 %v14001_v56  ;;  %2994 = vmatpush1.bf16.msra.mxu0 %v12271_v8  ;;  %v12312_v8 = vld [vmem:[%s17940_s1 + $0x404] ss:$24 sps:$4 sm:$0xff]  }
 0x1b8   : > { %2995 = vmatprep.subr.bf16.mxu0 %v12276_v9 }
 0x1bb   : > { %2996 = vmatpush1.bf16.msra.mxu0 %v12274_v10 }
 0x1bc   : > { %2997 = vmatprep.subr.bf16.mxu0 %v12279_v11 }
 0x1be   : > { %2601 = vmatmul.mubr.bf16.gmra.mrb[68].mxu0 %v14028_v2 }
 0x1bf   : > { %2610 = vmatprep.mubr.bf16.mxu0 %v14033_v4  ;;  %2998 = vmatpush1.bf16.msra.mxu0 %v12277_v12  ;;  %v12310_v12 = vld [vmem:[%s17940_s1 + $0x400] ss:$24 sps:$4 sm:$0xff]  }
 0x1c0   : > { %2999 = vmatprep.subr.bf16.mxu0 %v12282_v13  ;;  %v12315_v13 = vld [vmem:[%s17940_s1 + $0x434] ss:$24 sps:$4 sm:$0xff]  }
 0x1c3   : > { %3000 = vmatpush1.bf16.msra.mxu0 %v12280_v14 }
 0x1c4   : > { %3001 = vmatprep.subr.bf16.mxu0 %v12285_v17 }
 0x1c6   : > { %2611 = vmatmul.mubr.bf16.gmra.mrb[72].mxu0 %v14060_v15 }
 0x1c7   : > { %2620 = vmatprep.mubr.bf16.mxu0 %v14065_v19  ;;  %3002 = vmatpush1.bf16.msra.mxu0 %v12283_v20 }
 0x1c8   : > { %3003 = vmatprep.subr.bf16.mxu0 %v12288_v21  ;;  %v14569_v32 = vpop.f32.mrb[0].mxu1  ;;  %v12313_v21 = vld [vmem:[%s17940_s1 + $0x430] ss:$24 sps:$4 sm:$0xff]  }
 0x1c9   : > { %v14571_v35 = vpop.f32.mrb[1].mxu1 }
 0x1ca   : > { %v14573_v37 = vpop.f32.mrb[2].mxu1 }
 0x1cb   : > { %3004 = vmatpush1.bf16.msra.mxu0 %v12286_v22  ;;  %v14576_v38 = vpop.f32.mrb[3].mxu1 }
 0x1cc   : > { %3005 = vmatprep.subr.bf16.mxu0 %v12291_v23 }
 0x1ce   : > { %2621 = vmatmul.mubr.bf16.gmra.mrb[76].mxu0 %v14092_v31 }
 0x1cf   : > { %2630 = vmatprep.mubr.bf16.mxu0 %v14097_v33  ;;  %3006 = vmatpush1.bf16.msra.mxu0 %v12289_v24 }
 0x1d0   : > { %3007 = vmatprep.subr.bf16.mxu0 %v12294_v25  ;;  %v14582_v41 = vpop.f32.mrb[4].mxu1  ;;  %v12318_v25 = vld [vmem:[%s17940_s1 + $0x464] ss:$24 sps:$4 sm:$0xff]  }
 0x1d1   : > { %v14587_v49 = vpop.f32.mrb[5].mxu1 }
 0x1d2   : > { %v14589_v52 = vpop.f32.mrb[6].mxu1 }
 0x1d3   : > { %3008 = vmatpush1.bf16.msra.mxu0 %v12292_v26  ;;  %v14592_v53 = vpop.f32.mrb[7].mxu1 }
 0x1d4   : > { %3130 = vmatprep.subr.bf16.mxu0 %v12297_v29 }
 0x1d6   : > { %2631 = vmatmul.mubr.bf16.gmra.mrb[80].mxu0 %v14121_v44 }
 0x1d7   : > { %2640 = vmatprep.mubr.bf16.mxu0 %v14123_v46 }
 0x1de   : > { %2641 = vmatmul.mubr.bf16.gmra.mrb[84].mxu0 %v14131_v50 }
 0x1df   : > { %2650 = vmatprep.mubr.bf16.mxu0 %v14133_v51 }
 0x1e6   : > { %2651 = vmatmul.mubr.bf16.gmra.mrb[88].mxu0 %v14143_v55 }
 0x1e7   : > { %2660 = vmatprep.mubr.bf16.mxu0 %v14146_v57 }
 0x1ee   : > { %2661 = vmatmul.mubr.bf16.gmra.mrb[92].mxu0 %v14152_v58 }
 0x1ef   : > { %3009 = vmatprep.mubr.bf16.mxu0 %v13795_v45  ;;  %v12298_v45 = vld [vmem:[%s17940_s1 + $0x340] ss:$24 sps:$4 sm:$0xff]  }
 0x1f6   : > { %3010 = vmatmul.mubr.bf16.vlgmr.msra.gmra.mrb[96].mxu0 %v13867_v5  ;;  %v14604_v5 = vpop.f32.mrb[8].mxu1 }
 0x1f7   : > { %3131 = vmatpush1.bf16.msra.mxu0 %v12295_v27  ;;  %3019 = vmatprep.mubr.bf16.mxu0 %v13802_v47  ;;  %v14609_v62 = vpop.f32.mrb[9].mxu1 }
 0x1f8   : > { %3132 = vmatprep.subr.bf16.mxu0 %v12300_v43  ;;  %v14611_v63 = vpop.f32.mrb[10].mxu1 }
 0x1f9   : > { %v14614_v0 = vpop.f32.mrb[11].mxu1 }
 0x1fa   : > { %v14626_v7 = vpop.f32.mrb[12].mxu1 }
 0x1fb   : > { %3133 = vmatpush1.bf16.msra.mxu0 %v12298_v45  ;;  %v14631_v9 = vpop.f32.mrb[13].mxu1  ;;  %v12316_v45 = vld [vmem:[%s17940_s1 + $0x460] ss:$24 sps:$4 sm:$0xff]  }
 0x1fc   : > { %3134 = vmatprep.subr.bf16.mxu0 %v12303_v59  ;;  %v14633_v10 = vpop.f32.mrb[14].mxu1  ;;  %v12321_v59 = vld [vmem:[%s17940_s1 + $0x494] ss:$24 sps:$4 sm:$0xff]  }
 0x1fd   : > { %v14636_v11 = vpop.f32.mrb[15].mxu1 }
 0x1fe   : > { %3020 = vmatmul.mubr.bf16.gmra.mrb[100].mxu0 %v13899_v16  ;;  %v14654_v22 = vpop.f32.mrb[16].mxu1 }
 0x1ff   : > { %3135 = vmatpush1.bf16.msra.mxu0 %v12301_v60  ;;  %3029 = vmatprep.mubr.bf16.mxu0 %v13904_v18  ;;  %v14663_v26 = vpop.f32.mrb[17].mxu1 }
 0x200   : > { %3136 = vmatprep.subr.bf16.mxu0 %v12306_v61  ;;  %v14667_v27 = vpop.f32.mrb[18].mxu1 }
 0x201   : > { %v14670_v43 = vpop.f32.mrb[19].mxu1 }
 0x203   : > { %3137 = vmatpush1.bf16.msra.mxu0 %v12304_v1 }
 0x204   : > { %3138 = vmatprep.subr.bf16.mxu0 %v12309_v3  ;;  %v12319_v3 = vld [vmem:[%s17940_s1 + $0x490] ss:$24 sps:$4 sm:$0xff]  }
 0x206   : > { %3030 = vmatmul.mubr.bf16.gmra.mrb[104].mxu0 %v13932_v28 }
 0x207   : > { %3039 = vmatprep.mubr.bf16.mxu0 %v13937_v30  ;;  %3139 = vmatpush1.bf16.msra.mxu0 %v12307_v6  ;;  %v14688_v6 = vpop.f32.mrb[20].mxu1 }
 0x208   : > { %3140 = vmatprep.subr.bf16.mxu0 %v12312_v8  ;;  %17998 = vst [vmem:[#allocation12_spill] sm:$0xff] %v14688_v6 }
 0x209   : > { %v14645_v14 = vpop.f32.mrb[0].mxu0 }
 0x20a   : > { %v14647_v17 = vpop.f32.mrb[1].mxu0 }
 0x20b   : > { %17995 = vst [vmem:[#allocation9_spill] sm:$0xff] %v14647_v17  ;;  %v14649_v20 = vpop.f32.mrb[2].mxu0  ;;  %3141 = vmatpush1.bf16.msra.mxu0 %v12310_v12 }
 0x20c   : > { %v14658_v24 = vpop.f32.mrb[3].mxu0  ;;  %3142 = vmatprep.subr.bf16.mxu0 %v12315_v13  ;;  %v12324_v13 = vld [vmem:[%s17940_s1 + $0x4c4] ss:$24 sps:$4 sm:$0xff]  }
 0x20d   : > { %17996 = vst [vmem:[#allocation10_spill] sm:$0xff] %v14658_v24  ;;  %v12330_v24 = vld [vmem:[%s17940_s1 + $0x524] ss:$24 sps:$4 sm:$0xff]  }
 0x20e   : > { %3040 = vmatmul.mubr.bf16.gmra.mrb[108].mxu0 %v13964_v40 }
 0x20f   : > { %3049 = vmatprep.mubr.bf16.mxu0 %v13969_v42  ;;  %3143 = vmatpush1.bf16.msra.mxu0 %v12313_v21  ;;  %v14697_v21 = vpop.f32.mrb[21].mxu1 }
 0x210   : > { %3144 = vmatprep.subr.bf16.mxu0 %v12318_v25  ;;  %18000 = vst [vmem:[#allocation14_spill] sm:$0xff] %v14697_v21 }
 0x211   : > { %v14679_v60 = vpop.f32.mrb[4].mxu0 }
 0x212   : > { %v14681_v61 = vpop.f32.mrb[5].mxu0 }
 0x213   : > { %17997 = vst [vmem:[#allocation11_spill] sm:$0xff] %v14681_v61  ;;  %v14683_v1 = vpop.f32.mrb[6].mxu0  ;;  %3145 = vmatpush1.bf16.msra.mxu0 %v12316_v45  ;;  %v14701_v45 = vpop.f32.mrb[22].mxu1 }
 0x214   : > { %v14692_v12 = vpop.f32.mrb[7].mxu0  ;;  %3146 = vmatprep.subr.bf16.mxu0 %v12321_v59  ;;  %18001 = vst [vmem:[#allocation15_spill] sm:$0xff] %v14701_v45  ;;  %v14704_v29 = vpop.f32.mrb[23].mxu1  ;;  %v12322_v59 = vld [vmem:[%s17940_s1 + $0x4c0] ss:$24 sps:$4 sm:$0xff]  }
 0x215   : > { %17999 = vst [vmem:[#allocation13_spill] sm:$0xff] %v14692_v12  ;;  %18002 = vst [vmem:[#allocation16_spill] sm:$0xff] %v14704_v29  ;;  %v14722_v12 = vpop.f32.mrb[24].mxu1 }
 0x216   : > { %3050 = vmatmul.mubr.bf16.gmra.mrb[112].mxu0 %v13996_v54  ;;  %18004 = vst [vmem:[#allocation18_spill] sm:$0xff] %v14722_v12  ;;  %v14731_v17 = vpop.f32.mrb[25].mxu1 }
 0x217   : > { %3059 = vmatprep.mubr.bf16.mxu0 %v14001_v56  ;;  %3147 = vmatpush1.bf16.msra.mxu0 %v12319_v3  ;;  %v12325_v3 = vld [vmem:[%s17940_s1 + $0x4f0] ss:$24 sps:$4 sm:$0xff]   ;;  %18006 = vst [vmem:[#allocation20_spill] sm:$0xff] %v14731_v17  ;;  %v14735_v36 = vpop.f32.mrb[26].mxu1 }
 0x218   : > { %3148 = vmatprep.subr.bf16.mxu0 %v12324_v13  ;;  %18007 = vst [vmem:[#allocation21_spill] sm:$0xff] %v14735_v36  ;;  %v14738_v39 = vpop.f32.mrb[27].mxu1  ;;  %v12333_v13 = vld [vmem:[%s17940_s1 + $0x554] ss:$24 sps:$4 sm:$0xff]   ;;  %v12336_v36 = vld [vmem:[%s17940_s1 + $0x584] ss:$24 sps:$4 sm:$0xff]  }
 0x219   : > { %v14713_v8 = vpop.f32.mrb[8].mxu0  ;;  %18008 = vst [vmem:[#allocation22_spill] sm:$0xff] %v14738_v39 }
 0x21a   : > { %v14715_v25 = vpop.f32.mrb[9].mxu0 }
 0x21b   : > { %18003 = vst [vmem:[#allocation17_spill] sm:$0xff] %v14715_v25  ;;  %v14717_v23 = vpop.f32.mrb[10].mxu0  ;;  %3149 = vmatpush1.bf16.msra.mxu0 %v12322_v59  ;;  %v14756_v25 = vpop.f32.mrb[28].mxu1 }
 0x21c   : > { %v14726_v61 = vpop.f32.mrb[11].mxu0  ;;  %3150 = vmatprep.subr.bf16.mxu0 %v12327_v48  ;;  %v12328_v48 = vld [vmem:[%s17940_s1 + $0x520] ss:$24 sps:$4 sm:$0xff]   ;;  %18010 = vst [vmem:[#allocation24_spill] sm:$0xff] %v14756_v25  ;;  %v14765_v17 = vpop.f32.mrb[29].mxu1 }
 0x21d   : > { %18005 = vst [vmem:[#allocation19_spill] sm:$0xff] %v14726_v61  ;;  %18012 = vst [vmem:[#allocation26_spill] sm:$0xff] %v14765_v17  ;;  %v14769_v12 = vpop.f32.mrb[30].mxu1 }
 0x21e   : > { %3060 = vmatmul.mubr.bf16.gmra.mrb[116].mxu0 %v14028_v2  ;;  %18013 = vst [vmem:[#allocation27_spill] sm:$0xff] %v14769_v12  ;;  %v14772_v25 = vpop.f32.mrb[31].mxu1  ;;  %v12342_v12 = vld [vmem:[%s17940_s1 + $0x5e4] ss:$24 sps:$4 sm:$0xff]  }
 0x21f   : > { %3069 = vmatprep.mubr.bf16.mxu0 %v14033_v4  ;;  %3151 = vmatpush1.bf16.msra.mxu0 %v12325_v3  ;;  %v12331_v3 = vld [vmem:[%s17940_s1 + $0x550] ss:$24 sps:$4 sm:$0xff]   ;;  %18014 = vst [vmem:[#allocation28_spill] sm:$0xff] %v14772_v25 }
 0x220   : > { %3152 = vmatprep.subr.bf16.mxu0 %v12330_v24  ;;  %v12339_v24 = vld [vmem:[%s17940_s1 + $0x5b4] ss:$24 sps:$4 sm:$0xff]  }
 0x221   : > { %v14747_v34 = vpop.f32.mrb[12].mxu0 }
 0x222   : > { %v14749_v59 = vpop.f32.mrb[13].mxu0 }
 0x223   : > { %18009 = vst [vmem:[#allocation23_spill] sm:$0xff] %v14749_v59  ;;  %v14751_v61 = vpop.f32.mrb[14].mxu0  ;;  %3153 = vmatpush1.bf16.msra.mxu0 %v12328_v48  ;;  %v14790_v59 = vpop.f32.mrb[32].mxu1 }
 0x224   : > { %v14760_v39 = vpop.f32.mrb[15].mxu0  ;;  %3154 = vmatprep.subr.bf16.mxu0 %v12333_v13  ;;  %v12334_v13 = vld [vmem:[%s17940_s1 + $0x580] ss:$24 sps:$4 sm:$0xff]   ;;  %18016 = vst [vmem:[#allocation30_spill] sm:$0xff] %v14790_v59  ;;  %v14799_v29 = vpop.f32.mrb[33].mxu1 }
 0x225   : > { %18011 = vst [vmem:[#allocation25_spill] sm:$0xff] %v14760_v39  ;;  %18018 = vst [vmem:[#allocation32_spill] sm:$0xff] %v14799_v29  ;;  %v14803_v45 = vpop.f32.mrb[34].mxu1 }
 0x226   : > { %3070 = vmatmul.mubr.bf16.gmra.mrb[120].mxu0 %v14060_v15  ;;  %18019 = vst [vmem:[#allocation33_spill] sm:$0xff] %v14803_v45  ;;  %v14806_v59 = vpop.f32.mrb[35].mxu1 }
 0x227   : > { %3079 = vmatprep.mubr.bf16.mxu0 %v14065_v19  ;;  %3155 = vmatpush1.bf16.msra.mxu0 %v12331_v3  ;;  %v12337_v3 = vld [vmem:[%s17940_s1 + $0x5b0] ss:$24 sps:$4 sm:$0xff]   ;;  %18020 = vst [vmem:[#allocation34_spill] sm:$0xff] %v14806_v59 }
 0x228   : > { %3156 = vmatprep.subr.bf16.mxu0 %v12336_v36  ;;  %v12345_v36 = vld [vmem:[%s17940_s1 + $0x614] ss:$24 sps:$4 sm:$0xff]  }
 0x229   : > { %v14781_v17 = vpop.f32.mrb[16].mxu0 }
 0x22a   : > { %v14783_v48 = vpop.f32.mrb[17].mxu0 }
 0x22b   : > { %18015 = vst [vmem:[#allocation29_spill] sm:$0xff] %v14783_v48  ;;  %v14785_v39 = vpop.f32.mrb[18].mxu0  ;;  %3157 = vmatpush1.bf16.msra.mxu0 %v12334_v13  ;;  %v14821_v48 = vpop.f32.mrb[36].mxu1 }
 0x22c   : > { %v14794_v25 = vpop.f32.mrb[19].mxu0  ;;  %3158 = vmatprep.subr.bf16.mxu0 %v12339_v24  ;;  %v12340_v24 = vld [vmem:[%s17940_s1 + $0x5e0] ss:$24 sps:$4 sm:$0xff]   ;;  %18023 = vst [vmem:[#allocation37_spill] sm:$0xff] %v14821_v48 }
 0x22d   : > { %18017 = vst [vmem:[#allocation31_spill] sm:$0xff] %v14794_v25 }
 0x22e   : > { %3080 = vmatmul.mubr.bf16.gmra.mrb[124].mxu0 %v14092_v31 }
 0x22f   : > { %3089 = vmatprep.mubr.bf16.mxu0 %v14097_v33  ;;  %3159 = vmatpush1.bf16.msra.mxu0 %v12337_v3 }
 0x230   : > { %3160 = vmatprep.subr.bf16.mxu0 %v12342_v12  ;;  %v14827_v12 = vpop.f32.mrb[37].mxu1 }
 0x231   : > { %v14815_v29 = vpop.f32.mrb[20].mxu0  ;;  %18025 = vst [vmem:[#allocation39_spill] sm:$0xff] %v14827_v12  ;;  %v14831_v21 = vpop.f32.mrb[38].mxu1 }
 0x232   : > { %v14817_v13 = vpop.f32.mrb[21].mxu0  ;;  %18026 = vst [vmem:[#allocation40_spill] sm:$0xff] %v14831_v21  ;;  %v14834_v6 = vpop.f32.mrb[39].mxu1 }
 0x233   : > { %18021 = vst [vmem:[#allocation35_spill] sm:$0xff] %v14817_v13  ;;  %v14819_v25 = vpop.f32.mrb[22].mxu0  ;;  %3161 = vmatpush1.bf16.msra.mxu0 %v12340_v24  ;;  %18027 = vst [vmem:[#allocation41_spill] sm:$0xff] %v14834_v6 }
 0x234   : > { %18022 = vst [vmem:[#allocation36_spill] sm:$0xff] %v14819_v25  ;;  %v14825_v59 = vpop.f32.mrb[23].mxu0  ;;  %3283 = vmatprep.subr.bf16.mxu0 %v12345_v36  ;;  %v14843_v36 = vpop.f32.mrb[40].mxu1 }
 0x235   : > { %18024 = vst [vmem:[#allocation38_spill] sm:$0xff] %v14825_v59  ;;  %18031 = vst [vmem:[#allocation45_spill] sm:$0xff] %v14843_v36  ;;  %v14849_v59 = vpop.f32.mrb[41].mxu1 }
 0x236   : > { %3090 = vmatmul.mubr.bf16.gmra.mrb[128].mxu0 %v14121_v44  ;;  %18033 = vst [vmem:[#allocation47_spill] sm:$0xff] %v14849_v59  ;;  %v14853_v6 = vpop.f32.mrb[42].mxu1 }
 0x237   : > { %3099 = vmatprep.mubr.bf16.mxu0 %v14123_v46  ;;  %18034 = vst [vmem:[#allocation48_spill] sm:$0xff] %v14853_v6  ;;  %v14856_v21 = vpop.f32.mrb[43].mxu1 }
 0x238   : > { %18035 = vst [vmem:[#allocation49_spill] sm:$0xff] %v14856_v21 }
 0x239   : > { %v14837_v24 = vpop.f32.mrb[24].mxu0 }
 0x23a   : > { %18028 = vst [vmem:[#allocation42_spill] sm:$0xff] %v14837_v24  ;;  %v14839_v48 = vpop.f32.mrb[25].mxu0 }
 0x23b   : > { %18029 = vst [vmem:[#allocation43_spill] sm:$0xff] %v14839_v48  ;;  %v14841_v3 = vpop.f32.mrb[26].mxu0  ;;  %v12348_v48 = vld [vmem:[%s17940_s1 + $0x644] ss:$24 sps:$4 sm:$0xff]  }
 0x23c   : > { %18030 = vst [vmem:[#allocation44_spill] sm:$0xff] %v14841_v3  ;;  %v14847_v45 = vpop.f32.mrb[27].mxu0  ;;  %v14865_v3 = vpop.f32.mrb[44].mxu1 }
 0x23d   : > { %18032 = vst [vmem:[#allocation46_spill] sm:$0xff] %v14847_v45  ;;  %18038 = vst [vmem:[#allocation52_spill] sm:$0xff] %v14865_v3  ;;  %v14871_v45 = vpop.f32.mrb[45].mxu1 }
 0x23e   : > { %3100 = vmatmul.mubr.bf16.gmra.mrb[132].mxu0 %v14131_v50  ;;  %18040 = vst [vmem:[#allocation54_spill] sm:$0xff] %v14871_v45  ;;  %v14875_v21 = vpop.f32.mrb[46].mxu1  ;;  %v12351_v45 = vld [vmem:[%s17940_s1 + $0x674] ss:$24 sps:$4 sm:$0xff]  }
 0x23f   : > { %3109 = vmatprep.mubr.bf16.mxu0 %v14133_v51  ;;  %18041 = vst [vmem:[#allocation55_spill] sm:$0xff] %v14875_v21  ;;  %v14878_v6 = vpop.f32.mrb[47].mxu1  ;;  %v12343_v21 = vld [vmem:[%s17940_s1 + $0x610] ss:$24 sps:$4 sm:$0xff]  }
 0x240   : > { %18042 = vst [vmem:[#allocation56_spill] sm:$0xff] %v14878_v6 }
 0x241   : > { %v14859_v25 = vpop.f32.mrb[28].mxu0 }
 0x242   : > { %v14861_v36 = vpop.f32.mrb[29].mxu0 }
 0x243   : > { %18036 = vst [vmem:[#allocation50_spill] sm:$0xff] %v14861_v36  ;;  %v14863_v12 = vpop.f32.mrb[30].mxu0 }
 0x244   : > { %18037 = vst [vmem:[#allocation51_spill] sm:$0xff] %v14863_v12  ;;  %v14869_v13 = vpop.f32.mrb[31].mxu0 }
 0x245   : > { %18039 = vst [vmem:[#allocation53_spill] sm:$0xff] %v14869_v13 }
 0x246   : > { %3110 = vmatmul.mubr.bf16.gmra.mrb[136].mxu0 %v14143_v55 }
 0x247   : > { %3119 = vmatprep.mubr.bf16.mxu0 %v14146_v57 }
 0x249   : > { %v14881_v24 = vpop.f32.mrb[32].mxu0 }
 0x24a   : > { %v14883_v3 = vpop.f32.mrb[33].mxu0 }
 0x24b   : > { %18043 = vst [vmem:[#allocation57_spill] sm:$0xff] %v14883_v3  ;;  %v14885_v59 = vpop.f32.mrb[34].mxu0 }
 0x24c   : > { %18044 = vst [vmem:[#allocation58_spill] sm:$0xff] %v14885_v59  ;;  %v14889_v12 = vpop.f32.mrb[35].mxu0 }
 0x24d   : > { %18045 = vst [vmem:[#allocation59_spill] sm:$0xff] %v14889_v12  ;;  %v12346_v12 = vld [vmem:[%s17940_s1 + $0x640] ss:$24 sps:$4 sm:$0xff]  }
 0x24e   : > { %3120 = vmatmul.mubr.bf16.gmra.mrb[140].mxu0 %v14152_v58 }
 0x24f   : > { %3162 = vmatprep.mubr.bf16.mxu0 %v13802_v47 }
 0x251   : > { %v14895_v13 = vpop.f32.mrb[36].mxu0 }
 0x252   : > { %18046 = vst [vmem:[#allocation60_spill] sm:$0xff] %v14895_v13  ;;  %v14897_v36 = vpop.f32.mrb[37].mxu0 }
 0x253   : > { %18047 = vst [vmem:[#allocation61_spill] sm:$0xff] %v14897_v36  ;;  %v14899_v6 = vpop.f32.mrb[38].mxu0 }
 0x254   : > { %18048 = vst [vmem:[#allocation62_spill] sm:$0xff] %v14899_v6  ;;  %v14906_v59 = vpop.f32.mrb[39].mxu0 }
 0x255   : > { %18049 = vst [vmem:[#allocation63_spill] sm:$0xff] %v14906_v59 }
 0x256   : > { %3163 = vmatmul.mubr.bf16.vlgmr.msra.gmra.mrb[96].mxu0 %v13899_v16  ;;  %v12349_v16 = vld [vmem:[%s17940_s1 + $0x670] ss:$24 sps:$4 sm:$0xff]  }
 0x257   : > { %3284 = vmatpush1.bf16.msra.mxu0 %v12343_v21  ;;  %3172 = vmatprep.mubr.bf16.mxu0 %v13904_v18 }
 0x258   : > { %3285 = vmatprep.subr.bf16.mxu0 %v12348_v48  ;;  %v12354_v48 = vld [vmem:[%s17940_s1 + $0x6a4] ss:$24 sps:$4 sm:$0xff]  }
 0x259   : > { %v14921_v3 = vpop.f32.mrb[40].mxu0 }
 0x25a   : > { %v14923_v6 = vpop.f32.mrb[41].mxu0 }
 0x25b   : > { %18050 = vst [vmem:[#allocation64_spill] sm:$0xff] %v14923_v6  ;;  %v14925_v13 = vpop.f32.mrb[42].mxu0  ;;  %3286 = vmatpush1.bf16.msra.mxu0 %v12346_v12  ;;  %v12352_v12 = vld [vmem:[%s17940_s1 + $0x6a0] ss:$24 sps:$4 sm:$0xff]   ;;  %v3546_v6 = vlaneseq }
 0x25c   : > { %v14932_v21 = vpop.f32.mrb[43].mxu0  ;;  %3287 = vmatprep.subr.bf16.mxu0 %v12351_v45  ;;  %v12357_v45 = vld [vmem:[%s17940_s1 + $0x6d4] ss:$24 sps:$4 sm:$0xff]  }
 0x25d   : > { %18051 = vst [vmem:[#allocation65_spill] sm:$0xff] %v14932_v21 }
 0x25e   : > { %3173 = vmatmul.mubr.bf16.gmra.mrb[100].mxu0 %v13932_v28 }
 0x25f   : > { %3182 = vmatprep.mubr.bf16.mxu0 %v13937_v30  ;;  %3288 = vmatpush1.bf16.msra.mxu0 %v12349_v16  ;;  %v12355_v30 = vld [vmem:[%s17940_s1 + $0x6d0] ss:$24 sps:$4 sm:$0xff]  }
 0x260   : > { %3289 = vmatprep.subr.bf16.mxu0 %v12354_v48  ;;  %v12360_v48 = vld [vmem:[%s17940_s1 + $0x704] ss:$24 sps:$4 sm:$0xff]  }
 0x261   : > { %v14947_v18 = vpop.f32.mrb[44].mxu0 }
 0x262   : > { %18052 = vst [vmem:[#allocation66_spill] sm:$0xff] %v14947_v18  ;;  %v14949_v59 = vpop.f32.mrb[45].mxu0  ;;  %v12366_v18 = vld [vmem:[%s17940_s1 + $0x764] ss:$24 sps:$4 sm:$0xff]  }
 0x263   : > { %18053 = vst [vmem:[#allocation67_spill] sm:$0xff] %v14949_v59  ;;  %v14951_v36 = vpop.f32.mrb[46].mxu0  ;;  %3290 = vmatpush1.bf16.msra.mxu0 %v12352_v12  ;;  %v12358_v12 = vld [vmem:[%s17940_s1 + $0x700] ss:$24 sps:$4 sm:$0xff]  }
 0x264   : > { %18054 = vst [vmem:[#allocation68_spill] sm:$0xff] %v14951_v36  ;;  %v14958_v47 = vpop.f32.mrb[47].mxu0  ;;  %3291 = vmatprep.subr.bf16.mxu0 %v12357_v45  ;;  %v12363_v45 = vld [vmem:[%s17940_s1 + $0x734] ss:$24 sps:$4 sm:$0xff]  }
 0x265   : > { %18055 = vst [vmem:[#allocation69_spill] sm:$0xff] %v14958_v47 }
 0x266   : > { %3183 = vmatmul.mubr.bf16.gmra.mrb[104].mxu0 %v13964_v40 }
 0x267   : > { %3192 = vmatprep.mubr.bf16.mxu0 %v13969_v42  ;;  %3292 = vmatpush1.bf16.msra.mxu0 %v12355_v30  ;;  %v12361_v42 = vld [vmem:[%s17940_s1 + $0x730] ss:$24 sps:$4 sm:$0xff]  }
 0x268   : > { %3293 = vmatprep.subr.bf16.mxu0 %v12360_v48 }
 0x269   : > { %v2552_v16 = vpop.f32.mrb[48].mxu0 }
 0x26a   : > { %v14974_v36 = vadd.f32 %v14569_v32, %v2552_v16  ;;  %v2554_v21 = vpop.f32.mrb[49].mxu0  ;;  %v14987_v16 = vshrl.u32 %v3546_v6, 7 }
 0x26b   : > { %v11399_v47 = vadd.f32 %v14571_v35, %v2554_v21  ;;  %v2556_v59 = vpop.f32.mrb[50].mxu0  ;;  %3294 = vmatpush1.bf16.msra.mxu0 %v12358_v12  ;;  %v18100_v35 = vld [vmem:[#allocation49_spill] sm:$0xff] }
 0x26c   : > { %v14981_v30 = vadd.f32 %v14573_v37, %v2556_v59  ;;  %v2558_v48 = vpop.f32.mrb[51].mxu0  ;;  %3295 = vmatprep.subr.bf16.mxu0 %v12363_v45  ;;  %v12364_v37 = vld [vmem:[%s17940_s1 + $0x760] ss:$24 sps:$4 sm:$0xff]   ;;  %v18056_v59 = vmax.f32 %v14645_v14, %v14649_v20  ;;  %v15000_v6 = vsub.s32 0, %v14987_v16 }
 0x26d   : > { %v11401_v32 = vadd.f32 %v14576_v38, %v2558_v48 }
 0x26e   : > { %3193 = vmatmul.mubr.bf16.gmra.mrb[108].mxu0 %v13996_v54  ;;  %18057 = vst [vmem:[#allocation70_spill] sm:$0xff] %v15000_v6 }
 0x26f   : > { %v3439_v21 = vmax.f32 %v11399_v47, %v11401_v32  ;;  %3202 = vmatprep.mubr.bf16.mxu0 %v14001_v56  ;;  %3296 = vmatpush1.bf16.msra.mxu0 %v12361_v42  ;;  %v15005_v47 = vld [vmem:[%s17941_s2] sm:$0x7] }
 0x270   : > { %3297 = vmatprep.subr.bf16.mxu0 %v12366_v18  ;;  %v15016_v48 = vrot.slane %v15005_v47, %v15000_v6 }
 0x271   : > { %v3508_v38 = vmax.f32 %v18056_v59, %v3439_v21  ;;  %v2562_v12 = vpop.f32.mrb[52].mxu0 }
 0x272   : > { %v15008_v56 = vadd.f32 %v14582_v41, %v2562_v12  ;;  %v2564_v45 = vpop.f32.mrb[53].mxu0 }
 0x273   : > { %v11403_v42 = vadd.f32 %v14587_v49, %v2564_v45  ;;  %v2566_v18 = vpop.f32.mrb[54].mxu0  ;;  %3298 = vmatpush1.bf16.msra.mxu0 %v12364_v37  ;;  %v3561_v49 = vadd.f32 %v15016_v48, %v3508_v38 }
 0x274   : > { %v15012_v14 = vadd.f32 %v14589_v52, %v2566_v18  ;;  %v2568_v20 = vpop.f32.mrb[55].mxu0  ;;  %v18058_v52 = vmax.f32 %v14679_v60, %v14683_v1  ;;  %v18098_v60 = vld [vmem:[#allocation47_spill] sm:$0xff] }
 0x275   : > { %v11405_v32 = vadd.f32 %v14592_v53, %v2568_v20 }
 0x276   : > { %3203 = vmatmul.mubr.bf16.gmra.mrb[112].mxu0 %v14028_v2 }
 0x277   : > { %v3445_v41 = vmax.f32 %v11403_v42, %v11405_v32  ;;  %3212 = vmatprep.mubr.bf16.mxu0 %v14033_v4  ;;  %v3597_v32 = vmax.f32 %v3561_v49, 0.0 }
 0x279   : > { %v3511_v37 = vmax.f32 %v18058_v52, %v3445_v41  ;;  %v2572_v59 = vpop.f32.mrb[56].mxu0 }
 0x27a   : > { %v15028_v12 = vadd.f32 %v14604_v5, %v2572_v59  ;;  %v2574_v45 = vpop.f32.mrb[57].mxu0 }
 0x27b   : > { %v3564_v53 = vadd.f32 %v15016_v48, %v3511_v37  ;;  %v11407_v18 = vadd.f32 %v14609_v62, %v2574_v45  ;;  %v2576_v20 = vpop.f32.mrb[58].mxu0  ;;  %v18059_v62 = vmax.f32 %v14713_v8, %v14717_v23 }
 0x27c   : > { %v15033_v42 = vadd.f32 %v14611_v63, %v2576_v20  ;;  %v2578_v4 = vpop.f32.mrb[59].mxu0 }
 0x27d   : > { %v3600_v38 = vmax.f32 %v3564_v53, 0.0  ;;  %v11409_v21 = vadd.f32 %v14614_v0, %v2578_v4 }
 0x27e   : > { %3213 = vmatmul.mubr.bf16.gmra.mrb[116].mxu0 %v14060_v15 }
 0x27f   : > { %v15039_v5 = vpack.c.bf16 %v3600_v38, %v3597_v32  ;;  %v3451_v1 = vmax.f32 %v11407_v18, %v11409_v21  ;;  %3222 = vmatprep.mubr.bf16.mxu0 %v14065_v19 }
 0x281   : > { %v3514_v63 = vmax.f32 %v18059_v62, %v3451_v1  ;;  %v2582_v41 = vpop.f32.mrb[60].mxu0 }
 0x282   : > { %v15046_v49 = vadd.f32 %v14626_v7, %v2582_v41  ;;  %v2584_v52 = vpop.f32.mrb[61].mxu0 }
 0x283   : > { %v3567_v0 = vadd.f32 %v15016_v48, %v3514_v63  ;;  %v11411_v37 = vadd.f32 %v14631_v9, %v2584_v52  ;;  %v2586_v59 = vpop.f32.mrb[62].mxu0  ;;  %v18060_v9 = vmax.f32 %v14747_v34, %v14751_v61  ;;  %v18061_v52 = vmax.f32 %v14781_v17, %v14785_v39  ;;  %v18063_v39 = vld [vmem:[#allocation14_spill] sm:$0xff] }
 0x284   : > { %v15051_v45 = vadd.f32 %v14633_v10, %v2586_v59  ;;  %v2588_v21 = vpop.f32.mrb[63].mxu0  ;;  %v18062_v59 = vld [vmem:[#allocation12_spill] sm:$0xff] }
 0x285   : > { %v3603_v53 = vmax.f32 %v3567_v0, 0.0  ;;  %v11413_v19 = vadd.f32 %v14636_v11, %v2588_v21 }
 0x286   : > { %3223 = vmatmul.mubr.bf16.gmra.mrb[120].mxu0 %v14092_v31 }
 0x287   : > { %v3457_v7 = vmax.f32 %v11411_v37, %v11413_v19  ;;  %3232 = vmatprep.mubr.bf16.mxu0 %v14097_v33  ;;  %v15058_v8 = vpack.c.bf16 %v3603_v53, %v3600_v38 }
 0x289   : > { %v3517_v18 = vmax.f32 %v18060_v9, %v3457_v7  ;;  %v2592_v10 = vpop.f32.mrb[64].mxu0 }
 0x28a   : > { %v15064_v20 = vadd.f32 %v14654_v22, %v2592_v10  ;;  %v2594_v4 = vpop.f32.mrb[65].mxu0  ;;  %v12367_v22 = vld [vmem:[%s17942_s3] ss:$16 sps:$4 sm:$0xff]  }
 0x28b   : > { %v3570_v11 = vadd.f32 %v15016_v48, %v3517_v18  ;;  %v11415_v32 = vadd.f32 %v14663_v26, %v2594_v4  ;;  %v2596_v1 = vpop.f32.mrb[66].mxu0  ;;  %v12369_v26 = vld [vmem:[%s17942_s3 + $0x4] ss:$16 sps:$4 sm:$0xff]   ;;  %v18064_v18 = vld [vmem:[#allocation15_spill] sm:$0xff] }
 0x28c   : > { %v15069_v62 = vadd.f32 %v14667_v27, %v2596_v1  ;;  %v2598_v33 = vpop.f32.mrb[67].mxu0  ;;  %v12372_v27 = vld [vmem:[%s17942_s3 + $0xc] ss:$16 sps:$4 sm:$0xff]   ;;  %6687 = vmatprep.subr.bf16.mxu1 %v12369_v26 }
 0x28d   : > { %v3606_v38 = vmax.f32 %v3570_v11, 0.0  ;;  %v11417_v63 = vadd.f32 %v14670_v43, %v2598_v33  ;;  %v12375_v43 = vld [vmem:[%s17942_s3 + $0x24] ss:$16 sps:$4 sm:$0xff]   ;;  %7271 = vmatprep.subr.bf16.mxu0 %v12372_v27  ;;  %6688 = vmatpush1.bf16.msra.mxu1 %v12367_v22  ;;  %v12379_v33 = vld [vmem:[%s17942_s3 + $0x40] ss:$16 sps:$4 sm:$0xff]  }
 0x28e   : > { %3233 = vmatmul.mubr.bf16.gmra.mrb[124].mxu0 %v14121_v44  ;;  %6689 = vmatprep.subr.bf16.mxu1 %v12375_v43  ;;  %v12387_v22 = vld [vmem:[%s17942_s3 + $0x64] ss:$16 sps:$4 sm:$0xff]  }
 0x28f   : > { %v3463_v61 = vmax.f32 %v11415_v32, %v11417_v63  ;;  %3242 = vmatprep.mubr.bf16.mxu0 %v14123_v46  ;;  %v15088_v41 = vpack.c.bf16 %v3606_v38, %v3603_v53  ;;  %v12373_v46 = vld [vmem:[%s17942_s3 + $0x20] ss:$16 sps:$4 sm:$0xff]   ;;  %v12381_v53 = vld [vmem:[%s17942_s3 + $0x44] ss:$16 sps:$4 sm:$0xff]   ;;  %v18093_v63 = vld [vmem:[#allocation41_spill] sm:$0xff] }
 0x290   : > { %v18065_v32 = vld [vmem:[#allocation16_spill] sm:$0xff] }
 0x291   : > { %v3520_v0 = vmax.f32 %v18061_v52, %v3463_v61  ;;  %v2602_v37 = vpop.f32.mrb[68].mxu0  ;;  %6690 = vmatpush1.bf16.msra.mxu1 %v12373_v46  ;;  %v18066_v27 = vld [vmem:[#allocation36_spill] sm:$0xff]  ;;  %v18068_v46 = vld [vmem:[#allocation18_spill] sm:$0xff] }
 0x292   : > { %v15097_v21 = vadd.f32 %v18062_v59, %v2602_v37  ;;  %v2604_v19 = vpop.f32.mrb[69].mxu0  ;;  %6691 = vmatprep.subr.bf16.mxu1 %v12381_v53  ;;  %v18067_v43 = vmax.f32 %v14815_v29, %v18066_v27  ;;  %v12385_v37 = vld [vmem:[%s17942_s3 + $0x60] ss:$16 sps:$4 sm:$0xff]  }
 0x293   : > { %v3573_v7 = vadd.f32 %v15016_v48, %v3520_v0  ;;  %v11419_v17 = vadd.f32 %v18063_v39, %v2604_v19  ;;  %v2606_v9 = vpop.f32.mrb[70].mxu0  ;;  %v18069_v53 = vld [vmem:[#allocation20_spill] sm:$0xff]  ;;  %v18070_v39 = vld [vmem:[#allocation21_spill] sm:$0xff] }
 0x294   : > { %v15105_v10 = vadd.f32 %v18064_v18, %v2606_v9  ;;  %v2608_v4 = vpop.f32.mrb[71].mxu0 }
 0x295   : > { %v3609_v11 = vmax.f32 %v3573_v7, 0.0  ;;  %v11421_v1 = vadd.f32 %v18065_v32, %v2608_v4  ;;  %6692 = vmatpush1.bf16.msra.mxu1 %v12379_v33  ;;  %v18071_v4 = vld [vmem:[#allocation22_spill] sm:$0xff] }
 0x296   : > { %3243 = vmatmul.mubr.bf16.gmra.mrb[128].mxu0 %v14131_v50  ;;  %6693 = vmatprep.subr.bf16.mxu1 %v12387_v22  ;;  %v12399_v22 = vld [vmem:[%s17942_s3 + $0xa4] ss:$16 sps:$4 sm:$0xff]  }
 0x297   : > { %v3469_v26 = vmax.f32 %v11419_v17, %v11421_v1  ;;  %3252 = vmatprep.mubr.bf16.mxu0 %v14133_v51  ;;  %v15118_v61 = vpack.c.bf16 %v3609_v11, %v3606_v38  ;;  %v12393_v51 = vld [vmem:[%s17942_s3 + $0x84] ss:$16 sps:$4 sm:$0xff]   ;;  %v12391_v1 = vld [vmem:[%s17942_s3 + $0x80] ss:$16 sps:$4 sm:$0xff]  }
 0x299   : > { %v3523_v52 = vmax.f32 %v18067_v43, %v3469_v26  ;;  %v2612_v0 = vpop.f32.mrb[72].mxu0  ;;  %6694 = vmatpush1.bf16.msra.mxu1 %v12385_v37  ;;  %v18072_v43 = vld [vmem:[#allocation42_spill] sm:$0xff] }
 0x29a   : > { %v15127_v59 = vadd.f32 %v18068_v46, %v2612_v0  ;;  %v2614_v19 = vpop.f32.mrb[73].mxu0  ;;  %6695 = vmatprep.subr.bf16.mxu1 %v12393_v51  ;;  %v18075_v51 = vld [vmem:[#allocation24_spill] sm:$0xff] }
 0x29b   : > { %v3576_v38 = vadd.f32 %v15016_v48, %v3523_v52  ;;  %v11423_v29 = vadd.f32 %v18069_v53, %v2614_v19  ;;  %v2616_v7 = vpop.f32.mrb[74].mxu0  ;;  %v18073_v52 = vld [vmem:[#allocation44_spill] sm:$0xff] }
 0x29c   : > { %v15135_v17 = vadd.f32 %v18070_v39, %v2616_v7  ;;  %v2618_v9 = vpop.f32.mrb[75].mxu0  ;;  %v18074_v0 = vmax.f32 %v18072_v43, %v18073_v52  ;;  %v12397_v19 = vld [vmem:[%s17942_s3 + $0xa0] ss:$16 sps:$4 sm:$0xff]  }
 0x29d   : > { %v3612_v18 = vmax.f32 %v3576_v38, 0.0  ;;  %v11425_v32 = vadd.f32 %v18071_v4, %v2618_v9  ;;  %6696 = vmatpush1.bf16.msra.mxu1 %v12391_v1  ;;  %v18077_v9 = vld [vmem:[#allocation27_spill] sm:$0xff] }
 0x29e   : > { %3253 = vmatmul.mubr.bf16.gmra.mrb[132].mxu0 %v14143_v55  ;;  %6697 = vmatprep.subr.bf16.mxu1 %v12399_v22  ;;  %v12403_v22 = vld [vmem:[%s17942_s3 + $0xc0] ss:$16 sps:$4 sm:$0xff]  }
 0x29f   : > { %v15147_v26 = vpack.c.bf16 %v3612_v18, %v3609_v11  ;;  %v3475_v27 = vmax.f32 %v11423_v29, %v11425_v32  ;;  %3262 = vmatprep.mubr.bf16.mxu0 %v14146_v57  ;;  %v12405_v11 = vld [vmem:[%s17942_s3 + $0xc4] ss:$16 sps:$4 sm:$0xff]  }
 0x2a0   : > { %v18076_v29 = vld [vmem:[#allocation26_spill] sm:$0xff] }
 0x2a1   : > { %v3526_v37 = vmax.f32 %v18074_v0, %v3475_v27  ;;  %v2622_v46 = vpop.f32.mrb[76].mxu0  ;;  %v18078_v27 = vld [vmem:[#allocation28_spill] sm:$0xff]  ;;  %6698 = vmatpush1.bf16.msra.mxu1 %v12397_v19  ;;  %v18080_v19 = vld [vmem:[#allocation51_spill] sm:$0xff] }
 0x2a2   : > { %v15157_v38 = vadd.f32 %v18075_v51, %v2622_v46  ;;  %v2624_v53 = vpop.f32.mrb[77].mxu0  ;;  %6699 = vmatprep.subr.bf16.mxu1 %v12405_v11  ;;  %v12411_v0 = vld [vmem:[%s17942_s3 + $0xe4] ss:$16 sps:$4 sm:$0xff]  }
 0x2a3   : > { %v3579_v57 = vadd.f32 %v15016_v48, %v3526_v37  ;;  %v11427_v7 = vadd.f32 %v18076_v29, %v2624_v53  ;;  %v2626_v39 = vpop.f32.mrb[78].mxu0  ;;  %v18079_v46 = vld [vmem:[#allocation6_spill] sm:$0xff]  ;;  %v18081_v53 = vmax.f32 %v14859_v25, %v18080_v19 }
 0x2a4   : > { %v15165_v4 = vadd.f32 %v18077_v9, %v2626_v39  ;;  %v2628_v32 = vpop.f32.mrb[79].mxu0  ;;  %v12409_v39 = vld [vmem:[%s17942_s3 + $0xe0] ss:$16 sps:$4 sm:$0xff]  }
 0x2a5   : > { %v3615_v1 = vmax.f32 %v3579_v57, 0.0  ;;  %v11429_v43 = vadd.f32 %v18078_v27, %v2628_v32  ;;  %6700 = vmatpush1.bf16.msra.mxu1 %v12403_v22  ;;  %v18082_v11 = vld [vmem:[#allocation30_spill] sm:$0xff]  ;;  %v18083_v27 = vld [vmem:[#allocation32_spill] sm:$0xff] }
 0x2a6   : > { %3263 = vmatmul.mubr.bf16.gmra.mrb[136].mxu0 %v14152_v58  ;;  %6701 = vmatprep.subr.bf16.mxu1 %v12411_v0  ;;  %v12415_v0 = vld [vmem:[%s17942_s3 + $0x100] ss:$16 sps:$4 sm:$0xff]  }
 0x2a7   : > { %v3481_v37 = vmax.f32 %v11427_v7, %v11429_v43  ;;  %3272 = vmatprep.mubr.bf16.mxu0 %v18079_v46  ;;  %v15178_v51 = vpack.c.bf16 %v3615_v1, %v3612_v18  ;;  %v12417_v18 = vld [vmem:[%s17942_s3 + $0x104] ss:$16 sps:$4 sm:$0xff]  }
 0x2a9   : > { %v3529_v57 = vmax.f32 %v18081_v53, %v3481_v37  ;;  %v2632_v29 = vpop.f32.mrb[80].mxu0  ;;  %v18084_v37 = vld [vmem:[#allocation33_spill] sm:$0xff]  ;;  %v18085_v53 = vld [vmem:[#allocation34_spill] sm:$0xff]  ;;  %6702 = vmatpush1.bf16.msra.mxu1 %v12409_v39 }
 0x2aa   : > { %v15187_v9 = vadd.f32 %v18082_v11, %v2632_v29  ;;  %v2634_v32 = vpop.f32.mrb[81].mxu0  ;;  %v18086_v11 = vld [vmem:[#allocation7_spill] sm:$0xff]  ;;  %6703 = vmatprep.subr.bf16.mxu1 %v12417_v18  ;;  %v18088_v39 = vld [vmem:[#allocation58_spill] sm:$0xff]  ;;  %v18090_v18 = vld [vmem:[#allocation37_spill] sm:$0xff] }
 0x2ab   : > { %v3582_v7 = vadd.f32 %v15016_v48, %v3529_v57  ;;  %v11431_v25 = vadd.f32 %v18083_v27, %v2634_v32  ;;  %v2636_v43 = vpop.f32.mrb[82].mxu0  ;;  %v12423_v57 = vld [vmem:[%s17942_s3 + $0x124] ss:$16 sps:$4 sm:$0xff]   ;;  %v18087_v27 = vmov 0  }
 0x2ac   : > { %v15195_v22 = vadd.f32 %v18084_v37, %v2636_v43  ;;  %v2638_v46 = vpop.f32.mrb[83].mxu0  ;;  %v18089_v43 = vmax.f32 %v14881_v24, %v18088_v39  ;;  %v18092_v39 = vld [vmem:[#allocation40_spill] sm:$0xff] }
 0x2ad   : > { %v3618_v19 = vmax.f32 %v3582_v7, 0.0  ;;  %v11433_v52 = vadd.f32 %v18085_v53, %v2638_v46  ;;  %6704 = vmatpush1.bf16.msra.mxu1 %v12415_v0  ;;  %v12421_v53 = vld [vmem:[%s17942_s3 + $0x120] ss:$16 sps:$4 sm:$0xff]   ;;  %v12370_v0 = vld [vmem:[%s17942_s3 + $0x8] ss:$16 sps:$4 sm:$0xff]  }
 0x2ae   : > { %3273 = vmatmul.mubr.bf16.gmra.mrb[140].mxu0 %v18086_v11  ;;  %6705 = vmatprep.subr.bf16.mxu1 %v12423_v57  ;;  %v12378_v57 = vld [vmem:[%s17942_s3 + $0x2c] ss:$16 sps:$4 sm:$0xff]  }
 0x2af   : > { %v15207_v32 = vpack.c.bf16 %v3618_v19, %v3615_v1  ;;  %v3487_v7 = vmax.f32 %v11431_v25, %v11433_v52  ;;  %3315 = vmatprep.mubr.bf16.mxu0 %v18087_v27  ;;  %v12429_v1 = vld [vmem:[%s17942_s3 + $0x144] ss:$16 sps:$4 sm:$0xff]   ;;  %v18091_v25 = vld [vmem:[#allocation39_spill] sm:$0xff] }
 0x2b1   : > { %v3532_v37 = vmax.f32 %v18089_v43, %v3487_v7  ;;  %v2642_v46 = vpop.f32.mrb[84].mxu0  ;;  %6706 = vmatpush1.bf16.msra.mxu1 %v12421_v53 }
 0x2b2   : > { %v15217_v29 = vadd.f32 %v18090_v18, %v2642_v46  ;;  %v2644_v33 = vpop.f32.mrb[85].mxu0  ;;  %6707 = vmatprep.subr.bf16.mxu1 %v12429_v1  ;;  %v18094_v1 = vld [vmem:[#allocation60_spill] sm:$0xff] }
 0x2b3   : > { %v3585_v52 = vadd.f32 %v15016_v48, %v3532_v37  ;;  %v11435_v24 = vadd.f32 %v18091_v25, %v2644_v33  ;;  %v2646_v7 = vpop.f32.mrb[86].mxu0  ;;  %v12427_v33 = vld [vmem:[%s17942_s3 + $0x140] ss:$16 sps:$4 sm:$0xff]   ;;  %v12435_v25 = vld [vmem:[%s17942_s3 + $0x164] ss:$16 sps:$4 sm:$0xff]  }
 0x2b4   : > { %v15228_v43 = vadd.f32 %v18092_v39, %v2646_v7  ;;  %v2648_v46 = vpop.f32.mrb[87].mxu0 }
 0x2b5   : > { %v3621_v18 = vmax.f32 %v3585_v52, 0.0  ;;  %v11437_v34 = vadd.f32 %v18093_v63, %v2648_v46  ;;  %v12376_v63 = vld [vmem:[%s17942_s3 + $0x28] ss:$16 sps:$4 sm:$0xff]   ;;  %v18095_v52 = vld [vmem:[#allocation62_spill] sm:$0xff]  ;;  %6708 = vmatpush1.bf16.msra.mxu1 %v12427_v33 }
 0x2b6   : > { %3316 = vmatmul.mubr.bf16.vlgmr.msra.gmra.mrb[96].mxu0 %v13932_v28  ;;  %v12384_v28 = vld [vmem:[%s17942_s3 + $0x4c] ss:$16 sps:$4 sm:$0xff]   ;;  %v18096_v39 = vmax.f32 %v18094_v1, %v18095_v52  ;;  %6709 = vmatprep.subr.bf16.mxu1 %v12435_v25  ;;  %v12382_v33 = vld [vmem:[%s17942_s3 + $0x48] ss:$16 sps:$4 sm:$0xff]   ;;  %v18099_v52 = vld [vmem:[#allocation48_spill] sm:$0xff] }
 0x2b7   : > { %v3493_v7 = vmax.f32 %v11435_v24, %v11437_v34  ;;  %3325 = vmatprep.mubr.bf16.mxu0 %v18087_v27  ;;  %7272 = vmatpush1.bf16.msra.mxu0 %v12370_v0  ;;  %v15247_v53 = vpack.c.bf16 %v3621_v18, %v3618_v19  ;;  %v12433_v34 = vld [vmem:[%s17942_s3 + $0x160] ss:$16 sps:$4 sm:$0xff]   ;;  %v18097_v24 = vld [vmem:[#allocation45_spill] sm:$0xff] }
 0x2b8   : > { %7273 = vmatprep.subr.bf16.mxu0 %v12378_v57  ;;  %v12441_v57 = vld [vmem:[%s17942_s3 + $0x184] ss:$16 sps:$4 sm:$0xff]   ;;  %v12390_v25 = vld [vmem:[%s17942_s3 + $0x6c] ss:$16 sps:$4 sm:$0xff]  }
 0x2b9   : > { %v3535_v46 = vmax.f32 %v18096_v39, %v3493_v7  ;;  %v2652_v37 = vpop.f32.mrb[88].mxu0  ;;  %6710 = vmatpush1.bf16.msra.mxu1 %v12433_v34  ;;  %v18101_v34 = vmax.f32 %v14921_v3, %v14925_v13  ;;  %v12402_v3 = vld [vmem:[%s17942_s3 + $0xac] ss:$16 sps:$4 sm:$0xff]  }
 0x2ba   : > { %v15259_v0 = vadd.f32 %v18097_v24, %v2652_v37  ;;  %v2654_v19 = vpop.f32.mrb[89].mxu0  ;;  %6711 = vmatprep.subr.bf16.mxu1 %v12441_v57 }
 0x2bb   : > { %v3588_v23 = vadd.f32 %v15016_v48, %v3535_v46  ;;  %v11439_v1 = vadd.f32 %v18098_v60, %v2654_v19  ;;  %v2656_v7 = vpop.f32.mrb[90].mxu0  ;;  %7274 = vmatpush1.bf16.msra.mxu0 %v12376_v63  ;;  %v12439_v60 = vld [vmem:[%s17942_s3 + $0x180] ss:$16 sps:$4 sm:$0xff]   ;;  %v18104_v63 = vld [vmem:[#allocation55_spill] sm:$0xff] }
 0x2bc   : > { %v15270_v39 = vadd.f32 %v18099_v52, %v2656_v7  ;;  %v2658_v37 = vpop.f32.mrb[91].mxu0  ;;  %7275 = vmatprep.subr.bf16.mxu0 %v12384_v28  ;;  %v12396_v28 = vld [vmem:[%s17942_s3 + $0x8c] ss:$16 sps:$4 sm:$0xff]   ;;  %v18103_v52 = vld [vmem:[#allocation54_spill] sm:$0xff] }
 0x2bd   : > { %v3624_v24 = vmax.f32 %v3588_v23, 0.0  ;;  %v11441_v46 = vadd.f32 %v18100_v35, %v2658_v37  ;;  %v12388_v23 = vld [vmem:[%s17942_s3 + $0x68] ss:$16 sps:$4 sm:$0xff]   ;;  %6712 = vmatpush1.bf16.msra.mxu1 %v12439_v60  ;;  %v18105_v60 = vld [vmem:[#allocation56_spill] sm:$0xff] }
 0x2be   : > { %3326 = vmatmul.mubr.bf16.gmra.mrb[100].mxu0 %v13964_v40 }
 0x2bf   : > { %v3499_v19 = vmax.f32 %v11439_v1, %v11441_v46  ;;  %3335 = vmatprep.mubr.bf16.mxu0 %v18087_v27  ;;  %7276 = vmatpush1.bf16.msra.mxu0 %v12382_v33  ;;  %v15286_v35 = vpack.c.bf16 %v3624_v24, %v3621_v18  ;;  %v18102_v1 = vld [vmem:[#allocation52_spill] sm:$0xff]  ;;  %v12394_v18 = vld [vmem:[%s17942_s3 + $0x88] ss:$16 sps:$4 sm:$0xff]  }
 0x2c0   : > { %7277 = vmatprep.subr.bf16.mxu0 %v12390_v25 }
 0x2c1   : > { %v3538_v40 = vmax.f32 %v18101_v34, %v3499_v19  ;;  %v2662_v57 = vpop.f32.mrb[92].mxu0 }
 0x2c2   : > { %v15295_v7 = vadd.f32 %v18102_v1, %v2662_v57  ;;  %v2664_v33 = vpop.f32.mrb[93].mxu0  ;;  %v18106_v1 = vld [vmem:[#allocation66_spill] sm:$0xff] }
 0x2c3   : > { %v11443_v37 = vadd.f32 %v18103_v52, %v2664_v33  ;;  %v2666_v46 = vpop.f32.mrb[94].mxu0  ;;  %7278 = vmatpush1.bf16.msra.mxu0 %v12388_v23  ;;  %v3591_v25 = vadd.f32 %v15016_v48, %v3538_v40  ;;  %v12408_v40 = vld [vmem:[%s17942_s3 + $0xcc] ss:$16 sps:$4 sm:$0xff]   ;;  %v18107_v33 = vld [vmem:[#allocation68_spill] sm:$0xff] }
 0x2c4   : > { %v15303_v6 = vadd.f32 %v18104_v63, %v2666_v46  ;;  %v2668_v13 = vpop.f32.mrb[95].mxu0  ;;  %7279 = vmatprep.subr.bf16.mxu0 %v12396_v28  ;;  %v12400_v63 = vld [vmem:[%s17942_s3 + $0xa8] ss:$16 sps:$4 sm:$0xff]   ;;  %v18108_v52 = vmax.f32 %v18106_v1, %v18107_v33  ;;  %v12456_v1 = vld [vmem:[%s17942_s3 + $0x1cc] ss:$16 sps:$4 sm:$0xff]  }
 0x2c5   : > { %v11445_v19 = vadd.f32 %v18105_v60, %v2668_v13  ;;  %v3627_v34 = vmax.f32 %v3591_v25, 0.0  ;;  %v12412_v25 = vld [vmem:[%s17942_s3 + $0xe8] ss:$16 sps:$4 sm:$0xff]   ;;  %v12451_v33 = vld [vmem:[%s17942_s3 + $0x1c0] ss:$16 sps:$4 sm:$0xff]  }
 0x2c6   : > { %v3504_v23 = vmax.f32 %v15295_v7, %v15303_v6  ;;  %3336 = vmatmul.mubr.bf16.gmra.mrb[104].mxu0 %v13996_v54  ;;  %v12406_v54 = vld [vmem:[%s17942_s3 + $0xc8] ss:$16 sps:$4 sm:$0xff]   ;;  %v12585_v7 = vld [vmem:[%s17942_s3 + $0x484] ss:$16 sps:$4 sm:$0xff]  }
 0x2c7   : > { %v3505_v57 = vmax.f32 %v11443_v37, %v11445_v19  ;;  %3345 = vmatprep.mubr.bf16.mxu0 %v18087_v27  ;;  %7280 = vmatpush1.bf16.msra.mxu0 %v12394_v18  ;;  %v15316_v28 = vpack.c.bf16 %v3627_v34, %v3624_v24  ;;  %v12414_v24 = vld [vmem:[%s17942_s3 + $0xec] ss:$16 sps:$4 sm:$0xff]   ;;  %v12424_v60 = vld [vmem:[%s17942_s3 + $0x128] ss:$16 sps:$4 sm:$0xff]  }
 0x2c8   : > { %7281 = vmatprep.subr.bf16.mxu0 %v12402_v3  ;;  %v12418_v3 = vld [vmem:[%s17942_s3 + $0x108] ss:$16 sps:$4 sm:$0xff]   ;;  %v12432_v19 = vld [vmem:[%s17942_s3 + $0x14c] ss:$16 sps:$4 sm:$0xff]  }
 0x2c9   : > { %v3541_v46 = vmax.f32 %v18108_v52, %v3505_v57  ;;  %v12436_v57 = vld [vmem:[%s17942_s3 + $0x168] ss:$16 sps:$4 sm:$0xff]  }
 0x2ca   : > { %v12454_v52 = vld [vmem:[%s17942_s3 + $0x1c8] ss:$16 sps:$4 sm:$0xff]  }
 0x2cb   : > { %7282 = vmatpush1.bf16.msra.mxu0 %v12400_v63  ;;  %v3594_v37 = vadd.f32 %v15016_v48, %v3541_v46  ;;  %v12420_v48 = vld [vmem:[%s17942_s3 + $0x10c] ss:$16 sps:$4 sm:$0xff]   ;;  %v12459_v46 = vld [vmem:[%s17942_s3 + $0x1e4] ss:$16 sps:$4 sm:$0xff]   ;;  %v12580_v6 = vld [vmem:[%s17942_s3 + $0x468] ss:$16 sps:$4 sm:$0xff]  }
 0x2cc   : > { %7283 = vmatprep.subr.bf16.mxu0 %v12408_v40  ;;  %v12444_v63 = vld [vmem:[%s17942_s3 + $0x18c] ss:$16 sps:$4 sm:$0xff]   ;;  %v12442_v40 = vld [vmem:[%s17942_s3 + $0x188] ss:$16 sps:$4 sm:$0xff]  }
 0x2cd   : > { %v3630_v18 = vmax.f32 %v3594_v37, 0.0  ;;  %v12457_v37 = vld [vmem:[%s17942_s3 + $0x1e0] ss:$16 sps:$4 sm:$0xff]  }
 0x2ce   : > { %3346 = vmatmul.mubr.bf16.gmra.mrb[108].mxu0 %v14028_v2  ;;  %v12426_v2 = vld [vmem:[%s17942_s3 + $0x12c] ss:$16 sps:$4 sm:$0xff]  }
 0x2cf   : > { %3355 = vmatprep.mubr.bf16.mxu0 %v18087_v27  ;;  %7284 = vmatpush1.bf16.msra.mxu0 %v12406_v54  ;;  %v15336_v13 = vpack.c.bf16 %v3630_v18, %v3627_v34  ;;  %v12430_v34 = vld [vmem:[%s17942_s3 + $0x148] ss:$16 sps:$4 sm:$0xff]   ;;  %v12462_v54 = vld [vmem:[%s17942_s3 + $0x1ec] ss:$16 sps:$4 sm:$0xff]   ;;  %v12465_v18 = vld [vmem:[%s17942_s3 + $0x204] ss:$16 sps:$4 sm:$0xff]  }
 0x2d0   : > { %7285 = vmatprep.subr.bf16.mxu0 %v12414_v24  ;;  %v12460_v24 = vld [vmem:[%s17942_s3 + $0x1e8] ss:$16 sps:$4 sm:$0xff]  }
 0x2d3   : > { %7286 = vmatpush1.bf16.msra.mxu0 %v12412_v25  ;;  %v12468_v25 = vld [vmem:[%s17942_s3 + $0x20c] ss:$16 sps:$4 sm:$0xff]  }
 0x2d4   : > { %7287 = vmatprep.subr.bf16.mxu0 %v12420_v48 }
 0x2d6   : > { %3356 = vmatmul.mubr.bf16.gmra.mrb[112].mxu0 %v14060_v15  ;;  %v12438_v15 = vld [vmem:[%s17942_s3 + $0x16c] ss:$16 sps:$4 sm:$0xff]  }
 0x2d7   : > { %3365 = vmatprep.mubr.bf16.mxu0 %v18087_v27  ;;  %7288 = vmatpush1.bf16.msra.mxu0 %v12418_v3 }
 0x2d8   : > { %7289 = vmatprep.subr.bf16.mxu0 %v12426_v2 }
 0x2db   : > { %7290 = vmatpush1.bf16.msra.mxu0 %v12424_v60 }
 0x2dc   : > { %7291 = vmatprep.subr.bf16.mxu0 %v12432_v19 }
 0x2de   : > { %3366 = vmatmul.mubr.bf16.gmra.mrb[116].mxu0 %v14092_v31  ;;  %v18109_v31 = vld [vmem:[#allocation8_spill] sm:$0xff] }
 0x2df   : > { %3375 = vmatprep.mubr.bf16.mxu0 %v18087_v27  ;;  %7292 = vmatpush1.bf16.msra.mxu0 %v12430_v34 }
 0x2e0   : > { %7293 = vmatprep.subr.bf16.mxu0 %v12438_v15  ;;  %v18110_v15 = vld [vmem:[#allocation9_spill] sm:$0xff] }
 0x2e3   : > { %7294 = vmatpush1.bf16.msra.mxu0 %v12436_v57  ;;  %v18111_v57 = vld [vmem:[#allocation10_spill] sm:$0xff] }
 0x2e4   : > { %7295 = vmatprep.subr.bf16.mxu0 %v12444_v63  ;;  %v18112_v63 = vmax.f32 %v18110_v15, %v18111_v57 }
 0x2e6   : > { %3376 = vmatmul.mubr.bf16.gmra.mrb[120].mxu0 %v14121_v44  ;;  %v12447_v44 = vld [vmem:[%s17942_s3 + $0x1a4] ss:$16 sps:$4 sm:$0xff]  }
 0x2e7   : > { %3385 = vmatprep.mubr.bf16.mxu0 %v18087_v27  ;;  %7296 = vmatpush1.bf16.msra.mxu0 %v12442_v40 }
 0x2e8   : > { %6713 = vmatprep.subr.bf16.mxu1 %v12447_v44  ;;  %v18113_v44 = vmax.f32 %v14974_v36, %v14981_v30  ;;  %v18114_v30 = vld [vmem:[#allocation11_spill] sm:$0xff] }
 0x2ee   : > { %3386 = vmatmul.mubr.bf16.gmra.mrb[124].mxu0 %v14131_v50  ;;  %v12450_v50 = vld [vmem:[%s17942_s3 + $0x1ac] ss:$16 sps:$4 sm:$0xff]  }
 0x2ef   : > { %3395 = vmatprep.mubr.bf16.mxu0 %v18087_v27  ;;  %7297 = vmatprep.subr.bf16.mxu0 %v12450_v50 }
 0x2f6   : > { %3396 = vmatmul.mubr.bf16.gmra.mrb[128].mxu0 %v14143_v55  ;;  %v12445_v55 = vld [vmem:[%s17942_s3 + $0x1a0] ss:$16 sps:$4 sm:$0xff]  }
 0x2f7   : > { %3405 = vmatprep.mubr.bf16.mxu0 %v18087_v27  ;;  %6714 = vmatpush1.bf16.msra.mxu1 %v12445_v55  ;;  %v3556_v55 = vsub.s32 2, %v14987_v16 }
 0x2fe   : > { %3406 = vmatmul.mubr.bf16.gmra.mrb[132].mxu0 %v14152_v58  ;;  %v12448_v58 = vld [vmem:[%s17942_s3 + $0x1a8] ss:$16 sps:$4 sm:$0xff]  }
 0x2ff   : > { %3415 = vmatprep.mubr.bf16.mxu0 %v18087_v27  ;;  %7298 = vmatpush1.bf16.msra.mxu0 %v12448_v58 }
 0x300   : > { %7299 = vmatprep.subr.bf16.mxu0 %v12456_v1 }
 0x303   : > { %7300 = vmatpush1.bf16.msra.mxu0 %v12454_v52 }
 0x304   : > { %7301 = vmatprep.subr.bf16.mxu0 %v12462_v54 }
 0x306   : > { %3416 = vmatmul.mubr.bf16.gmra.mrb[136].mxu0 %v18086_v11  ;;  %v12453_v11 = vld [vmem:[%s17942_s3 + $0x1c4] ss:$16 sps:$4 sm:$0xff]  }
 0x307   : > { %3425 = vmatprep.mubr.bf16.mxu0 %v18087_v27  ;;  %6715 = vmatprep.subr.bf16.mxu1 %v12453_v11 }
 0x308   : > { %6716 = vmatpush1.bf16.msra.mxu1 %v12451_v33  ;;  %7302 = vmatpush1.bf16.msra.mxu0 %v12460_v24  ;;  %v15442_v33 = vrot.slane %v15005_v47, %v3556_v55  ;;  %v18115_v24 = vld [vmem:[#allocation13_spill] sm:$0xff] }
 0x309   : > { %6717 = vmatprep.subr.bf16.mxu1 %v12459_v46  ;;  %7344 = vmatprep.subr.bf16.mxu0 %v12468_v25 }
 0x30c   : > { %6718 = vmatpush1.bf16.msra.mxu1 %v12457_v37 }
 0x30d   : > { %6760 = vmatprep.subr.bf16.mxu1 %v12465_v18  ;;  %v18116_v18 = vmax.f32 %v18114_v30, %v18115_v24  ;;  %v18119_v30 = vld [vmem:[#allocation19_spill] sm:$0xff] }
 0x30e   : > { %3426 = vmatmul.mubr.bf16.gmra.mrb[140].mxu0 %v18109_v31  ;;  %v15429_v31 = vsub.s32 1, %v14987_v16 }
 0x310   : > { %v15437_v11 = vrot.slane %v15005_v47, %v15429_v31 }
 0x389   : > { %v3317_v48 = vpop.f32.mrb[96].mxu0 }
 0x38a   : > { %v3319_v3 = vpop.f32.mrb[97].mxu0 }
 0x38b   : > { %v3321_v2 = vpop.f32.mrb[98].mxu0 }
 0x38c   : > { %v3440_v60 = vmax.f32 %v3317_v48, %v3321_v2  ;;  %v3323_v19 = vpop.f32.mrb[99].mxu0 }
 0x38d   : > { %v3441_v34 = vmax.f32 %v3319_v3, %v3323_v19  ;;  %v18117_v3 = vmax.f32 %v15008_v56, %v15012_v14  ;;  %v12466_v56 = vld [vmem:[%s17942_s3 + $0x208] ss:$16 sps:$4 sm:$0xff]  }
 0x38e   : > { %v3509_v40 = vmax.f32 %v18112_v63, %v3440_v60 }
 0x38f   : > { %v3510_v50 = vmax.f32 %v18113_v44, %v3441_v34 }
 0x390   : > { %v3562_v36 = vadd.f32 %v15437_v11, %v3509_v40 }
 0x391   : > { %v3327_v58 = vpop.f32.mrb[100].mxu0  ;;  %v3563_v48 = vadd.f32 %v15442_v33, %v3510_v50  ;;  %v12463_v50 = vld [vmem:[%s17942_s3 + $0x200] ss:$16 sps:$4 sm:$0xff]  }
 0x392   : > { %v3329_v1 = vpop.f32.mrb[101].mxu0  ;;  %v3598_v34 = vmax.f32 %v3562_v36, 0.0  ;;  %v18118_v36 = vld [vmem:[#allocation17_spill] sm:$0xff] }
 0x393   : > { %v3331_v52 = vpop.f32.mrb[102].mxu0  ;;  %v3599_v63 = vmax.f32 %v3563_v48, 0.0  ;;  %v18120_v24 = vmax.f32 %v18118_v36, %v18119_v30  ;;  %v18123_v36 = vld [vmem:[#allocation25_spill] sm:$0xff] }
 0x394   : > { %v3446_v46 = vmax.f32 %v3327_v58, %v3331_v52  ;;  %v3333_v54 = vpop.f32.mrb[103].mxu0 }
 0x395   : > { %v3447_v37 = vmax.f32 %v3329_v1, %v3333_v54  ;;  %v12471_v54 = vld [vmem:[%s17942_s3 + $0x224] ss:$16 sps:$4 sm:$0xff]  }
 0x396   : > { %v3512_v25 = vmax.f32 %v18116_v18, %v3446_v46 }
 0x397   : > { %v3513_v2 = vmax.f32 %v18117_v3, %v3447_v37  ;;  %v12474_v37 = vld [vmem:[%s17942_s3 + $0x22c] ss:$16 sps:$4 sm:$0xff]  }
 0x398   : > { %v3565_v60 = vadd.f32 %v15437_v11, %v3512_v25  ;;  %v18121_v25 = vmax.f32 %v15028_v12, %v15033_v42  ;;  %v12477_v42 = vld [vmem:[%s17942_s3 + $0x244] ss:$16 sps:$4 sm:$0xff]  }
 0x399   : > { %v3566_v47 = vadd.f32 %v15442_v33, %v3513_v2  ;;  %v3337_v19 = vpop.f32.mrb[104].mxu0  ;;  %v12469_v2 = vld [vmem:[%s17942_s3 + $0x220] ss:$16 sps:$4 sm:$0xff]  }
 0x39a   : > { %v3601_v15 = vmax.f32 %v3565_v60, 0.0  ;;  %v3339_v57 = vpop.f32.mrb[105].mxu0  ;;  %v12472_v60 = vld [vmem:[%s17942_s3 + $0x228] ss:$16 sps:$4 sm:$0xff]  }
 0x39b   : > { %v3602_v40 = vmax.f32 %v3566_v47, 0.0  ;;  %v3341_v44 = vpop.f32.mrb[106].mxu0 }
 0x39c   : > { %v3452_v58 = vmax.f32 %v3337_v19, %v3341_v44  ;;  %v3343_v1 = vpop.f32.mrb[107].mxu0  ;;  %v11322_v52 = vpack.c.bf16 %v3601_v15, %v3598_v34 }
 0x39d   : > { %v15460_v14 = vpack.c.bf16 %v3602_v40, %v3599_v63  ;;  %v3453_v46 = vmax.f32 %v3339_v57, %v3343_v1 }
 0x39e   : > { %v3515_v18 = vmax.f32 %v18120_v24, %v3452_v58  ;;  %6719 = vmatprep.mubr.bf16.mxu1 %v11322_v52  ;;  %7303 = vmatprep.mubr.bf16.mxu0 %v11322_v52  ;;  %v12475_v52 = vld [vmem:[%s17942_s3 + $0x240] ss:$16 sps:$4 sm:$0xff]  }
 0x39f   : > { %v3516_v48 = vmax.f32 %v18121_v25, %v3453_v46  ;;  %6720 = vmatmul.mubr.bf16.vlgmr.msra.gmra.mrb[48].mxu1 %v15039_v5  ;;  %7304 = vmatmul.mubr.bf16.vlgmr.msra.gmra.mrb[144].mxu0 %v15039_v5  ;;  %v12480_v5 = vld [vmem:[%s17942_s3 + $0x24c] ss:$16 sps:$4 sm:$0xff]  }
 0x3a0   : > { %v3568_v3 = vadd.f32 %v15437_v11, %v3515_v18  ;;  %6761 = vmatpush1.bf16.msra.mxu1 %v12463_v50  ;;  %7345 = vmatpush1.bf16.msra.mxu0 %v12466_v56  ;;  %v12478_v50 = vld [vmem:[%s17942_s3 + $0x248] ss:$16 sps:$4 sm:$0xff]   ;;  %v12486_v46 = vld [vmem:[%s17942_s3 + $0x26c] ss:$16 sps:$4 sm:$0xff]   ;;  %v18125_v18 = vmax.f32 %v15046_v49, %v15051_v45  ;;  %v12489_v49 = vld [vmem:[%s17942_s3 + $0x284] ss:$16 sps:$4 sm:$0xff]  }
 0x3a1   : > { %v3569_v47 = vadd.f32 %v15442_v33, %v3516_v48  ;;  %v3347_v12 = vpop.f32.mrb[108].mxu0  ;;  %6762 = vmatprep.subr.bf16.mxu1 %v12471_v54  ;;  %7346 = vmatprep.subr.bf16.mxu0 %v12474_v37  ;;  %v18122_v37 = vld [vmem:[#allocation23_spill] sm:$0xff] }
 0x3a2   : > { %v3604_v19 = vmax.f32 %v3568_v3, 0.0  ;;  %v3349_v34 = vpop.f32.mrb[109].mxu0  ;;  %v18124_v30 = vmax.f32 %v18122_v37, %v18123_v36  ;;  %v12481_v3 = vld [vmem:[%s17942_s3 + $0x260] ss:$16 sps:$4 sm:$0xff]   ;;  %v12492_v45 = vld [vmem:[%s17942_s3 + $0x28c] ss:$16 sps:$4 sm:$0xff]  }
 0x3a3   : > { %v3605_v57 = vmax.f32 %v3569_v47, 0.0  ;;  %v3351_v63 = vpop.f32.mrb[110].mxu0  ;;  %v18127_v37 = vld [vmem:[#allocation31_spill] sm:$0xff] }
 0x3a4   : > { %v15490_v44 = vpack.c.bf16 %v3604_v19, %v3601_v15  ;;  %v3458_v58 = vmax.f32 %v3347_v12, %v3351_v63  ;;  %6763 = vmatpush1.bf16.msra.mxu1 %v12469_v2  ;;  %7347 = vmatpush1.bf16.msra.mxu0 %v12472_v60  ;;  %v3353_v1 = vpop.f32.mrb[111].mxu0  ;;  %v12483_v15 = vld [vmem:[%s17942_s3 + $0x264] ss:$16 sps:$4 sm:$0xff]  }
 0x3a5   : > { %v3459_v56 = vmax.f32 %v3349_v34, %v3353_v1  ;;  %6764 = vmatprep.subr.bf16.mxu1 %v12477_v42  ;;  %7348 = vmatprep.subr.bf16.mxu0 %v12480_v5  ;;  %v15504_v54 = vpack.c.bf16 %v3605_v57, %v3602_v40  ;;  %v12484_v40 = vld [vmem:[%s17942_s3 + $0x268] ss:$16 sps:$4 sm:$0xff]   ;;  %v12487_v1 = vld [vmem:[%s17942_s3 + $0x280] ss:$16 sps:$4 sm:$0xff]  }
 0x3a6   : > { %v3518_v24 = vmax.f32 %v18124_v30, %v3458_v58 }
 0x3a7   : > { %v3519_v25 = vmax.f32 %v18125_v18, %v3459_v56 }
 0x3a8   : > { %v3571_v48 = vadd.f32 %v15437_v11, %v3518_v24  ;;  %6765 = vmatpush1.bf16.msra.mxu1 %v12475_v52  ;;  %7349 = vmatpush1.bf16.msra.mxu0 %v12478_v50  ;;  %v12490_v52 = vld [vmem:[%s17942_s3 + $0x288] ss:$16 sps:$4 sm:$0xff]  }
 0x3a9   : > { %v3572_v2 = vadd.f32 %v15442_v33, %v3519_v25  ;;  %v3357_v60 = vpop.f32.mrb[112].mxu0  ;;  %6766 = vmatprep.subr.bf16.mxu1 %v12483_v15  ;;  %7350 = vmatprep.subr.bf16.mxu0 %v12486_v46  ;;  %v12498_v15 = vld [vmem:[%s17942_s3 + $0x2ac] ss:$16 sps:$4 sm:$0xff]   ;;  %v12493_v25 = vld [vmem:[%s17942_s3 + $0x2a0] ss:$16 sps:$4 sm:$0xff]  }
 0x3aa   : > { %v3607_v47 = vmax.f32 %v3571_v48, 0.0  ;;  %v3359_v12 = vpop.f32.mrb[113].mxu0  ;;  %v18126_v46 = vld [vmem:[#allocation29_spill] sm:$0xff] }
 0x3ab   : > { %v3608_v42 = vmax.f32 %v3572_v2, 0.0  ;;  %v3361_v5 = vpop.f32.mrb[114].mxu0  ;;  %v18128_v36 = vmax.f32 %v18126_v46, %v18127_v37  ;;  %v12496_v48 = vld [vmem:[%s17942_s3 + $0x2a8] ss:$16 sps:$4 sm:$0xff]   ;;  %v18131_v46 = vld [vmem:[#allocation38_spill] sm:$0xff] }
 0x3ac   : > { %v15526_v34 = vpack.c.bf16 %v3607_v47, %v3604_v19  ;;  %v3464_v63 = vmax.f32 %v3357_v60, %v3361_v5  ;;  %6767 = vmatpush1.bf16.msra.mxu1 %v12481_v3  ;;  %7351 = vmatpush1.bf16.msra.mxu0 %v12484_v40  ;;  %v3363_v58 = vpop.f32.mrb[115].mxu0  ;;  %v12495_v19 = vld [vmem:[%s17942_s3 + $0x2a4] ss:$16 sps:$4 sm:$0xff]   ;;  %v12504_v40 = vld [vmem:[%s17942_s3 + $0x2cc] ss:$16 sps:$4 sm:$0xff]  }
 0x3ad   : > { %v15534_v50 = vpack.c.bf16 %v3608_v42, %v3605_v57  ;;  %v3465_v56 = vmax.f32 %v3359_v12, %v3363_v58  ;;  %6768 = vmatprep.subr.bf16.mxu1 %v12489_v49  ;;  %7352 = vmatprep.subr.bf16.mxu0 %v12492_v45  ;;  %v18129_v57 = vmax.f32 %v15064_v20, %v15069_v62  ;;  %v12501_v62 = vld [vmem:[%s17942_s3 + $0x2c4] ss:$16 sps:$4 sm:$0xff]   ;;  %v12499_v58 = vld [vmem:[%s17942_s3 + $0x2c0] ss:$16 sps:$4 sm:$0xff]  }
 0x3ae   : > { %v3521_v30 = vmax.f32 %v18128_v36, %v3464_v63  ;;  %6729 = vmatprep.mubr.bf16.mxu1 %v15526_v34  ;;  %7313 = vmatprep.mubr.bf16.mxu0 %v15526_v34 }
 0x3af   : > { %v3522_v24 = vmax.f32 %v18129_v57, %v3465_v56  ;;  %6730 = vmatmul.mubr.bf16.gmra.mrb[52].mxu1 %v15088_v41  ;;  %7314 = vmatmul.mubr.bf16.gmra.mrb[148].mxu0 %v15088_v41 }
 0x3b0   : > { %v3574_v18 = vadd.f32 %v15437_v11, %v3521_v30  ;;  %6769 = vmatpush1.bf16.msra.mxu1 %v12487_v1  ;;  %7353 = vmatpush1.bf16.msra.mxu0 %v12490_v52  ;;  %v12502_v1 = vld [vmem:[%s17942_s3 + $0x2c8] ss:$16 sps:$4 sm:$0xff]   ;;  %v18133_v30 = vmax.f32 %v15097_v21, %v15105_v10  ;;  %v12513_v21 = vld [vmem:[%s17942_s3 + $0x304] ss:$16 sps:$4 sm:$0xff]   ;;  %v12516_v10 = vld [vmem:[%s17942_s3 + $0x30c] ss:$16 sps:$4 sm:$0xff]  }
 0x3b1   : > { %v3575_v3 = vadd.f32 %v15442_v33, %v3522_v24  ;;  %v3367_v20 = vpop.f32.mrb[116].mxu0  ;;  %6770 = vmatprep.subr.bf16.mxu1 %v12495_v19  ;;  %7354 = vmatprep.subr.bf16.mxu0 %v12498_v15  ;;  %v12510_v19 = vld [vmem:[%s17942_s3 + $0x2ec] ss:$16 sps:$4 sm:$0xff]   ;;  %v12505_v24 = vld [vmem:[%s17942_s3 + $0x2e0] ss:$16 sps:$4 sm:$0xff]  }
 0x3b2   : > { %v3610_v2 = vmax.f32 %v3574_v18, 0.0  ;;  %v3369_v60 = vpop.f32.mrb[117].mxu0  ;;  %v18130_v15 = vld [vmem:[#allocation35_spill] sm:$0xff] }
 0x3b3   : > { %v3611_v49 = vmax.f32 %v3575_v3, 0.0  ;;  %v3371_v45 = vpop.f32.mrb[118].mxu0  ;;  %v18132_v37 = vmax.f32 %v18130_v15, %v18131_v46  ;;  %v12508_v18 = vld [vmem:[%s17942_s3 + $0x2e8] ss:$16 sps:$4 sm:$0xff]   ;;  %v18135_v15 = vld [vmem:[#allocation46_spill] sm:$0xff] }
 0x3b4   : > { %v15566_v12 = vpack.c.bf16 %v3610_v2, %v3607_v47  ;;  %v3470_v5 = vmax.f32 %v3367_v20, %v3371_v45  ;;  %6771 = vmatpush1.bf16.msra.mxu1 %v12493_v25  ;;  %7355 = vmatpush1.bf16.msra.mxu0 %v12496_v48  ;;  %v3373_v63 = vpop.f32.mrb[119].mxu0  ;;  %v12507_v47 = vld [vmem:[%s17942_s3 + $0x2e4] ss:$16 sps:$4 sm:$0xff]  }
 0x3b5   : > { %v15574_v52 = vpack.c.bf16 %v3611_v49, %v3608_v42  ;;  %v3471_v56 = vmax.f32 %v3369_v60, %v3373_v63  ;;  %6772 = vmatprep.subr.bf16.mxu1 %v12501_v62  ;;  %7356 = vmatprep.subr.bf16.mxu0 %v12504_v40  ;;  %v12511_v63 = vld [vmem:[%s17942_s3 + $0x300] ss:$16 sps:$4 sm:$0xff]  }
 0x3b6   : > { %v3524_v36 = vmax.f32 %v18132_v37, %v3470_v5 }
 0x3b7   : > { %v3525_v42 = vmax.f32 %v18133_v30, %v3471_v56 }
 0x3b8   : > { %v3577_v57 = vadd.f32 %v15437_v11, %v3524_v36  ;;  %6773 = vmatpush1.bf16.msra.mxu1 %v12499_v58  ;;  %7357 = vmatpush1.bf16.msra.mxu0 %v12502_v1  ;;  %v12514_v58 = vld [vmem:[%s17942_s3 + $0x308] ss:$16 sps:$4 sm:$0xff]  }
 0x3b9   : > { %v3578_v25 = vadd.f32 %v15442_v33, %v3525_v42  ;;  %v3377_v48 = vpop.f32.mrb[120].mxu0  ;;  %6774 = vmatprep.subr.bf16.mxu1 %v12507_v47  ;;  %7358 = vmatprep.subr.bf16.mxu0 %v12510_v19  ;;  %v12522_v47 = vld [vmem:[%s17942_s3 + $0x32c] ss:$16 sps:$4 sm:$0xff]   ;;  %v12517_v42 = vld [vmem:[%s17942_s3 + $0x320] ss:$16 sps:$4 sm:$0xff]  }
 0x3ba   : > { %v3613_v3 = vmax.f32 %v3577_v57, 0.0  ;;  %v3379_v20 = vpop.f32.mrb[121].mxu0  ;;  %v18134_v19 = vld [vmem:[#allocation43_spill] sm:$0xff] }
 0x3bb   : > { %v3614_v62 = vmax.f32 %v3578_v25, 0.0  ;;  %v3381_v40 = vpop.f32.mrb[122].mxu0  ;;  %v18136_v46 = vmax.f32 %v18134_v19, %v18135_v15  ;;  %v12520_v57 = vld [vmem:[%s17942_s3 + $0x328] ss:$16 sps:$4 sm:$0xff]  }
 0x3bc   : > { %v15602_v60 = vpack.c.bf16 %v3613_v3, %v3610_v2  ;;  %v3476_v45 = vmax.f32 %v3377_v48, %v3381_v40  ;;  %6775 = vmatpush1.bf16.msra.mxu1 %v12505_v24  ;;  %7359 = vmatpush1.bf16.msra.mxu0 %v12508_v18  ;;  %v3383_v5 = vpop.f32.mrb[123].mxu0  ;;  %v12519_v2 = vld [vmem:[%s17942_s3 + $0x324] ss:$16 sps:$4 sm:$0xff]   ;;  %v12528_v18 = vld [vmem:[%s17942_s3 + $0x34c] ss:$16 sps:$4 sm:$0xff]  }
 0x3bd   : > { %v15610_v1 = vpack.c.bf16 %v3614_v62, %v3611_v49  ;;  %v3477_v56 = vmax.f32 %v3379_v20, %v3383_v5  ;;  %6776 = vmatprep.subr.bf16.mxu1 %v12513_v21  ;;  %7360 = vmatprep.subr.bf16.mxu0 %v12516_v10  ;;  %v18137_v49 = vmax.f32 %v15127_v59, %v15135_v17  ;;  %v12525_v17 = vld [vmem:[%s17942_s3 + $0x344] ss:$16 sps:$4 sm:$0xff]   ;;  %v12523_v5 = vld [vmem:[%s17942_s3 + $0x340] ss:$16 sps:$4 sm:$0xff]   ;;  %v18139_v19 = vld [vmem:[#allocation53_spill] sm:$0xff] }
 0x3be   : > { %v3527_v37 = vmax.f32 %v18136_v46, %v3476_v45  ;;  %6739 = vmatprep.mubr.bf16.mxu1 %v15602_v60  ;;  %7323 = vmatprep.mubr.bf16.mxu0 %v15602_v60 }
 0x3bf   : > { %v3528_v36 = vmax.f32 %v18137_v49, %v3477_v56  ;;  %6740 = vmatmul.mubr.bf16.gmra.mrb[56].mxu1 %v15147_v26  ;;  %7324 = vmatmul.mubr.bf16.gmra.mrb[152].mxu0 %v15147_v26 }
 0x3c0   : > { %v3580_v30 = vadd.f32 %v15437_v11, %v3527_v37  ;;  %6777 = vmatpush1.bf16.msra.mxu1 %v12511_v63  ;;  %7361 = vmatpush1.bf16.msra.mxu0 %v12514_v58  ;;  %v12526_v63 = vld [vmem:[%s17942_s3 + $0x348] ss:$16 sps:$4 sm:$0xff]   ;;  %v18141_v37 = vmax.f32 %v15157_v38, %v15165_v4  ;;  %v12537_v38 = vld [vmem:[%s17942_s3 + $0x384] ss:$16 sps:$4 sm:$0xff]   ;;  %v12540_v4 = vld [vmem:[%s17942_s3 + $0x38c] ss:$16 sps:$4 sm:$0xff]  }
 0x3c1   : > { %v3581_v24 = vadd.f32 %v15442_v33, %v3528_v36  ;;  %v3387_v59 = vpop.f32.mrb[124].mxu0  ;;  %6778 = vmatprep.subr.bf16.mxu1 %v12519_v2  ;;  %7362 = vmatprep.subr.bf16.mxu0 %v12522_v47  ;;  %v12534_v2 = vld [vmem:[%s17942_s3 + $0x36c] ss:$16 sps:$4 sm:$0xff]   ;;  %v18138_v47 = vld [vmem:[#allocation50_spill] sm:$0xff] }
 0x3c2   : > { %v3616_v25 = vmax.f32 %v3580_v30, 0.0  ;;  %v3389_v48 = vpop.f32.mrb[125].mxu0  ;;  %v18140_v15 = vmax.f32 %v18138_v47, %v18139_v19  ;;  %v12529_v36 = vld [vmem:[%s17942_s3 + $0x360] ss:$16 sps:$4 sm:$0xff]   ;;  %v12532_v30 = vld [vmem:[%s17942_s3 + $0x368] ss:$16 sps:$4 sm:$0xff]  }
 0x3c3   : > { %v3617_v21 = vmax.f32 %v3581_v24, 0.0  ;;  %v3391_v10 = vpop.f32.mrb[126].mxu0  ;;  %v12543_v19 = vld [vmem:[%s17942_s3 + $0x3a4] ss:$16 sps:$4 sm:$0xff]  }
 0x3c4   : > { %v15642_v20 = vpack.c.bf16 %v3616_v25, %v3613_v3  ;;  %v3482_v40 = vmax.f32 %v3387_v59, %v3391_v10  ;;  %6779 = vmatpush1.bf16.msra.mxu1 %v12517_v42  ;;  %7363 = vmatpush1.bf16.msra.mxu0 %v12520_v57  ;;  %v3393_v45 = vpop.f32.mrb[127].mxu0  ;;  %v12531_v3 = vld [vmem:[%s17942_s3 + $0x364] ss:$16 sps:$4 sm:$0xff]  }
 0x3c5   : > { %v15650_v58 = vpack.c.bf16 %v3617_v21, %v3614_v62  ;;  %v3483_v56 = vmax.f32 %v3389_v48, %v3393_v45  ;;  %6780 = vmatprep.subr.bf16.mxu1 %v12525_v17  ;;  %7364 = vmatprep.subr.bf16.mxu0 %v12528_v18  ;;  %v12535_v45 = vld [vmem:[%s17942_s3 + $0x380] ss:$16 sps:$4 sm:$0xff]  }
 0x3c6   : > { %v3530_v46 = vmax.f32 %v18140_v15, %v3482_v40  ;;  %v18145_v15 = vmax.f32 %v15187_v9, %v15195_v22  ;;  %v12549_v22 = vld [vmem:[%s17942_s3 + $0x3c4] ss:$16 sps:$4 sm:$0xff]  }
 0x3c7   : > { %v3531_v62 = vmax.f32 %v18141_v37, %v3483_v56 }
 0x3c8   : > { %v3583_v49 = vadd.f32 %v15437_v11, %v3530_v46  ;;  %6781 = vmatpush1.bf16.msra.mxu1 %v12523_v5  ;;  %7365 = vmatpush1.bf16.msra.mxu0 %v12526_v63  ;;  %v12538_v5 = vld [vmem:[%s17942_s3 + $0x388] ss:$16 sps:$4 sm:$0xff]  }
 0x3c9   : > { %v3584_v42 = vadd.f32 %v15442_v33, %v3531_v62  ;;  %v3397_v57 = vpop.f32.mrb[128].mxu0  ;;  %6782 = vmatprep.subr.bf16.mxu1 %v12531_v3  ;;  %7366 = vmatprep.subr.bf16.mxu0 %v12534_v2  ;;  %v18142_v3 = vld [vmem:[#allocation57_spill] sm:$0xff]  ;;  %v12541_v62 = vld [vmem:[%s17942_s3 + $0x3a0] ss:$16 sps:$4 sm:$0xff]  }
 0x3ca   : > { %v3619_v24 = vmax.f32 %v3583_v49, 0.0  ;;  %v3399_v59 = vpop.f32.mrb[129].mxu0  ;;  %v12544_v49 = vld [vmem:[%s17942_s3 + $0x3a8] ss:$16 sps:$4 sm:$0xff]  }
 0x3cb   : > { %v3620_v17 = vmax.f32 %v3584_v42, 0.0  ;;  %v3401_v18 = vpop.f32.mrb[130].mxu0 }
 0x3cc   : > { %v15678_v48 = vpack.c.bf16 %v3619_v24, %v3616_v25  ;;  %v3488_v10 = vmax.f32 %v3397_v57, %v3401_v18  ;;  %6783 = vmatpush1.bf16.msra.mxu1 %v12529_v36  ;;  %7367 = vmatpush1.bf16.msra.mxu0 %v12532_v30  ;;  %v3403_v40 = vpop.f32.mrb[131].mxu0  ;;  %v18143_v25 = vld [vmem:[#allocation59_spill] sm:$0xff] }
 0x3cd   : > { %v15686_v63 = vpack.c.bf16 %v3620_v17, %v3617_v21  ;;  %v3489_v56 = vmax.f32 %v3399_v59, %v3403_v40  ;;  %6784 = vmatprep.subr.bf16.mxu1 %v12537_v38  ;;  %7368 = vmatprep.subr.bf16.mxu0 %v12540_v4  ;;  %v18144_v2 = vmax.f32 %v18142_v3, %v18143_v25  ;;  %v12546_v21 = vld [vmem:[%s17942_s3 + $0x3ac] ss:$16 sps:$4 sm:$0xff]   ;;  %v12550_v40 = vld [vmem:[%s17942_s3 + $0x3c8] ss:$16 sps:$4 sm:$0xff]  }
 0x3ce   : > { %6749 = vmatprep.mubr.bf16.mxu1 %v15678_v48  ;;  %7333 = vmatprep.mubr.bf16.mxu0 %v15678_v48  ;;  %v12552_v30 = vld [vmem:[%s17942_s3 + $0x3cc] ss:$16 sps:$4 sm:$0xff]  }
 0x3cf   : > { %v3533_v47 = vmax.f32 %v18144_v2, %v3488_v10  ;;  %v3534_v46 = vmax.f32 %v18145_v15, %v3489_v56  ;;  %6750 = vmatmul.mubr.bf16.gmra.mrb[60].mxu1 %v15207_v32  ;;  %7334 = vmatmul.mubr.bf16.gmra.mrb[156].mxu0 %v15207_v32  ;;  %v12547_v10 = vld [vmem:[%s17942_s3 + $0x3c0] ss:$16 sps:$4 sm:$0xff]   ;;  %v12558_v56 = vld [vmem:[%s17942_s3 + $0x3ec] ss:$16 sps:$4 sm:$0xff]  }
 0x3d0   : > { %6785 = vmatpush1.bf16.msra.mxu1 %v12535_v45  ;;  %7369 = vmatpush1.bf16.msra.mxu0 %v12538_v5  ;;  %v18146_v3 = vld [vmem:[#allocation61_spill] sm:$0xff]  ;;  %v18147_v25 = vld [vmem:[#allocation63_spill] sm:$0xff]  ;;  %v12553_v15 = vld [vmem:[%s17942_s3 + $0x3e0] ss:$16 sps:$4 sm:$0xff]  }
 0x3d1   : > { %v3586_v37 = vadd.f32 %v15437_v11, %v3533_v47  ;;  %v3587_v36 = vadd.f32 %v15442_v33, %v3534_v46  ;;  %6792 = vmatprep.mubr.bf16.mxu1 %v15058_v8  ;;  %7376 = vmatprep.mubr.bf16.mxu0 %v15058_v8  ;;  %v3407_v9 = vpop.f32.mrb[132].mxu0  ;;  %v18148_v2 = vmax.f32 %v18146_v3, %v18147_v25  ;;  %v12556_v46 = vld [vmem:[%s17942_s3 + $0x3e8] ss:$16 sps:$4 sm:$0xff]   ;;  %v12567_v3 = vld [vmem:[%s17942_s3 + $0x424] ss:$16 sps:$4 sm:$0xff]  }
 0x3d2   : > { %v3409_v57 = vpop.f32.mrb[133].mxu0  ;;  %6786 = vmatprep.subr.bf16.mxu1 %v12543_v19  ;;  %7370 = vmatprep.subr.bf16.mxu0 %v12546_v21  ;;  %v18149_v19 = vmax.f32 %v15217_v29, %v15228_v43  ;;  %v12561_v29 = vld [vmem:[%s17942_s3 + $0x404] ss:$16 sps:$4 sm:$0xff]   ;;  %v12564_v43 = vld [vmem:[%s17942_s3 + $0x40c] ss:$16 sps:$4 sm:$0xff]   ;;  %v18153_v25 = vmax.f32 %v15259_v0, %v15270_v39 }
 0x3d3   : > { %v3622_v42 = vmax.f32 %v3586_v37, 0.0  ;;  %v3623_v38 = vmax.f32 %v3587_v36, 0.0  ;;  %v3411_v4 = vpop.f32.mrb[134].mxu0  ;;  %v12568_v39 = vld [vmem:[%s17942_s3 + $0x428] ss:$16 sps:$4 sm:$0xff]  }
 0x3d4   : > { %v3494_v18 = vmax.f32 %v3407_v9, %v3411_v4  ;;  %6787 = vmatpush1.bf16.msra.mxu1 %v12541_v62  ;;  %7371 = vmatpush1.bf16.msra.mxu0 %v12544_v49  ;;  %v3413_v8 = vpop.f32.mrb[135].mxu0 }
 0x3d5   : > { %v15720_v59 = vpack.c.bf16 %v3622_v42, %v3619_v24  ;;  %v15728_v45 = vpack.c.bf16 %v3623_v38, %v3620_v17  ;;  %v3495_v5 = vmax.f32 %v3409_v57, %v3413_v8  ;;  %6788 = vmatprep.subr.bf16.mxu1 %v12549_v22  ;;  %7372 = vmatprep.subr.bf16.mxu0 %v12552_v30  ;;  %v12555_v24 = vld [vmem:[%s17942_s3 + $0x3e4] ss:$16 sps:$4 sm:$0xff]  }
 0x3d6   : > { %v3536_v47 = vmax.f32 %v18148_v2, %v3494_v18  ;;  %v12559_v18 = vld [vmem:[%s17942_s3 + $0x400] ss:$16 sps:$4 sm:$0xff]  }
 0x3d7   : > { %v3537_v17 = vmax.f32 %v18149_v19, %v3495_v5  ;;  %v18150_v5 = vld [vmem:[#allocation64_spill] sm:$0xff] }
 0x3d8   : > { %v3589_v21 = vadd.f32 %v15437_v11, %v3536_v47  ;;  %6789 = vmatpush1.bf16.msra.mxu1 %v12547_v10  ;;  %7373 = vmatpush1.bf16.msra.mxu0 %v12550_v40  ;;  %v12562_v40 = vld [vmem:[%s17942_s3 + $0x408] ss:$16 sps:$4 sm:$0xff]   ;;  %v12565_v19 = vld [vmem:[%s17942_s3 + $0x420] ss:$16 sps:$4 sm:$0xff]  }
 0x3d9   : > { %v3590_v37 = vadd.f32 %v15442_v33, %v3537_v17  ;;  %v3417_v62 = vpop.f32.mrb[136].mxu0  ;;  %6790 = vmatprep.subr.bf16.mxu1 %v12555_v24  ;;  %7374 = vmatprep.subr.bf16.mxu0 %v12558_v56 }
 0x3da   : > { %v3625_v49 = vmax.f32 %v3589_v21, 0.0  ;;  %v3419_v36 = vpop.f32.mrb[137].mxu0 }
 0x3db   : > { %v3626_v9 = vmax.f32 %v3590_v37, 0.0  ;;  %v3421_v22 = vpop.f32.mrb[138].mxu0 }
 0x3dc   : > { %v15756_v30 = vpack.c.bf16 %v3625_v49, %v3622_v42  ;;  %v3500_v57 = vmax.f32 %v3417_v62, %v3421_v22  ;;  %6791 = vmatpush1.bf16.msra.mxu1 %v12553_v15  ;;  %7375 = vmatpush1.bf16.msra.mxu0 %v12556_v46  ;;  %v3423_v4 = vpop.f32.mrb[139].mxu0  ;;  %v18151_v42 = vld [vmem:[#allocation65_spill] sm:$0xff] }
 0x3dd   : > { %v15761_v8 = vpack.c.bf16 %v3626_v9, %v3623_v38  ;;  %v3501_v10 = vmax.f32 %v3419_v36, %v3423_v4  ;;  %6833 = vmatprep.subr.bf16.mxu1 %v12561_v29  ;;  %7417 = vmatprep.subr.bf16.mxu0 %v12564_v43  ;;  %v18152_v24 = vmax.f32 %v18150_v5, %v18151_v42  ;;  %v12570_v38 = vld [vmem:[%s17942_s3 + $0x42c] ss:$16 sps:$4 sm:$0xff]   ;;  %v12571_v36 = vld [vmem:[%s17942_s3 + $0x440] ss:$16 sps:$4 sm:$0xff]   ;;  %v12574_v4 = vld [vmem:[%s17942_s3 + $0x448] ss:$16 sps:$4 sm:$0xff]  }
 0x3de   : > { %v12576_v46 = vld [vmem:[%s17942_s3 + $0x44c] ss:$16 sps:$4 sm:$0xff]  }
 0x3df   : > { %v3539_v56 = vmax.f32 %v18152_v24, %v3500_v57  ;;  %v3540_v2 = vmax.f32 %v18153_v25, %v3501_v10  ;;  %6793 = vmatmul.mubr.bf16.vlgmr.msra.gmra.mrb[48].mxu1 %v15460_v14  ;;  %7377 = vmatmul.mubr.bf16.vlgmr.msra.gmra.mrb[144].mxu0 %v15460_v14  ;;  %v12573_v14 = vld [vmem:[%s17942_s3 + $0x444] ss:$16 sps:$4 sm:$0xff]   ;;  %v18154_v10 = vld [vmem:[#allocation67_spill] sm:$0xff] }
 0x3e0   : > { %6802 = vmatprep.mubr.bf16.mxu1 %v15118_v61  ;;  %6834 = vmatpush1.bf16.msra.mxu1 %v12559_v18  ;;  %v12579_v24 = vld [vmem:[%s17942_s3 + $0x464] ss:$16 sps:$4 sm:$0xff]  }
 0x3e1   : > { %v3592_v47 = vadd.f32 %v15437_v11, %v3539_v56  ;;  %v3593_v17 = vadd.f32 %v15442_v33, %v3540_v2  ;;  %7386 = vmatprep.mubr.bf16.mxu0 %v15118_v61  ;;  %7418 = vmatpush1.bf16.msra.mxu0 %v12562_v40  ;;  %v3427_v0 = vpop.f32.mrb[140].mxu0  ;;  %v18155_v40 = vld [vmem:[#allocation69_spill] sm:$0xff] }
 0x3e2   : > { %v3429_v15 = vpop.f32.mrb[141].mxu0  ;;  %6835 = vmatprep.subr.bf16.mxu1 %v12567_v3  ;;  %7419 = vmatprep.subr.bf16.mxu0 %v12570_v38  ;;  %v18156_v5 = vmax.f32 %v18154_v10, %v18155_v40  ;;  %v12577_v3 = vld [vmem:[%s17942_s3 + $0x460] ss:$16 sps:$4 sm:$0xff]   ;;  %v12615_v40 = vld [vmem:[%s17942_s3 + $0x524] ss:$16 sps:$4 sm:$0xff]  }
 0x3e3   : > { %v3628_v21 = vmax.f32 %v3592_v47, 0.0  ;;  %v3629_v37 = vmax.f32 %v3593_v17, 0.0  ;;  %v3431_v62 = vpop.f32.mrb[142].mxu0  ;;  %v12586_v47 = vld [vmem:[%s17942_s3 + $0x488] ss:$16 sps:$4 sm:$0xff]  }
 0x3e4   : > { %v3506_v29 = vmax.f32 %v3427_v0, %v3431_v62  ;;  %6836 = vmatpush1.bf16.msra.mxu1 %v12565_v19  ;;  %v3433_v43 = vpop.f32.mrb[143].mxu0  ;;  %v12591_v17 = vld [vmem:[%s17942_s3 + $0x4a4] ss:$16 sps:$4 sm:$0xff]   ;;  %v12594_v0 = vld [vmem:[%s17942_s3 + $0x4ac] ss:$16 sps:$4 sm:$0xff]  }
 0x3e5   : > { %v15799_v22 = vpack.c.bf16 %v3628_v21, %v3625_v49  ;;  %7420 = vmatpush1.bf16.msra.mxu0 %v12568_v39  ;;  %v3507_v57 = vmax.f32 %v3429_v15, %v3433_v43  ;;  %6837 = vmatprep.subr.bf16.mxu1 %v12573_v14  ;;  %v15804_v18 = vpack.c.bf16 %v3629_v37, %v3626_v9  ;;  %v12582_v49 = vld [vmem:[%s17942_s3 + $0x46c] ss:$16 sps:$4 sm:$0xff]   ;;  %v12589_v39 = vld [vmem:[%s17942_s3 + $0x4a0] ss:$16 sps:$4 sm:$0xff]   ;;  %v12592_v14 = vld [vmem:[%s17942_s3 + $0x4a8] ss:$16 sps:$4 sm:$0xff]  }
 0x3e6   : > { %v3542_v42 = vmax.f32 %v18156_v5, %v3506_v29  ;;  %7421 = vmatprep.subr.bf16.mxu0 %v12576_v46  ;;  %v12600_v15 = vld [vmem:[%s17942_s3 + $0x4cc] ss:$16 sps:$4 sm:$0xff]   ;;  %v12595_v46 = vld [vmem:[%s17942_s3 + $0x4c0] ss:$16 sps:$4 sm:$0xff]   ;;  %v12603_v62 = vld [vmem:[%s17942_s3 + $0x4e4] ss:$16 sps:$4 sm:$0xff]  }
 0x3e7   : > { %v3543_v56 = vmax.f32 %v3504_v23, %v3507_v57  ;;  %6803 = vmatmul.mubr.bf16.gmra.mrb[52].mxu1 %v15534_v50  ;;  %7387 = vmatmul.mubr.bf16.gmra.mrb[148].mxu0 %v15534_v50  ;;  %v12606_v29 = vld [vmem:[%s17942_s3 + $0x4ec] ss:$16 sps:$4 sm:$0xff]   ;;  %v12601_v43 = vld [vmem:[%s17942_s3 + $0x4e0] ss:$16 sps:$4 sm:$0xff]   ;;  %v12609_v57 = vld [vmem:[%s17942_s3 + $0x504] ss:$16 sps:$4 sm:$0xff]  }
 0x3e8   : > { %v3595_v9 = vadd.f32 %v15437_v11, %v3542_v42  ;;  %6812 = vmatprep.mubr.bf16.mxu1 %v15178_v51  ;;  %6838 = vmatpush1.bf16.msra.mxu1 %v12571_v36  ;;  %v12588_v11 = vld [vmem:[%s17942_s3 + $0x48c] ss:$16 sps:$4 sm:$0xff]   ;;  %v12604_v36 = vld [vmem:[%s17942_s3 + $0x4e8] ss:$16 sps:$4 sm:$0xff]   ;;  %v12607_v10 = vld [vmem:[%s17942_s3 + $0x500] ss:$16 sps:$4 sm:$0xff]  }
 0x3e9   : > { %v3596_v38 = vadd.f32 %v15442_v33, %v3543_v56  ;;  %7396 = vmatprep.mubr.bf16.mxu0 %v15178_v51  ;;  %7422 = vmatpush1.bf16.msra.mxu0 %v12574_v4  ;;  %v12583_v33 = vld [vmem:[%s17942_s3 + $0x480] ss:$16 sps:$4 sm:$0xff]   ;;  %v12612_v4 = vld [vmem:[%s17942_s3 + $0x50c] ss:$16 sps:$4 sm:$0xff]  }
 0x3ea   : > { %v3631_v23 = vmax.f32 %v3595_v9, 0.0  ;;  %6839 = vmatprep.subr.bf16.mxu1 %v12579_v24  ;;  %7423 = vmatprep.subr.bf16.mxu0 %v12582_v49  ;;  %v12618_v5 = vld [vmem:[%s17942_s3 + $0x52c] ss:$16 sps:$4 sm:$0xff]   ;;  %v12613_v42 = vld [vmem:[%s17942_s3 + $0x520] ss:$16 sps:$4 sm:$0xff]  }
 0x3eb   : > { %v3632_v25 = vmax.f32 %v3596_v38, 0.0  ;;  %v12616_v24 = vld [vmem:[%s17942_s3 + $0x528] ss:$16 sps:$4 sm:$0xff]   ;;  %v12621_v49 = vld [vmem:[%s17942_s3 + $0x544] ss:$16 sps:$4 sm:$0xff]  }
 0x3ec   : > { %6840 = vmatpush1.bf16.msra.mxu1 %v12577_v3  ;;  %v15839_v2 = vpack.c.bf16 %v3631_v23, %v3628_v21  ;;  %v12597_v21 = vld [vmem:[%s17942_s3 + $0x4c4] ss:$16 sps:$4 sm:$0xff]   ;;  %v12624_v56 = vld [vmem:[%s17942_s3 + $0x54c] ss:$16 sps:$4 sm:$0xff]   ;;  %v12619_v9 = vld [vmem:[%s17942_s3 + $0x540] ss:$16 sps:$4 sm:$0xff]  }
 0x3ed   : > { %7424 = vmatpush1.bf16.msra.mxu0 %v12580_v6  ;;  %6841 = vmatprep.subr.bf16.mxu1 %v12585_v7  ;;  %v15844_v19 = vpack.c.bf16 %v3632_v25, %v3629_v37  ;;  %v12598_v37 = vld [vmem:[%s17942_s3 + $0x4c8] ss:$16 sps:$4 sm:$0xff]   ;;  %v12627_v38 = vld [vmem:[%s17942_s3 + $0x564] ss:$16 sps:$4 sm:$0xff]   ;;  %v12630_v6 = vld [vmem:[%s17942_s3 + $0x56c] ss:$16 sps:$4 sm:$0xff]  }
 0x3ee   : > { %7425 = vmatprep.subr.bf16.mxu0 %v12588_v11  ;;  %v12622_v3 = vld [vmem:[%s17942_s3 + $0x548] ss:$16 sps:$4 sm:$0xff]   ;;  %v12625_v7 = vld [vmem:[%s17942_s3 + $0x560] ss:$16 sps:$4 sm:$0xff]   ;;  %v12633_v11 = vld [vmem:[%s17942_s3 + $0x584] ss:$16 sps:$4 sm:$0xff]  }
 0x3ef   : > { %6813 = vmatmul.mubr.bf16.gmra.mrb[56].mxu1 %v15610_v1  ;;  %7397 = vmatmul.mubr.bf16.gmra.mrb[152].mxu0 %v15610_v1  ;;  %v12628_v23 = vld [vmem:[%s17942_s3 + $0x568] ss:$16 sps:$4 sm:$0xff]   ;;  %v12636_v25 = vld [vmem:[%s17942_s3 + $0x58c] ss:$16 sps:$4 sm:$0xff]  }
 0x3f0   : > { %6822 = vmatprep.mubr.bf16.mxu1 %v15247_v53  ;;  %6842 = vmatpush1.bf16.msra.mxu1 %v12583_v33  ;;  %v12631_v33 = vld [vmem:[%s17942_s3 + $0x580] ss:$16 sps:$4 sm:$0xff]  }
 0x3f1   : > { %7406 = vmatprep.mubr.bf16.mxu0 %v15247_v53  ;;  %7426 = vmatpush1.bf16.msra.mxu0 %v12586_v47  ;;  %v12634_v47 = vld [vmem:[%s17942_s3 + $0x588] ss:$16 sps:$4 sm:$0xff]  }
 0x3f2   : > { %6843 = vmatprep.subr.bf16.mxu1 %v12591_v17  ;;  %7427 = vmatprep.subr.bf16.mxu0 %v12594_v0  ;;  %v12639_v17 = vld [vmem:[%s17942_s3 + $0x5a4] ss:$16 sps:$4 sm:$0xff]   ;;  %v12642_v0 = vld [vmem:[%s17942_s3 + $0x5ac] ss:$16 sps:$4 sm:$0xff]  }
 0x3f4   : > { %6844 = vmatpush1.bf16.msra.mxu1 %v12589_v39  ;;  %v12637_v39 = vld [vmem:[%s17942_s3 + $0x5a0] ss:$16 sps:$4 sm:$0xff]  }
 0x3f5   : > { %7428 = vmatpush1.bf16.msra.mxu0 %v12592_v14  ;;  %6845 = vmatprep.subr.bf16.mxu1 %v12597_v21  ;;  %v12640_v14 = vld [vmem:[%s17942_s3 + $0x5a8] ss:$16 sps:$4 sm:$0xff]   ;;  %v12645_v21 = vld [vmem:[%s17942_s3 + $0x5c4] ss:$16 sps:$4 sm:$0xff]  }
 0x3f6   : > { %7429 = vmatprep.subr.bf16.mxu0 %v12600_v15  ;;  %v12648_v15 = vld [vmem:[%s17942_s3 + $0x5cc] ss:$16 sps:$4 sm:$0xff]  }
 0x3f7   : > { %6823 = vmatmul.mubr.bf16.gmra.mrb[60].mxu1 %v15686_v63  ;;  %7407 = vmatmul.mubr.bf16.gmra.mrb[156].mxu0 %v15686_v63 }
 0x3f8   : > { %6846 = vmatpush1.bf16.msra.mxu1 %v12595_v46  ;;  %6865 = vmatprep.mubr.bf16.mxu1 %v15504_v54  ;;  %v12643_v46 = vld [vmem:[%s17942_s3 + $0x5c0] ss:$16 sps:$4 sm:$0xff]  }
 0x3f9   : > { %7430 = vmatpush1.bf16.msra.mxu0 %v12598_v37  ;;  %7449 = vmatprep.mubr.bf16.mxu0 %v15504_v54  ;;  %v12610_v54 = vld [vmem:[%s17942_s3 + $0x508] ss:$16 sps:$4 sm:$0xff]  }
 0x3fa   : > { %6847 = vmatprep.subr.bf16.mxu1 %v12603_v62  ;;  %7431 = vmatprep.subr.bf16.mxu0 %v12606_v29  ;;  %v12646_v37 = vld [vmem:[%s17942_s3 + $0x5c8] ss:$16 sps:$4 sm:$0xff]   ;;  %v12651_v62 = vld [vmem:[%s17942_s3 + $0x5e4] ss:$16 sps:$4 sm:$0xff]   ;;  %v12654_v29 = vld [vmem:[%s17942_s3 + $0x5ec] ss:$16 sps:$4 sm:$0xff]  }
 0x3fc   : > { %6848 = vmatpush1.bf16.msra.mxu1 %v12601_v43  ;;  %v12649_v43 = vld [vmem:[%s17942_s3 + $0x5e0] ss:$16 sps:$4 sm:$0xff]  }
 0x3fd   : > { %7432 = vmatpush1.bf16.msra.mxu0 %v12604_v36  ;;  %6849 = vmatprep.subr.bf16.mxu1 %v12609_v57  ;;  %v12652_v36 = vld [vmem:[%s17942_s3 + $0x5e8] ss:$16 sps:$4 sm:$0xff]   ;;  %v12657_v57 = vld [vmem:[%s17942_s3 + $0x604] ss:$16 sps:$4 sm:$0xff]  }
 0x3fe   : > { %7433 = vmatprep.subr.bf16.mxu0 %v12612_v4  ;;  %v12660_v4 = vld [vmem:[%s17942_s3 + $0x60c] ss:$16 sps:$4 sm:$0xff]  }
 0x400   : > { %6850 = vmatpush1.bf16.msra.mxu1 %v12607_v10  ;;  %v12655_v10 = vld [vmem:[%s17942_s3 + $0x600] ss:$16 sps:$4 sm:$0xff]  }
 0x401   : > { %7434 = vmatpush1.bf16.msra.mxu0 %v12610_v54  ;;  %6851 = vmatprep.subr.bf16.mxu1 %v12615_v40  ;;  %v12658_v54 = vld [vmem:[%s17942_s3 + $0x608] ss:$16 sps:$4 sm:$0xff]   ;;  %v12663_v40 = vld [vmem:[%s17942_s3 + $0x624] ss:$16 sps:$4 sm:$0xff]  }
 0x402   : > { %7435 = vmatprep.subr.bf16.mxu0 %v12618_v5  ;;  %v12666_v5 = vld [vmem:[%s17942_s3 + $0x62c] ss:$16 sps:$4 sm:$0xff]  }
 0x404   : > { %6852 = vmatpush1.bf16.msra.mxu1 %v12613_v42  ;;  %v12661_v42 = vld [vmem:[%s17942_s3 + $0x620] ss:$16 sps:$4 sm:$0xff]  }
 0x405   : > { %7436 = vmatpush1.bf16.msra.mxu0 %v12616_v24  ;;  %6853 = vmatprep.subr.bf16.mxu1 %v12621_v49  ;;  %v12664_v24 = vld [vmem:[%s17942_s3 + $0x628] ss:$16 sps:$4 sm:$0xff]   ;;  %v12669_v49 = vld [vmem:[%s17942_s3 + $0x644] ss:$16 sps:$4 sm:$0xff]  }
 0x406   : > { %7437 = vmatprep.subr.bf16.mxu0 %v12624_v56  ;;  %v12667_v56 = vld [vmem:[%s17942_s3 + $0x640] ss:$16 sps:$4 sm:$0xff]  }
 0x408   : > { %6854 = vmatpush1.bf16.msra.mxu1 %v12619_v9  ;;  %v12670_v9 = vld [vmem:[%s17942_s3 + $0x648] ss:$16 sps:$4 sm:$0xff]  }
 0x409   : > { %7438 = vmatpush1.bf16.msra.mxu0 %v12622_v3  ;;  %6855 = vmatprep.subr.bf16.mxu1 %v12627_v38  ;;  %v12675_v3 = vld [vmem:[%s17942_s3 + $0x664] ss:$16 sps:$4 sm:$0xff]   ;;  %v12678_v38 = vld [vmem:[%s17942_s3 + $0x66c] ss:$16 sps:$4 sm:$0xff]  }
 0x40a   : > { %7439 = vmatprep.subr.bf16.mxu0 %v12630_v6  ;;  %v12673_v6 = vld [vmem:[%s17942_s3 + $0x660] ss:$16 sps:$4 sm:$0xff]  }
 0x40c   : > { %6856 = vmatpush1.bf16.msra.mxu1 %v12625_v7  ;;  %v12676_v7 = vld [vmem:[%s17942_s3 + $0x668] ss:$16 sps:$4 sm:$0xff]  }
 0x40d   : > { %7440 = vmatpush1.bf16.msra.mxu0 %v12628_v23  ;;  %6857 = vmatprep.subr.bf16.mxu1 %v12633_v11  ;;  %v12681_v23 = vld [vmem:[%s17942_s3 + $0x684] ss:$16 sps:$4 sm:$0xff]   ;;  %v12684_v11 = vld [vmem:[%s17942_s3 + $0x68c] ss:$16 sps:$4 sm:$0xff]  }
 0x40e   : > { %7441 = vmatprep.subr.bf16.mxu0 %v12636_v25  ;;  %v12679_v25 = vld [vmem:[%s17942_s3 + $0x680] ss:$16 sps:$4 sm:$0xff]  }
 0x410   : > { %6858 = vmatpush1.bf16.msra.mxu1 %v12631_v33  ;;  %v12682_v33 = vld [vmem:[%s17942_s3 + $0x688] ss:$16 sps:$4 sm:$0xff]  }
 0x411   : > { %7442 = vmatpush1.bf16.msra.mxu0 %v12634_v47  ;;  %6859 = vmatprep.subr.bf16.mxu1 %v12639_v17  ;;  %v12687_v47 = vld [vmem:[%s17942_s3 + $0x6a4] ss:$16 sps:$4 sm:$0xff]   ;;  %v12690_v17 = vld [vmem:[%s17942_s3 + $0x6ac] ss:$16 sps:$4 sm:$0xff]  }
 0x412   : > { %7443 = vmatprep.subr.bf16.mxu0 %v12642_v0  ;;  %v12685_v0 = vld [vmem:[%s17942_s3 + $0x6a0] ss:$16 sps:$4 sm:$0xff]  }
 0x414   : > { %6860 = vmatpush1.bf16.msra.mxu1 %v12637_v39  ;;  %v12688_v39 = vld [vmem:[%s17942_s3 + $0x6a8] ss:$16 sps:$4 sm:$0xff]  }
 0x415   : > { %7444 = vmatpush1.bf16.msra.mxu0 %v12640_v14  ;;  %6861 = vmatprep.subr.bf16.mxu1 %v12645_v21  ;;  %v12693_v14 = vld [vmem:[%s17942_s3 + $0x6c4] ss:$16 sps:$4 sm:$0xff]   ;;  %v12696_v21 = vld [vmem:[%s17942_s3 + $0x6cc] ss:$16 sps:$4 sm:$0xff]  }
 0x416   : > { %7445 = vmatprep.subr.bf16.mxu0 %v12648_v15  ;;  %v12691_v15 = vld [vmem:[%s17942_s3 + $0x6c0] ss:$16 sps:$4 sm:$0xff]  }
 0x418   : > { %6862 = vmatpush1.bf16.msra.mxu1 %v12643_v46  ;;  %v12694_v46 = vld [vmem:[%s17942_s3 + $0x6c8] ss:$16 sps:$4 sm:$0xff]  }
 0x419   : > { %7446 = vmatpush1.bf16.msra.mxu0 %v12646_v37  ;;  %6863 = vmatprep.subr.bf16.mxu1 %v12651_v62  ;;  %v12699_v37 = vld [vmem:[%s17942_s3 + $0x6e4] ss:$16 sps:$4 sm:$0xff]   ;;  %v12702_v62 = vld [vmem:[%s17942_s3 + $0x6ec] ss:$16 sps:$4 sm:$0xff]  }
 0x41a   : > { %7447 = vmatprep.subr.bf16.mxu0 %v12654_v29  ;;  %v12697_v29 = vld [vmem:[%s17942_s3 + $0x6e0] ss:$16 sps:$4 sm:$0xff]  }
 0x41c   : > { %6864 = vmatpush1.bf16.msra.mxu1 %v12649_v43  ;;  %v12700_v43 = vld [vmem:[%s17942_s3 + $0x6e8] ss:$16 sps:$4 sm:$0xff]  }
 0x41d   : > { %7448 = vmatpush1.bf16.msra.mxu0 %v12652_v36  ;;  %6906 = vmatprep.subr.bf16.mxu1 %v12657_v57  ;;  %v12705_v36 = vld [vmem:[%s17942_s3 + $0x704] ss:$16 sps:$4 sm:$0xff]   ;;  %v12708_v57 = vld [vmem:[%s17942_s3 + $0x70c] ss:$16 sps:$4 sm:$0xff]  }
 0x41e   : > { %7490 = vmatprep.subr.bf16.mxu0 %v12660_v4  ;;  %v12706_v4 = vld [vmem:[%s17942_s3 + $0x708] ss:$16 sps:$4 sm:$0xff]  }
 0x41f   : > { %6866 = vmatmul.mubr.bf16.vlgmr.msra.gmra.mrb[48].mxu1 %v15490_v44 }
 0x420   : > { %7450 = vmatmul.mubr.bf16.vlgmr.msra.gmra.mrb[144].mxu0 %v15490_v44  ;;  %6875 = vmatprep.mubr.bf16.mxu1 %v15574_v52  ;;  %v12672_v44 = vld [vmem:[%s17942_s3 + $0x64c] ss:$16 sps:$4 sm:$0xff]  }
 0x421   : > { %6907 = vmatpush1.bf16.msra.mxu1 %v12655_v10  ;;  %7459 = vmatprep.mubr.bf16.mxu0 %v15574_v52  ;;  %v12711_v10 = vld [vmem:[%s17942_s3 + $0x724] ss:$16 sps:$4 sm:$0xff]  }
 0x422   : > { %7491 = vmatpush1.bf16.msra.mxu0 %v12658_v54  ;;  %6908 = vmatprep.subr.bf16.mxu1 %v12663_v40  ;;  %v12714_v54 = vld [vmem:[%s17942_s3 + $0x72c] ss:$16 sps:$4 sm:$0xff]   ;;  %v12709_v40 = vld [vmem:[%s17942_s3 + $0x720] ss:$16 sps:$4 sm:$0xff]  }
 0x423   : > { %7492 = vmatprep.subr.bf16.mxu0 %v12666_v5  ;;  %v12712_v5 = vld [vmem:[%s17942_s3 + $0x728] ss:$16 sps:$4 sm:$0xff]  }
 0x425   : > { %6909 = vmatpush1.bf16.msra.mxu1 %v12661_v42  ;;  %v12717_v42 = vld [vmem:[%s17942_s3 + $0x744] ss:$16 sps:$4 sm:$0xff]  }
 0x426   : > { %7493 = vmatpush1.bf16.msra.mxu0 %v12664_v24  ;;  %6910 = vmatprep.subr.bf16.mxu1 %v12669_v49  ;;  %v12720_v24 = vld [vmem:[%s17942_s3 + $0x74c] ss:$16 sps:$4 sm:$0xff]   ;;  %v12715_v49 = vld [vmem:[%s17942_s3 + $0x740] ss:$16 sps:$4 sm:$0xff]  }
 0x427   : > { %6876 = vmatmul.mubr.bf16.gmra.mrb[52].mxu1 %v15566_v12  ;;  %7494 = vmatprep.subr.bf16.mxu0 %v12672_v44  ;;  %v12718_v44 = vld [vmem:[%s17942_s3 + $0x748] ss:$16 sps:$4 sm:$0xff]  }
 0x428   : > { %7460 = vmatmul.mubr.bf16.gmra.mrb[148].mxu0 %v15566_v12  ;;  %6885 = vmatprep.mubr.bf16.mxu1 %v15650_v58 }
 0x429   : > { %6911 = vmatpush1.bf16.msra.mxu1 %v12667_v56  ;;  %7469 = vmatprep.mubr.bf16.mxu0 %v15650_v58  ;;  %v12723_v56 = vld [vmem:[%s17942_s3 + $0x764] ss:$16 sps:$4 sm:$0xff]  }
 0x42a   : > { %7495 = vmatpush1.bf16.msra.mxu0 %v12670_v9  ;;  %6912 = vmatprep.subr.bf16.mxu1 %v12675_v3  ;;  %v12726_v9 = vld [vmem:[%s17942_s3 + $0x76c] ss:$16 sps:$4 sm:$0xff]   ;;  %v12721_v3 = vld [vmem:[%s17942_s3 + $0x760] ss:$16 sps:$4 sm:$0xff]  }
 0x42b   : > { %7496 = vmatprep.subr.bf16.mxu0 %v12678_v38  ;;  %v12724_v38 = vld [vmem:[%s17942_s3 + $0x768] ss:$16 sps:$4 sm:$0xff]  }
 0x42d   : > { %6913 = vmatpush1.bf16.msra.mxu1 %v12673_v6  ;;  %v12729_v6 = vld [vmem:[%s17942_s3 + $0x784] ss:$16 sps:$4 sm:$0xff]  }
 0x42e   : > { %7497 = vmatpush1.bf16.msra.mxu0 %v12676_v7  ;;  %6914 = vmatprep.subr.bf16.mxu1 %v12681_v23  ;;  %v12732_v7 = vld [vmem:[%s17942_s3 + $0x78c] ss:$16 sps:$4 sm:$0xff]   ;;  %v12727_v23 = vld [vmem:[%s17942_s3 + $0x780] ss:$16 sps:$4 sm:$0xff]  }
 0x42f   : > { %6886 = vmatmul.mubr.bf16.gmra.mrb[56].mxu1 %v15642_v20  ;;  %7498 = vmatprep.subr.bf16.mxu0 %v12684_v11  ;;  %v12730_v11 = vld [vmem:[%s17942_s3 + $0x788] ss:$16 sps:$4 sm:$0xff]  }
 0x430   : > { %7470 = vmatmul.mubr.bf16.gmra.mrb[152].mxu0 %v15642_v20  ;;  %6895 = vmatprep.mubr.bf16.mxu1 %v15728_v45 }
 0x431   : > { %6915 = vmatpush1.bf16.msra.mxu1 %v12679_v25  ;;  %7479 = vmatprep.mubr.bf16.mxu0 %v15728_v45  ;;  %v12735_v25 = vld [vmem:[%s17942_s3 + $0x7a4] ss:$16 sps:$4 sm:$0xff]  }
 0x432   : > { %7499 = vmatpush1.bf16.msra.mxu0 %v12682_v33  ;;  %6916 = vmatprep.subr.bf16.mxu1 %v12687_v47  ;;  %v12738_v33 = vld [vmem:[%s17942_s3 + $0x7ac] ss:$16 sps:$4 sm:$0xff]   ;;  %v12733_v47 = vld [vmem:[%s17942_s3 + $0x7a0] ss:$16 sps:$4 sm:$0xff]  }
 0x433   : > { %7500 = vmatprep.subr.bf16.mxu0 %v12690_v17  ;;  %v12736_v17 = vld [vmem:[%s17942_s3 + $0x7a8] ss:$16 sps:$4 sm:$0xff]  }
 0x435   : > { %6917 = vmatpush1.bf16.msra.mxu1 %v12685_v0  ;;  %v12741_v0 = vld [vmem:[%s17942_s3 + $0x7c4] ss:$16 sps:$4 sm:$0xff]  }
 0x436   : > { %7501 = vmatpush1.bf16.msra.mxu0 %v12688_v39  ;;  %6918 = vmatprep.subr.bf16.mxu1 %v12693_v14  ;;  %v12744_v39 = vld [vmem:[%s17942_s3 + $0x7cc] ss:$16 sps:$4 sm:$0xff]   ;;  %v12739_v14 = vld [vmem:[%s17942_s3 + $0x7c0] ss:$16 sps:$4 sm:$0xff]  }
 0x437   : > { %6896 = vmatmul.mubr.bf16.gmra.mrb[60].mxu1 %v15720_v59  ;;  %7502 = vmatprep.subr.bf16.mxu0 %v12696_v21  ;;  %v12742_v21 = vld [vmem:[%s17942_s3 + $0x7c8] ss:$16 sps:$4 sm:$0xff]  }
 0x438   : > { %7480 = vmatmul.mubr.bf16.gmra.mrb[156].mxu0 %v15720_v59  ;;  %6938 = vmatprep.mubr.bf16.mxu1 %v15526_v34 }
 0x439   : > { %6919 = vmatpush1.bf16.msra.mxu1 %v12691_v15  ;;  %7522 = vmatprep.mubr.bf16.mxu0 %v15526_v34  ;;  %v12703_v34 = vld [vmem:[%s17942_s3 + $0x700] ss:$16 sps:$4 sm:$0xff]   ;;  %v12747_v15 = vld [vmem:[%s17942_s3 + $0x7e4] ss:$16 sps:$4 sm:$0xff]  }
 0x43a   : > { %7503 = vmatpush1.bf16.msra.mxu0 %v12694_v46  ;;  %6920 = vmatprep.subr.bf16.mxu1 %v12699_v37  ;;  %v12750_v46 = vld [vmem:[%s17942_s3 + $0x7ec] ss:$16 sps:$4 sm:$0xff]   ;;  %v12745_v37 = vld [vmem:[%s17942_s3 + $0x7e0] ss:$16 sps:$4 sm:$0xff]  }
 0x43b   : > { %7504 = vmatprep.subr.bf16.mxu0 %v12702_v62  ;;  %v12748_v62 = vld [vmem:[%s17942_s3 + $0x7e8] ss:$16 sps:$4 sm:$0xff]  }
 0x43d   : > { %6921 = vmatpush1.bf16.msra.mxu1 %v12697_v29  ;;  %v12753_v29 = vld [vmem:[%s17942_s3 + $0x804] ss:$16 sps:$4 sm:$0xff]  }
 0x43e   : > { %7505 = vmatpush1.bf16.msra.mxu0 %v12700_v43  ;;  %6922 = vmatprep.subr.bf16.mxu1 %v12705_v36  ;;  %v12756_v43 = vld [vmem:[%s17942_s3 + $0x80c] ss:$16 sps:$4 sm:$0xff]   ;;  %v12751_v36 = vld [vmem:[%s17942_s3 + $0x800] ss:$16 sps:$4 sm:$0xff]  }
 0x43f   : > { %7506 = vmatprep.subr.bf16.mxu0 %v12708_v57  ;;  %v12754_v57 = vld [vmem:[%s17942_s3 + $0x808] ss:$16 sps:$4 sm:$0xff]  }
 0x441   : > { %6923 = vmatpush1.bf16.msra.mxu1 %v12703_v34  ;;  %v12759_v34 = vld [vmem:[%s17942_s3 + $0x824] ss:$16 sps:$4 sm:$0xff]  }
 0x442   : > { %7507 = vmatpush1.bf16.msra.mxu0 %v12706_v4  ;;  %6924 = vmatprep.subr.bf16.mxu1 %v12711_v10  ;;  %v12762_v4 = vld [vmem:[%s17942_s3 + $0x82c] ss:$16 sps:$4 sm:$0xff]   ;;  %v12757_v10 = vld [vmem:[%s17942_s3 + $0x820] ss:$16 sps:$4 sm:$0xff]  }
 0x443   : > { %7508 = vmatprep.subr.bf16.mxu0 %v12714_v54  ;;  %v12760_v54 = vld [vmem:[%s17942_s3 + $0x828] ss:$16 sps:$4 sm:$0xff]  }
 0x445   : > { %6925 = vmatpush1.bf16.msra.mxu1 %v12709_v40  ;;  %v12765_v40 = vld [vmem:[%s17942_s3 + $0x844] ss:$16 sps:$4 sm:$0xff]  }
 0x446   : > { %7509 = vmatpush1.bf16.msra.mxu0 %v12712_v5  ;;  %6926 = vmatprep.subr.bf16.mxu1 %v12717_v42  ;;  %v12763_v5 = vld [vmem:[%s17942_s3 + $0x840] ss:$16 sps:$4 sm:$0xff]   ;;  %v12766_v42 = vld [vmem:[%s17942_s3 + $0x848] ss:$16 sps:$4 sm:$0xff]  }
 0x447   : > { %7510 = vmatprep.subr.bf16.mxu0 %v12720_v24  ;;  %v12771_v24 = vld [vmem:[%s17942_s3 + $0x864] ss:$16 sps:$4 sm:$0xff]  }
 0x449   : > { %6927 = vmatpush1.bf16.msra.mxu1 %v12715_v49  ;;  %v12774_v49 = vld [vmem:[%s17942_s3 + $0x86c] ss:$16 sps:$4 sm:$0xff]  }
 0x44a   : > { %7511 = vmatpush1.bf16.msra.mxu0 %v12718_v44  ;;  %6928 = vmatprep.subr.bf16.mxu1 %v12723_v56  ;;  %v12769_v44 = vld [vmem:[%s17942_s3 + $0x860] ss:$16 sps:$4 sm:$0xff]   ;;  %v12772_v56 = vld [vmem:[%s17942_s3 + $0x868] ss:$16 sps:$4 sm:$0xff]  }
 0x44b   : > { %7512 = vmatprep.subr.bf16.mxu0 %v12726_v9  ;;  %v12777_v9 = vld [vmem:[%s17942_s3 + $0x884] ss:$16 sps:$4 sm:$0xff]  }
 0x44d   : > { %6929 = vmatpush1.bf16.msra.mxu1 %v12721_v3  ;;  %v12780_v3 = vld [vmem:[%s17942_s3 + $0x88c] ss:$16 sps:$4 sm:$0xff]  }
 0x44e   : > { %7513 = vmatpush1.bf16.msra.mxu0 %v12724_v38  ;;  %6930 = vmatprep.subr.bf16.mxu1 %v12729_v6  ;;  %v12775_v38 = vld [vmem:[%s17942_s3 + $0x880] ss:$16 sps:$4 sm:$0xff]   ;;  %v12778_v6 = vld [vmem:[%s17942_s3 + $0x888] ss:$16 sps:$4 sm:$0xff]  }
 0x44f   : > { %7514 = vmatprep.subr.bf16.mxu0 %v12732_v7  ;;  %v12783_v7 = vld [vmem:[%s17942_s3 + $0x8a4] ss:$16 sps:$4 sm:$0xff]  }
 0x451   : > { %6931 = vmatpush1.bf16.msra.mxu1 %v12727_v23  ;;  %v12786_v23 = vld [vmem:[%s17942_s3 + $0x8ac] ss:$16 sps:$4 sm:$0xff]  }
 0x452   : > { %7515 = vmatpush1.bf16.msra.mxu0 %v12730_v11  ;;  %6932 = vmatprep.subr.bf16.mxu1 %v12735_v25  ;;  %v12781_v11 = vld [vmem:[%s17942_s3 + $0x8a0] ss:$16 sps:$4 sm:$0xff]   ;;  %v12784_v25 = vld [vmem:[%s17942_s3 + $0x8a8] ss:$16 sps:$4 sm:$0xff]  }
 0x453   : > { %7516 = vmatprep.subr.bf16.mxu0 %v12738_v33  ;;  %v12789_v33 = vld [vmem:[%s17942_s3 + $0x8c4] ss:$16 sps:$4 sm:$0xff]  }
 0x455   : > { %6933 = vmatpush1.bf16.msra.mxu1 %v12733_v47  ;;  %v12792_v47 = vld [vmem:[%s17942_s3 + $0x8cc] ss:$16 sps:$4 sm:$0xff]  }
 0x456   : > { %7517 = vmatpush1.bf16.msra.mxu0 %v12736_v17  ;;  %6934 = vmatprep.subr.bf16.mxu1 %v12741_v0  ;;  %v12787_v17 = vld [vmem:[%s17942_s3 + $0x8c0] ss:$16 sps:$4 sm:$0xff]   ;;  %v12790_v0 = vld [vmem:[%s17942_s3 + $0x8c8] ss:$16 sps:$4 sm:$0xff]  }
 0x457   : > { %7518 = vmatprep.subr.bf16.mxu0 %v12744_v39  ;;  %v12795_v39 = vld [vmem:[%s17942_s3 + $0x8e4] ss:$16 sps:$4 sm:$0xff]  }
 0x459   : > { %6935 = vmatpush1.bf16.msra.mxu1 %v12739_v14  ;;  %v12798_v14 = vld [vmem:[%s17942_s3 + $0x8ec] ss:$16 sps:$4 sm:$0xff]  }
 0x45a   : > { %7519 = vmatpush1.bf16.msra.mxu0 %v12742_v21  ;;  %6936 = vmatprep.subr.bf16.mxu1 %v12747_v15  ;;  %v12793_v21 = vld [vmem:[%s17942_s3 + $0x8e0] ss:$16 sps:$4 sm:$0xff]   ;;  %v12796_v15 = vld [vmem:[%s17942_s3 + $0x8e8] ss:$16 sps:$4 sm:$0xff]  }
 0x45b   : > { %7520 = vmatprep.subr.bf16.mxu0 %v12750_v46  ;;  %v12801_v46 = vld [vmem:[%s17942_s3 + $0x904] ss:$16 sps:$4 sm:$0xff]  }
 0x45d   : > { %6937 = vmatpush1.bf16.msra.mxu1 %v12745_v37  ;;  %v12804_v37 = vld [vmem:[%s17942_s3 + $0x90c] ss:$16 sps:$4 sm:$0xff]  }
 0x45e   : > { %7521 = vmatpush1.bf16.msra.mxu0 %v12748_v62  ;;  %6979 = vmatprep.subr.bf16.mxu1 %v12753_v29  ;;  %v12802_v62 = vld [vmem:[%s17942_s3 + $0x908] ss:$16 sps:$4 sm:$0xff]   ;;  %v12807_v29 = vld [vmem:[%s17942_s3 + $0x924] ss:$16 sps:$4 sm:$0xff]  }
 0x45f   : > { %7563 = vmatprep.subr.bf16.mxu0 %v12756_v43  ;;  %v12810_v43 = vld [vmem:[%s17942_s3 + $0x92c] ss:$16 sps:$4 sm:$0xff]  }
 0x460   : > { %6939 = vmatmul.mubr.bf16.vlgmr.msra.gmra.mrb[48].mxu1 %v15088_v41 }
 0x461   : > { %7523 = vmatmul.mubr.bf16.vlgmr.msra.gmra.mrb[144].mxu0 %v15088_v41  ;;  %6948 = vmatprep.mubr.bf16.mxu1 %v15602_v60  ;;  %v12768_v41 = vld [vmem:[%s17942_s3 + $0x84c] ss:$16 sps:$4 sm:$0xff]  }
 0x462   : > { %6980 = vmatpush1.bf16.msra.mxu1 %v12751_v36  ;;  %7532 = vmatprep.mubr.bf16.mxu0 %v15602_v60  ;;  %v12805_v36 = vld [vmem:[%s17942_s3 + $0x920] ss:$16 sps:$4 sm:$0xff]  }
 0x463   : > { %7564 = vmatpush1.bf16.msra.mxu0 %v12754_v57  ;;  %6981 = vmatprep.subr.bf16.mxu1 %v12759_v34  ;;  %v12808_v57 = vld [vmem:[%s17942_s3 + $0x928] ss:$16 sps:$4 sm:$0xff]   ;;  %v12813_v34 = vld [vmem:[%s17942_s3 + $0x944] ss:$16 sps:$4 sm:$0xff]  }
 0x464   : > { %7565 = vmatprep.subr.bf16.mxu0 %v12762_v4  ;;  %v12816_v4 = vld [vmem:[%s17942_s3 + $0x94c] ss:$16 sps:$4 sm:$0xff]  }
 0x466   : > { %6982 = vmatpush1.bf16.msra.mxu1 %v12757_v10  ;;  %v12811_v10 = vld [vmem:[%s17942_s3 + $0x940] ss:$16 sps:$4 sm:$0xff]  }
 0x467   : > { %7566 = vmatpush1.bf16.msra.mxu0 %v12760_v54  ;;  %6983 = vmatprep.subr.bf16.mxu1 %v12765_v40  ;;  %v12814_v54 = vld [vmem:[%s17942_s3 + $0x948] ss:$16 sps:$4 sm:$0xff]   ;;  %v12819_v40 = vld [vmem:[%s17942_s3 + $0x964] ss:$16 sps:$4 sm:$0xff]  }
 0x468   : > { %6949 = vmatmul.mubr.bf16.gmra.mrb[52].mxu1 %v15147_v26  ;;  %7567 = vmatprep.subr.bf16.mxu0 %v12768_v41  ;;  %v12822_v41 = vld [vmem:[%s17942_s3 + $0x96c] ss:$16 sps:$4 sm:$0xff]  }
 0x469   : > { %7533 = vmatmul.mubr.bf16.gmra.mrb[148].mxu0 %v15147_v26  ;;  %6958 = vmatprep.mubr.bf16.mxu1 %v15678_v48 }
 0x46a   : > { %6984 = vmatpush1.bf16.msra.mxu1 %v12763_v5  ;;  %7542 = vmatprep.mubr.bf16.mxu0 %v15678_v48  ;;  %v12817_v5 = vld [vmem:[%s17942_s3 + $0x960] ss:$16 sps:$4 sm:$0xff]  }
 0x46b   : > { %7568 = vmatpush1.bf16.msra.mxu0 %v12766_v42  ;;  %6985 = vmatprep.subr.bf16.mxu1 %v12771_v24  ;;  %v12820_v42 = vld [vmem:[%s17942_s3 + $0x968] ss:$16 sps:$4 sm:$0xff]   ;;  %v12825_v24 = vld [vmem:[%s17942_s3 + $0x984] ss:$16 sps:$4 sm:$0xff]  }
 0x46c   : > { %7569 = vmatprep.subr.bf16.mxu0 %v12774_v49  ;;  %v12828_v49 = vld [vmem:[%s17942_s3 + $0x98c] ss:$16 sps:$4 sm:$0xff]  }
 0x46e   : > { %6986 = vmatpush1.bf16.msra.mxu1 %v12769_v44  ;;  %v12823_v44 = vld [vmem:[%s17942_s3 + $0x980] ss:$16 sps:$4 sm:$0xff]  }
 0x46f   : > { %7570 = vmatpush1.bf16.msra.mxu0 %v12772_v56  ;;  %6987 = vmatprep.subr.bf16.mxu1 %v12777_v9  ;;  %v12826_v56 = vld [vmem:[%s17942_s3 + $0x988] ss:$16 sps:$4 sm:$0xff]   ;;  %v12831_v9 = vld [vmem:[%s17942_s3 + $0x9a4] ss:$16 sps:$4 sm:$0xff]  }
 0x470   : > { %6959 = vmatmul.mubr.bf16.gmra.mrb[56].mxu1 %v15207_v32  ;;  %7571 = vmatprep.subr.bf16.mxu0 %v12780_v3  ;;  %v12834_v3 = vld [vmem:[%s17942_s3 + $0x9ac] ss:$16 sps:$4 sm:$0xff]  }
 0x471   : > { %7543 = vmatmul.mubr.bf16.gmra.mrb[152].mxu0 %v15207_v32  ;;  %6968 = vmatprep.mubr.bf16.mxu1 %v15756_v30 }
 0x472   : > { %6988 = vmatpush1.bf16.msra.mxu1 %v12775_v38  ;;  %7552 = vmatprep.mubr.bf16.mxu0 %v15756_v30  ;;  %v12829_v38 = vld [vmem:[%s17942_s3 + $0x9a0] ss:$16 sps:$4 sm:$0xff]  }
 0x473   : > { %7572 = vmatpush1.bf16.msra.mxu0 %v12778_v6  ;;  %6989 = vmatprep.subr.bf16.mxu1 %v12783_v7  ;;  %v12832_v6 = vld [vmem:[%s17942_s3 + $0x9a8] ss:$16 sps:$4 sm:$0xff]   ;;  %v12837_v7 = vld [vmem:[%s17942_s3 + $0x9c4] ss:$16 sps:$4 sm:$0xff]  }
 0x474   : > { %7573 = vmatprep.subr.bf16.mxu0 %v12786_v23  ;;  %v12840_v23 = vld [vmem:[%s17942_s3 + $0x9cc] ss:$16 sps:$4 sm:$0xff]  }
 0x476   : > { %6990 = vmatpush1.bf16.msra.mxu1 %v12781_v11  ;;  %v12835_v11 = vld [vmem:[%s17942_s3 + $0x9c0] ss:$16 sps:$4 sm:$0xff]  }
 0x477   : > { %7574 = vmatpush1.bf16.msra.mxu0 %v12784_v25  ;;  %6991 = vmatprep.subr.bf16.mxu1 %v12789_v33  ;;  %v12838_v25 = vld [vmem:[%s17942_s3 + $0x9c8] ss:$16 sps:$4 sm:$0xff]   ;;  %v12843_v33 = vld [vmem:[%s17942_s3 + $0x9e4] ss:$16 sps:$4 sm:$0xff]  }
 0x478   : > { %6969 = vmatmul.mubr.bf16.gmra.mrb[60].mxu1 %v15286_v35  ;;  %7575 = vmatprep.subr.bf16.mxu0 %v12792_v47  ;;  %v12846_v47 = vld [vmem:[%s17942_s3 + $0x9ec] ss:$16 sps:$4 sm:$0xff]  }
 0x479   : > { %7553 = vmatmul.mubr.bf16.gmra.mrb[156].mxu0 %v15286_v35  ;;  %7011 = vmatprep.mubr.bf16.mxu1 %v15118_v61 }
 0x47a   : > { %6992 = vmatpush1.bf16.msra.mxu1 %v12787_v17  ;;  %7595 = vmatprep.mubr.bf16.mxu0 %v15118_v61  ;;  %v12799_v61 = vld [vmem:[%s17942_s3 + $0x900] ss:$16 sps:$4 sm:$0xff]  }
 0x47b   : > { %7576 = vmatpush1.bf16.msra.mxu0 %v12790_v0  ;;  %6993 = vmatprep.subr.bf16.mxu1 %v12795_v39  ;;  %v12841_v17 = vld [vmem:[%s17942_s3 + $0x9e0] ss:$16 sps:$4 sm:$0xff]   ;;  %v12844_v0 = vld [vmem:[%s17942_s3 + $0x9e8] ss:$16 sps:$4 sm:$0xff]   ;;  %v12849_v39 = vld [vmem:[%s17942_s3 + $0xa04] ss:$16 sps:$4 sm:$0xff]  }
 0x47c   : > { %7577 = vmatprep.subr.bf16.mxu0 %v12798_v14  ;;  %v12852_v14 = vld [vmem:[%s17942_s3 + $0xa0c] ss:$16 sps:$4 sm:$0xff]  }
 0x47e   : > { %6994 = vmatpush1.bf16.msra.mxu1 %v12793_v21  ;;  %v12847_v21 = vld [vmem:[%s17942_s3 + $0xa00] ss:$16 sps:$4 sm:$0xff]  }
 0x47f   : > { %7578 = vmatpush1.bf16.msra.mxu0 %v12796_v15  ;;  %6995 = vmatprep.subr.bf16.mxu1 %v12801_v46  ;;  %v12850_v15 = vld [vmem:[%s17942_s3 + $0xa08] ss:$16 sps:$4 sm:$0xff]   ;;  %v12855_v46 = vld [vmem:[%s17942_s3 + $0xa24] ss:$16 sps:$4 sm:$0xff]  }
 0x480   : > { %7579 = vmatprep.subr.bf16.mxu0 %v12804_v37  ;;  %v12858_v37 = vld [vmem:[%s17942_s3 + $0xa2c] ss:$16 sps:$4 sm:$0xff]  }
 0x482   : > { %6996 = vmatpush1.bf16.msra.mxu1 %v12799_v61  ;;  %v12853_v61 = vld [vmem:[%s17942_s3 + $0xa20] ss:$16 sps:$4 sm:$0xff]  }
 0x483   : > { %7580 = vmatpush1.bf16.msra.mxu0 %v12802_v62  ;;  %6997 = vmatprep.subr.bf16.mxu1 %v12807_v29  ;;  %v12856_v62 = vld [vmem:[%s17942_s3 + $0xa28] ss:$16 sps:$4 sm:$0xff]   ;;  %v12861_v29 = vld [vmem:[%s17942_s3 + $0xa44] ss:$16 sps:$4 sm:$0xff]  }
 0x484   : > { %7581 = vmatprep.subr.bf16.mxu0 %v12810_v43  ;;  %v12862_v43 = vld [vmem:[%s17942_s3 + $0xa48] ss:$16 sps:$4 sm:$0xff]  }
 0x486   : > { %6998 = vmatpush1.bf16.msra.mxu1 %v12805_v36  ;;  %v12867_v36 = vld [vmem:[%s17942_s3 + $0xa64] ss:$16 sps:$4 sm:$0xff]  }
 0x487   : > { %7582 = vmatpush1.bf16.msra.mxu0 %v12808_v57  ;;  %6999 = vmatprep.subr.bf16.mxu1 %v12813_v34  ;;  %v12870_v57 = vld [vmem:[%s17942_s3 + $0xa6c] ss:$16 sps:$4 sm:$0xff]   ;;  %v12865_v34 = vld [vmem:[%s17942_s3 + $0xa60] ss:$16 sps:$4 sm:$0xff]  }
 0x488   : > { %7583 = vmatprep.subr.bf16.mxu0 %v12816_v4  ;;  %v12868_v4 = vld [vmem:[%s17942_s3 + $0xa68] ss:$16 sps:$4 sm:$0xff]  }
 0x48a   : > { %7000 = vmatpush1.bf16.msra.mxu1 %v12811_v10  ;;  %v12873_v10 = vld [vmem:[%s17942_s3 + $0xa84] ss:$16 sps:$4 sm:$0xff]  }
 0x48b   : > { %7584 = vmatpush1.bf16.msra.mxu0 %v12814_v54  ;;  %7001 = vmatprep.subr.bf16.mxu1 %v12819_v40  ;;  %v12876_v54 = vld [vmem:[%s17942_s3 + $0xa8c] ss:$16 sps:$4 sm:$0xff]   ;;  %v12874_v40 = vld [vmem:[%s17942_s3 + $0xa88] ss:$16 sps:$4 sm:$0xff]  }
 0x48c   : > { %7585 = vmatprep.subr.bf16.mxu0 %v12822_v41  ;;  %v12879_v41 = vld [vmem:[%s17942_s3 + $0xaa4] ss:$16 sps:$4 sm:$0xff]  }
 0x48e   : > { %7002 = vmatpush1.bf16.msra.mxu1 %v12817_v5  ;;  %v12882_v5 = vld [vmem:[%s17942_s3 + $0xaac] ss:$16 sps:$4 sm:$0xff]  }
 0x48f   : > { %7586 = vmatpush1.bf16.msra.mxu0 %v12820_v42  ;;  %7003 = vmatprep.subr.bf16.mxu1 %v12825_v24  ;;  %v12877_v42 = vld [vmem:[%s17942_s3 + $0xaa0] ss:$16 sps:$4 sm:$0xff]   ;;  %v12880_v24 = vld [vmem:[%s17942_s3 + $0xaa8] ss:$16 sps:$4 sm:$0xff]  }
 0x490   : > { %7587 = vmatprep.subr.bf16.mxu0 %v12828_v49  ;;  %v12885_v49 = vld [vmem:[%s17942_s3 + $0xac4] ss:$16 sps:$4 sm:$0xff]  }
 0x492   : > { %7004 = vmatpush1.bf16.msra.mxu1 %v12823_v44  ;;  %v12888_v44 = vld [vmem:[%s17942_s3 + $0xacc] ss:$16 sps:$4 sm:$0xff]  }
 0x493   : > { %7588 = vmatpush1.bf16.msra.mxu0 %v12826_v56  ;;  %7005 = vmatprep.subr.bf16.mxu1 %v12831_v9  ;;  %v12886_v56 = vld [vmem:[%s17942_s3 + $0xac8] ss:$16 sps:$4 sm:$0xff]   ;;  %v12891_v9 = vld [vmem:[%s17942_s3 + $0xae4] ss:$16 sps:$4 sm:$0xff]  }
 0x494   : > { %7589 = vmatprep.subr.bf16.mxu0 %v12834_v3  ;;  %v12894_v3 = vld [vmem:[%s17942_s3 + $0xaec] ss:$16 sps:$4 sm:$0xff]  }
 0x496   : > { %7006 = vmatpush1.bf16.msra.mxu1 %v12829_v38  ;;  %v12889_v38 = vld [vmem:[%s17942_s3 + $0xae0] ss:$16 sps:$4 sm:$0xff]  }
 0x497   : > { %7590 = vmatpush1.bf16.msra.mxu0 %v12832_v6  ;;  %7007 = vmatprep.subr.bf16.mxu1 %v12837_v7  ;;  %v12892_v6 = vld [vmem:[%s17942_s3 + $0xae8] ss:$16 sps:$4 sm:$0xff]   ;;  %v12897_v7 = vld [vmem:[%s17942_s3 + $0xb04] ss:$16 sps:$4 sm:$0xff]  }
 0x498   : > { %7591 = vmatprep.subr.bf16.mxu0 %v12840_v23  ;;  %v12900_v23 = vld [vmem:[%s17942_s3 + $0xb0c] ss:$16 sps:$4 sm:$0xff]  }
 0x49a   : > { %7008 = vmatpush1.bf16.msra.mxu1 %v12835_v11  ;;  %v12898_v11 = vld [vmem:[%s17942_s3 + $0xb08] ss:$16 sps:$4 sm:$0xff]  }
 0x49b   : > { %7592 = vmatpush1.bf16.msra.mxu0 %v12838_v25  ;;  %7009 = vmatprep.subr.bf16.mxu1 %v12843_v33  ;;  %v12903_v25 = vld [vmem:[%s17942_s3 + $0xb24] ss:$16 sps:$4 sm:$0xff]   ;;  %v12906_v33 = vld [vmem:[%s17942_s3 + $0xb2c] ss:$16 sps:$4 sm:$0xff]  }
 0x49c   : > { %7593 = vmatprep.subr.bf16.mxu0 %v12846_v47  ;;  %v12901_v47 = vld [vmem:[%s17942_s3 + $0xb20] ss:$16 sps:$4 sm:$0xff]  }
 0x49e   : > { %7010 = vmatpush1.bf16.msra.mxu1 %v12841_v17  ;;  %v12904_v17 = vld [vmem:[%s17942_s3 + $0xb28] ss:$16 sps:$4 sm:$0xff]  }
 0x49f   : > { %7594 = vmatpush1.bf16.msra.mxu0 %v12844_v0  ;;  %7052 = vmatprep.subr.bf16.mxu1 %v12849_v39  ;;  %v12909_v0 = vld [vmem:[%s17942_s3 + $0xb44] ss:$16 sps:$4 sm:$0xff]   ;;  %v12912_v39 = vld [vmem:[%s17942_s3 + $0xb4c] ss:$16 sps:$4 sm:$0xff]  }
 0x4a0   : > { %7636 = vmatprep.subr.bf16.mxu0 %v12852_v14  ;;  %v12907_v14 = vld [vmem:[%s17942_s3 + $0xb40] ss:$16 sps:$4 sm:$0xff]  }
 0x4a1   : > { %7012 = vmatmul.mubr.bf16.vlgmr.msra.gmra.mrb[48].mxu1 %v15534_v50 }
 0x4a2   : > { %7596 = vmatmul.mubr.bf16.vlgmr.msra.gmra.mrb[144].mxu0 %v15534_v50  ;;  %7021 = vmatprep.mubr.bf16.mxu1 %v15178_v51  ;;  %v12864_v50 = vld [vmem:[%s17942_s3 + $0xa4c] ss:$16 sps:$4 sm:$0xff]  }
 0x4a3   : > { %7053 = vmatpush1.bf16.msra.mxu1 %v12847_v21  ;;  %7605 = vmatprep.mubr.bf16.mxu0 %v15178_v51  ;;  %v12859_v51 = vld [vmem:[%s17942_s3 + $0xa40] ss:$16 sps:$4 sm:$0xff]   ;;  %v12910_v21 = vld [vmem:[%s17942_s3 + $0xb48] ss:$16 sps:$4 sm:$0xff]  }
 0x4a4   : > { %7637 = vmatpush1.bf16.msra.mxu0 %v12850_v15  ;;  %7054 = vmatprep.subr.bf16.mxu1 %v12855_v46  ;;  %v12915_v15 = vld [vmem:[%s17942_s3 + $0xb64] ss:$16 sps:$4 sm:$0xff]   ;;  %v12918_v46 = vld [vmem:[%s17942_s3 + $0xb6c] ss:$16 sps:$4 sm:$0xff]  }
 0x4a5   : > { %7638 = vmatprep.subr.bf16.mxu0 %v12858_v37  ;;  %v12913_v37 = vld [vmem:[%s17942_s3 + $0xb60] ss:$16 sps:$4 sm:$0xff]  }
 0x4a7   : > { %7055 = vmatpush1.bf16.msra.mxu1 %v12853_v61  ;;  %v12916_v61 = vld [vmem:[%s17942_s3 + $0xb68] ss:$16 sps:$4 sm:$0xff]  }
 0x4a8   : > { %7639 = vmatpush1.bf16.msra.mxu0 %v12856_v62  ;;  %7056 = vmatprep.subr.bf16.mxu1 %v12861_v29  ;;  %v12921_v62 = vld [vmem:[%s17942_s3 + $0xb84] ss:$16 sps:$4 sm:$0xff]   ;;  %v12924_v29 = vld [vmem:[%s17942_s3 + $0xb8c] ss:$16 sps:$4 sm:$0xff]  }
 0x4a9   : > { %7022 = vmatmul.mubr.bf16.gmra.mrb[52].mxu1 %v15610_v1  ;;  %7640 = vmatprep.subr.bf16.mxu0 %v12864_v50  ;;  %v12919_v50 = vld [vmem:[%s17942_s3 + $0xb80] ss:$16 sps:$4 sm:$0xff]  }
 0x4aa   : > { %7606 = vmatmul.mubr.bf16.gmra.mrb[148].mxu0 %v15610_v1  ;;  %7031 = vmatprep.mubr.bf16.mxu1 %v15247_v53 }
 0x4ab   : > { %7057 = vmatpush1.bf16.msra.mxu1 %v12859_v51  ;;  %7615 = vmatprep.mubr.bf16.mxu0 %v15247_v53  ;;  %v12871_v53 = vld [vmem:[%s17942_s3 + $0xa80] ss:$16 sps:$4 sm:$0xff]   ;;  %v12922_v51 = vld [vmem:[%s17942_s3 + $0xb88] ss:$16 sps:$4 sm:$0xff]  }
 0x4ac   : > { %7641 = vmatpush1.bf16.msra.mxu0 %v12862_v43  ;;  %7058 = vmatprep.subr.bf16.mxu1 %v12867_v36  ;;  %v12927_v43 = vld [vmem:[%s17942_s3 + $0xba4] ss:$16 sps:$4 sm:$0xff]   ;;  %v12930_v36 = vld [vmem:[%s17942_s3 + $0xbac] ss:$16 sps:$4 sm:$0xff]  }
 0x4ad   : > { %7642 = vmatprep.subr.bf16.mxu0 %v12870_v57  ;;  %v12925_v57 = vld [vmem:[%s17942_s3 + $0xba0] ss:$16 sps:$4 sm:$0xff]  }
 0x4af   : > { %7059 = vmatpush1.bf16.msra.mxu1 %v12865_v34  ;;  %v12928_v34 = vld [vmem:[%s17942_s3 + $0xba8] ss:$16 sps:$4 sm:$0xff]  }
 0x4b0   : > { %7643 = vmatpush1.bf16.msra.mxu0 %v12868_v4  ;;  %7060 = vmatprep.subr.bf16.mxu1 %v12873_v10  ;;  %v12933_v4 = vld [vmem:[%s17942_s3 + $0xbc4] ss:$16 sps:$4 sm:$0xff]   ;;  %v12936_v10 = vld [vmem:[%s17942_s3 + $0xbcc] ss:$16 sps:$4 sm:$0xff]  }
 0x4b1   : > { %7032 = vmatmul.mubr.bf16.gmra.mrb[56].mxu1 %v15686_v63  ;;  %7644 = vmatprep.subr.bf16.mxu0 %v12876_v54  ;;  %v12931_v54 = vld [vmem:[%s17942_s3 + $0xbc0] ss:$16 sps:$4 sm:$0xff]  }
 0x4b2   : > { %7616 = vmatmul.mubr.bf16.gmra.mrb[152].mxu0 %v15686_v63  ;;  %7041 = vmatprep.mubr.bf16.mxu1 %v15316_v28 }
 0x4b3   : > { %7061 = vmatpush1.bf16.msra.mxu1 %v12871_v53  ;;  %7625 = vmatprep.mubr.bf16.mxu0 %v15316_v28  ;;  %v12883_v28 = vld [vmem:[%s17942_s3 + $0xac0] ss:$16 sps:$4 sm:$0xff]   ;;  %v12934_v53 = vld [vmem:[%s17942_s3 + $0xbc8] ss:$16 sps:$4 sm:$0xff]  }
 0x4b4   : > { %7645 = vmatpush1.bf16.msra.mxu0 %v12874_v40  ;;  %7062 = vmatprep.subr.bf16.mxu1 %v12879_v41  ;;  %v12939_v40 = vld [vmem:[%s17942_s3 + $0xbe4] ss:$16 sps:$4 sm:$0xff]   ;;  %v12942_v41 = vld [vmem:[%s17942_s3 + $0xbec] ss:$16 sps:$4 sm:$0xff]  }
 0x4b5   : > { %7646 = vmatprep.subr.bf16.mxu0 %v12882_v5  ;;  %v12937_v5 = vld [vmem:[%s17942_s3 + $0xbe0] ss:$16 sps:$4 sm:$0xff]  }
 0x4b7   : > { %7063 = vmatpush1.bf16.msra.mxu1 %v12877_v42  ;;  %v12940_v42 = vld [vmem:[%s17942_s3 + $0xbe8] ss:$16 sps:$4 sm:$0xff]  }
 0x4b8   : > { %7647 = vmatpush1.bf16.msra.mxu0 %v12880_v24  ;;  %7064 = vmatprep.subr.bf16.mxu1 %v12885_v49  ;;  %v12945_v24 = vld [vmem:[%s17942_s3 + $0xc04] ss:$16 sps:$4 sm:$0xff]   ;;  %v12948_v49 = vld [vmem:[%s17942_s3 + $0xc0c] ss:$16 sps:$4 sm:$0xff]  }
 0x4b9   : > { %7042 = vmatmul.mubr.bf16.gmra.mrb[60].mxu1 %v15761_v8  ;;  %7648 = vmatprep.subr.bf16.mxu0 %v12888_v44  ;;  %v12943_v44 = vld [vmem:[%s17942_s3 + $0xc00] ss:$16 sps:$4 sm:$0xff]  }
 0x4ba   : > { %7626 = vmatmul.mubr.bf16.gmra.mrb[156].mxu0 %v15761_v8  ;;  %7084 = vmatprep.mubr.bf16.mxu1 %v15574_v52 }
 0x4bb   : > { %7065 = vmatpush1.bf16.msra.mxu1 %v12883_v28  ;;  %7668 = vmatprep.mubr.bf16.mxu0 %v15574_v52  ;;  %v12895_v52 = vld [vmem:[%s17942_s3 + $0xb00] ss:$16 sps:$4 sm:$0xff]   ;;  %v12946_v28 = vld [vmem:[%s17942_s3 + $0xc08] ss:$16 sps:$4 sm:$0xff]  }
 0x4bc   : > { %7649 = vmatpush1.bf16.msra.mxu0 %v12886_v56  ;;  %7066 = vmatprep.subr.bf16.mxu1 %v12891_v9  ;;  %v12951_v56 = vld [vmem:[%s17942_s3 + $0xc24] ss:$16 sps:$4 sm:$0xff]   ;;  %v12954_v9 = vld [vmem:[%s17942_s3 + $0xc2c] ss:$16 sps:$4 sm:$0xff]  }
 0x4bd   : > { %7650 = vmatprep.subr.bf16.mxu0 %v12894_v3  ;;  %v12949_v3 = vld [vmem:[%s17942_s3 + $0xc20] ss:$16 sps:$4 sm:$0xff]  }
 0x4bf   : > { %7067 = vmatpush1.bf16.msra.mxu1 %v12889_v38  ;;  %v12952_v38 = vld [vmem:[%s17942_s3 + $0xc28] ss:$16 sps:$4 sm:$0xff]  }
 0x4c0   : > { %7651 = vmatpush1.bf16.msra.mxu0 %v12892_v6  ;;  %7068 = vmatprep.subr.bf16.mxu1 %v12897_v7  ;;  %v12957_v6 = vld [vmem:[%s17942_s3 + $0xc44] ss:$16 sps:$4 sm:$0xff]   ;;  %v12958_v7 = vld [vmem:[%s17942_s3 + $0xc48] ss:$16 sps:$4 sm:$0xff]  }
 0x4c1   : > { %7652 = vmatprep.subr.bf16.mxu0 %v12900_v23  ;;  %v12963_v23 = vld [vmem:[%s17942_s3 + $0xc64] ss:$16 sps:$4 sm:$0xff]  }
 0x4c3   : > { %7069 = vmatpush1.bf16.msra.mxu1 %v12895_v52  ;;  %v12966_v52 = vld [vmem:[%s17942_s3 + $0xc6c] ss:$16 sps:$4 sm:$0xff]  }
 0x4c4   : > { %7653 = vmatpush1.bf16.msra.mxu0 %v12898_v11  ;;  %7070 = vmatprep.subr.bf16.mxu1 %v12903_v25  ;;  %v12961_v11 = vld [vmem:[%s17942_s3 + $0xc60] ss:$16 sps:$4 sm:$0xff]   ;;  %v12964_v25 = vld [vmem:[%s17942_s3 + $0xc68] ss:$16 sps:$4 sm:$0xff]  }
 0x4c5   : > { %7654 = vmatprep.subr.bf16.mxu0 %v12906_v33  ;;  %v12969_v33 = vld [vmem:[%s17942_s3 + $0xc84] ss:$16 sps:$4 sm:$0xff]  }
 0x4c7   : > { %7071 = vmatpush1.bf16.msra.mxu1 %v12901_v47  ;;  %v12970_v47 = vld [vmem:[%s17942_s3 + $0xc88] ss:$16 sps:$4 sm:$0xff]  }
 0x4c8   : > { %7655 = vmatpush1.bf16.msra.mxu0 %v12904_v17  ;;  %7072 = vmatprep.subr.bf16.mxu1 %v12909_v0  ;;  %v12975_v17 = vld [vmem:[%s17942_s3 + $0xca4] ss:$16 sps:$4 sm:$0xff]   ;;  %v12978_v0 = vld [vmem:[%s17942_s3 + $0xcac] ss:$16 sps:$4 sm:$0xff]  }
 0x4c9   : > { %7656 = vmatprep.subr.bf16.mxu0 %v12912_v39  ;;  %v12973_v39 = vld [vmem:[%s17942_s3 + $0xca0] ss:$16 sps:$4 sm:$0xff]  }
 0x4cb   : > { %7073 = vmatpush1.bf16.msra.mxu1 %v12907_v14  ;;  %v12976_v14 = vld [vmem:[%s17942_s3 + $0xca8] ss:$16 sps:$4 sm:$0xff]  }
 0x4cc   : > { %7657 = vmatpush1.bf16.msra.mxu0 %v12910_v21  ;;  %7074 = vmatprep.subr.bf16.mxu1 %v12915_v15  ;;  %v12981_v21 = vld [vmem:[%s17942_s3 + $0xcc4] ss:$16 sps:$4 sm:$0xff]   ;;  %v12982_v15 = vld [vmem:[%s17942_s3 + $0xcc8] ss:$16 sps:$4 sm:$0xff]  }
 0x4cd   : > { %7658 = vmatprep.subr.bf16.mxu0 %v12918_v46  ;;  %v12987_v46 = vld [vmem:[%s17942_s3 + $0xce4] ss:$16 sps:$4 sm:$0xff]  }
 0x4cf   : > { %7075 = vmatpush1.bf16.msra.mxu1 %v12913_v37  ;;  %v12990_v37 = vld [vmem:[%s17942_s3 + $0xcec] ss:$16 sps:$4 sm:$0xff]  }
 0x4d0   : > { %7659 = vmatpush1.bf16.msra.mxu0 %v12916_v61  ;;  %7076 = vmatprep.subr.bf16.mxu1 %v12921_v62  ;;  %v12985_v61 = vld [vmem:[%s17942_s3 + $0xce0] ss:$16 sps:$4 sm:$0xff]   ;;  %v12988_v62 = vld [vmem:[%s17942_s3 + $0xce8] ss:$16 sps:$4 sm:$0xff]  }
 0x4d1   : > { %7660 = vmatprep.subr.bf16.mxu0 %v12924_v29  ;;  %v12993_v29 = vld [vmem:[%s17942_s3 + $0xd04] ss:$16 sps:$4 sm:$0xff]  }
 0x4d3   : > { %7077 = vmatpush1.bf16.msra.mxu1 %v12919_v50  ;;  %v12994_v50 = vld [vmem:[%s17942_s3 + $0xd08] ss:$16 sps:$4 sm:$0xff]  }
 0x4d4   : > { %7661 = vmatpush1.bf16.msra.mxu0 %v12922_v51  ;;  %7078 = vmatprep.subr.bf16.mxu1 %v12927_v43  ;;  %v12999_v51 = vld [vmem:[%s17942_s3 + $0xd24] ss:$16 sps:$4 sm:$0xff]   ;;  %v13002_v43 = vld [vmem:[%s17942_s3 + $0xd2c] ss:$16 sps:$4 sm:$0xff]  }
 0x4d5   : > { %7662 = vmatprep.subr.bf16.mxu0 %v12930_v36  ;;  %v12997_v36 = vld [vmem:[%s17942_s3 + $0xd20] ss:$16 sps:$4 sm:$0xff]  }
 0x4d7   : > { %7079 = vmatpush1.bf16.msra.mxu1 %v12925_v57  ;;  %v13000_v57 = vld [vmem:[%s17942_s3 + $0xd28] ss:$16 sps:$4 sm:$0xff]  }
 0x4d8   : > { %7663 = vmatpush1.bf16.msra.mxu0 %v12928_v34  ;;  %7080 = vmatprep.subr.bf16.mxu1 %v12933_v4  ;;  %v13005_v34 = vld [vmem:[%s17942_s3 + $0xd44] ss:$16 sps:$4 sm:$0xff]   ;;  %v13008_v4 = vld [vmem:[%s17942_s3 + $0xd4c] ss:$16 sps:$4 sm:$0xff]  }
 0x4d9   : > { %7664 = vmatprep.subr.bf16.mxu0 %v12936_v10  ;;  %v13003_v10 = vld [vmem:[%s17942_s3 + $0xd40] ss:$16 sps:$4 sm:$0xff]  }
 0x4db   : > { %7081 = vmatpush1.bf16.msra.mxu1 %v12931_v54  ;;  %v13006_v54 = vld [vmem:[%s17942_s3 + $0xd48] ss:$16 sps:$4 sm:$0xff]  }
 0x4dc   : > { %7665 = vmatpush1.bf16.msra.mxu0 %v12934_v53  ;;  %7082 = vmatprep.subr.bf16.mxu1 %v12939_v40  ;;  %v13011_v53 = vld [vmem:[%s17942_s3 + $0xd64] ss:$16 sps:$4 sm:$0xff]   ;;  %v13014_v40 = vld [vmem:[%s17942_s3 + $0xd6c] ss:$16 sps:$4 sm:$0xff]  }
 0x4dd   : > { %7666 = vmatprep.subr.bf16.mxu0 %v12942_v41  ;;  %v13009_v41 = vld [vmem:[%s17942_s3 + $0xd60] ss:$16 sps:$4 sm:$0xff]  }
 0x4df   : > { %7083 = vmatpush1.bf16.msra.mxu1 %v12937_v5  ;;  %v13012_v5 = vld [vmem:[%s17942_s3 + $0xd68] ss:$16 sps:$4 sm:$0xff]  }
 0x4e0   : > { %7667 = vmatpush1.bf16.msra.mxu0 %v12940_v42  ;;  %7125 = vmatprep.subr.bf16.mxu1 %v12945_v24  ;;  %v13017_v42 = vld [vmem:[%s17942_s3 + $0xd84] ss:$16 sps:$4 sm:$0xff]   ;;  %v13020_v24 = vld [vmem:[%s17942_s3 + $0xd8c] ss:$16 sps:$4 sm:$0xff]  }
 0x4e1   : > { %7709 = vmatprep.subr.bf16.mxu0 %v12948_v49  ;;  %v13015_v49 = vld [vmem:[%s17942_s3 + $0xd80] ss:$16 sps:$4 sm:$0xff]  }
 0x4e2   : > { %7085 = vmatmul.mubr.bf16.vlgmr.msra.gmra.mrb[48].mxu1 %v15566_v12 }
 0x4e3   : > { %7669 = vmatmul.mubr.bf16.vlgmr.msra.gmra.mrb[144].mxu0 %v15566_v12  ;;  %7094 = vmatprep.mubr.bf16.mxu1 %v15650_v58  ;;  %v12960_v12 = vld [vmem:[%s17942_s3 + $0xc4c] ss:$16 sps:$4 sm:$0xff]  }
 0x4e4   : > { %7126 = vmatpush1.bf16.msra.mxu1 %v12943_v44  ;;  %7678 = vmatprep.mubr.bf16.mxu0 %v15650_v58  ;;  %v12955_v58 = vld [vmem:[%s17942_s3 + $0xc40] ss:$16 sps:$4 sm:$0xff]   ;;  %v13018_v44 = vld [vmem:[%s17942_s3 + $0xd88] ss:$16 sps:$4 sm:$0xff]  }
 0x4e5   : > { %7710 = vmatpush1.bf16.msra.mxu0 %v12946_v28  ;;  %7127 = vmatprep.subr.bf16.mxu1 %v12951_v56  ;;  %v13023_v28 = vld [vmem:[%s17942_s3 + $0xda4] ss:$16 sps:$4 sm:$0xff]   ;;  %v13026_v56 = vld [vmem:[%s17942_s3 + $0xdac] ss:$16 sps:$4 sm:$0xff]  }
 0x4e6   : > { %7711 = vmatprep.subr.bf16.mxu0 %v12954_v9  ;;  %v13021_v9 = vld [vmem:[%s17942_s3 + $0xda0] ss:$16 sps:$4 sm:$0xff]  }
 0x4e8   : > { %7128 = vmatpush1.bf16.msra.mxu1 %v12949_v3  ;;  %v13024_v3 = vld [vmem:[%s17942_s3 + $0xda8] ss:$16 sps:$4 sm:$0xff]  }
 0x4e9   : > { %7712 = vmatpush1.bf16.msra.mxu0 %v12952_v38  ;;  %7129 = vmatprep.subr.bf16.mxu1 %v12957_v6  ;;  %v13029_v38 = vld [vmem:[%s17942_s3 + $0xdc4] ss:$16 sps:$4 sm:$0xff]   ;;  %v13032_v6 = vld [vmem:[%s17942_s3 + $0xdcc] ss:$16 sps:$4 sm:$0xff]  }
 0x4ea   : > { %7095 = vmatmul.mubr.bf16.gmra.mrb[52].mxu1 %v15642_v20  ;;  %7713 = vmatprep.subr.bf16.mxu0 %v12960_v12  ;;  %v13027_v12 = vld [vmem:[%s17942_s3 + $0xdc0] ss:$16 sps:$4 sm:$0xff]  }
 0x4eb   : > { %7679 = vmatmul.mubr.bf16.gmra.mrb[148].mxu0 %v15642_v20  ;;  %7104 = vmatprep.mubr.bf16.mxu1 %v15728_v45  ;;  %v12972_v20 = vld [vmem:[%s17942_s3 + $0xc8c] ss:$16 sps:$4 sm:$0xff]  }
 0x4ec   : > { %7130 = vmatpush1.bf16.msra.mxu1 %v12955_v58  ;;  %7688 = vmatprep.mubr.bf16.mxu0 %v15728_v45  ;;  %v12967_v45 = vld [vmem:[%s17942_s3 + $0xc80] ss:$16 sps:$4 sm:$0xff]   ;;  %v13030_v58 = vld [vmem:[%s17942_s3 + $0xdc8] ss:$16 sps:$4 sm:$0xff]  }
 0x4ed   : > { %7714 = vmatpush1.bf16.msra.mxu0 %v12958_v7  ;;  %7131 = vmatprep.subr.bf16.mxu1 %v12963_v23  ;;  %v13035_v7 = vld [vmem:[%s17942_s3 + $0xde4] ss:$16 sps:$4 sm:$0xff]   ;;  %v13038_v23 = vld [vmem:[%s17942_s3 + $0xdec] ss:$16 sps:$4 sm:$0xff]  }
 0x4ee   : > { %7715 = vmatprep.subr.bf16.mxu0 %v12966_v52  ;;  %v13033_v52 = vld [vmem:[%s17942_s3 + $0xde0] ss:$16 sps:$4 sm:$0xff]  }
 0x4f0   : > { %7132 = vmatpush1.bf16.msra.mxu1 %v12961_v11  ;;  %v13036_v11 = vld [vmem:[%s17942_s3 + $0xde8] ss:$16 sps:$4 sm:$0xff]  }
 0x4f1   : > { %7716 = vmatpush1.bf16.msra.mxu0 %v12964_v25  ;;  %7133 = vmatprep.subr.bf16.mxu1 %v12969_v33  ;;  %v13041_v25 = vld [vmem:[%s17942_s3 + $0xe04] ss:$16 sps:$4 sm:$0xff]   ;;  %v13044_v33 = vld [vmem:[%s17942_s3 + $0xe0c] ss:$16 sps:$4 sm:$0xff]  }
 0x4f2   : > { %7105 = vmatmul.mubr.bf16.gmra.mrb[56].mxu1 %v15720_v59  ;;  %7717 = vmatprep.subr.bf16.mxu0 %v12972_v20  ;;  %v13039_v20 = vld [vmem:[%s17942_s3 + $0xe00] ss:$16 sps:$4 sm:$0xff]  }
 0x4f3   : > { %7689 = vmatmul.mubr.bf16.gmra.mrb[152].mxu0 %v15720_v59  ;;  %7114 = vmatprep.mubr.bf16.mxu1 %v15804_v18  ;;  %v12984_v59 = vld [vmem:[%s17942_s3 + $0xccc] ss:$16 sps:$4 sm:$0xff]  }
 0x4f4   : > { %7134 = vmatpush1.bf16.msra.mxu1 %v12967_v45  ;;  %7698 = vmatprep.mubr.bf16.mxu0 %v15804_v18  ;;  %v12979_v18 = vld [vmem:[%s17942_s3 + $0xcc0] ss:$16 sps:$4 sm:$0xff]   ;;  %v13042_v45 = vld [vmem:[%s17942_s3 + $0xe08] ss:$16 sps:$4 sm:$0xff]  }
 0x4f5   : > { %7718 = vmatpush1.bf16.msra.mxu0 %v12970_v47  ;;  %7135 = vmatprep.subr.bf16.mxu1 %v12975_v17  ;;  %v13047_v47 = vld [vmem:[%s17942_s3 + $0xe24] ss:$16 sps:$4 sm:$0xff]   ;;  %v13050_v17 = vld [vmem:[%s17942_s3 + $0xe2c] ss:$16 sps:$4 sm:$0xff]  }
 0x4f6   : > { %7719 = vmatprep.subr.bf16.mxu0 %v12978_v0  ;;  %v13045_v0 = vld [vmem:[%s17942_s3 + $0xe20] ss:$16 sps:$4 sm:$0xff]  }
 0x4f8   : > { %7136 = vmatpush1.bf16.msra.mxu1 %v12973_v39  ;;  %v13048_v39 = vld [vmem:[%s17942_s3 + $0xe28] ss:$16 sps:$4 sm:$0xff]  }
 0x4f9   : > { %7720 = vmatpush1.bf16.msra.mxu0 %v12976_v14  ;;  %7137 = vmatprep.subr.bf16.mxu1 %v12981_v21  ;;  %v13053_v14 = vld [vmem:[%s17942_s3 + $0xe44] ss:$16 sps:$4 sm:$0xff]   ;;  %v13054_v21 = vld [vmem:[%s17942_s3 + $0xe48] ss:$16 sps:$4 sm:$0xff]  }
 0x4fa   : > { %7115 = vmatmul.mubr.bf16.gmra.mrb[60].mxu1 %v15799_v22  ;;  %7721 = vmatprep.subr.bf16.mxu0 %v12984_v59  ;;  %v13059_v59 = vld [vmem:[%s17942_s3 + $0xe64] ss:$16 sps:$4 sm:$0xff]  }
 0x4fb   : > { %7699 = vmatmul.mubr.bf16.gmra.mrb[156].mxu0 %v15799_v22  ;;  %7157 = vmatprep.mubr.bf16.mxu1 %v15602_v60  ;;  %v12996_v22 = vld [vmem:[%s17942_s3 + $0xd0c] ss:$16 sps:$4 sm:$0xff]  }
 0x4fc   : > { %7138 = vmatpush1.bf16.msra.mxu1 %v12979_v18  ;;  %7741 = vmatprep.mubr.bf16.mxu0 %v15602_v60  ;;  %v12991_v60 = vld [vmem:[%s17942_s3 + $0xd00] ss:$16 sps:$4 sm:$0xff]   ;;  %v13062_v18 = vld [vmem:[%s17942_s3 + $0xe6c] ss:$16 sps:$4 sm:$0xff]  }
 0x4fd   : > { %7722 = vmatpush1.bf16.msra.mxu0 %v12982_v15  ;;  %7139 = vmatprep.subr.bf16.mxu1 %v12987_v46  ;;  %v13057_v15 = vld [vmem:[%s17942_s3 + $0xe60] ss:$16 sps:$4 sm:$0xff]   ;;  %v13060_v46 = vld [vmem:[%s17942_s3 + $0xe68] ss:$16 sps:$4 sm:$0xff]  }
 0x4fe   : > { %7723 = vmatprep.subr.bf16.mxu0 %v12990_v37  ;;  %v13065_v37 = vld [vmem:[%s17942_s3 + $0xe84] ss:$16 sps:$4 sm:$0xff]  }
 0x500   : > { %7140 = vmatpush1.bf16.msra.mxu1 %v12985_v61  ;;  %v13066_v61 = vld [vmem:[%s17942_s3 + $0xe88] ss:$16 sps:$4 sm:$0xff]  }
 0x501   : > { %7724 = vmatpush1.bf16.msra.mxu0 %v12988_v62  ;;  %7141 = vmatprep.subr.bf16.mxu1 %v12993_v29  ;;  %v13071_v62 = vld [vmem:[%s17942_s3 + $0xea4] ss:$16 sps:$4 sm:$0xff]   ;;  %v13074_v29 = vld [vmem:[%s17942_s3 + $0xeac] ss:$16 sps:$4 sm:$0xff]  }
 0x502   : > { %7725 = vmatprep.subr.bf16.mxu0 %v12996_v22  ;;  %v13069_v22 = vld [vmem:[%s17942_s3 + $0xea0] ss:$16 sps:$4 sm:$0xff]  }
 0x504   : > { %7142 = vmatpush1.bf16.msra.mxu1 %v12991_v60  ;;  %v13072_v60 = vld [vmem:[%s17942_s3 + $0xea8] ss:$16 sps:$4 sm:$0xff]  }
 0x505   : > { %7726 = vmatpush1.bf16.msra.mxu0 %v12994_v50  ;;  %7143 = vmatprep.subr.bf16.mxu1 %v12999_v51  ;;  %v13077_v50 = vld [vmem:[%s17942_s3 + $0xec4] ss:$16 sps:$4 sm:$0xff]   ;;  %v13078_v51 = vld [vmem:[%s17942_s3 + $0xec8] ss:$16 sps:$4 sm:$0xff]  }
 0x506   : > { %7727 = vmatprep.subr.bf16.mxu0 %v13002_v43  ;;  %v13083_v43 = vld [vmem:[%s17942_s3 + $0xee4] ss:$16 sps:$4 sm:$0xff]  }
 0x508   : > { %7144 = vmatpush1.bf16.msra.mxu1 %v12997_v36  ;;  %v13086_v36 = vld [vmem:[%s17942_s3 + $0xeec] ss:$16 sps:$4 sm:$0xff]  }
 0x509   : > { %7728 = vmatpush1.bf16.msra.mxu0 %v13000_v57  ;;  %7145 = vmatprep.subr.bf16.mxu1 %v13005_v34  ;;  %v13081_v57 = vld [vmem:[%s17942_s3 + $0xee0] ss:$16 sps:$4 sm:$0xff]   ;;  %v13084_v34 = vld [vmem:[%s17942_s3 + $0xee8] ss:$16 sps:$4 sm:$0xff]  }
 0x50a   : > { %7729 = vmatprep.subr.bf16.mxu0 %v13008_v4  ;;  %v13089_v4 = vld [vmem:[%s17944_s5 + $0x4] ss:$16 sps:$4 sm:$0xff]  }
 0x50c   : > { %7146 = vmatpush1.bf16.msra.mxu1 %v13003_v10  ;;  %v13092_v10 = vld [vmem:[%s17944_s5 + $0x24] ss:$16 sps:$4 sm:$0xff]  }
 0x50d   : > { %7730 = vmatpush1.bf16.msra.mxu0 %v13006_v54  ;;  %7147 = vmatprep.subr.bf16.mxu1 %v13011_v53  ;;  %v13090_v54 = vld [vmem:[%s17944_s5 + $0x20] ss:$16 sps:$4 sm:$0xff]   ;;  %v13095_v53 = vld [vmem:[%s17944_s5 + $0x44] ss:$16 sps:$4 sm:$0xff]  }
 0x50e   : > { %7731 = vmatprep.subr.bf16.mxu0 %v13014_v40  ;;  %v13093_v40 = vld [vmem:[%s17944_s5 + $0x40] ss:$16 sps:$4 sm:$0xff]  }
 0x510   : > { %7148 = vmatpush1.bf16.msra.mxu1 %v13009_v41  ;;  %v13096_v41 = vld [vmem:[%s17944_s5 + $0x60] ss:$16 sps:$4 sm:$0xff]  }
 0x511   : > { %7732 = vmatpush1.bf16.msra.mxu0 %v13012_v5  ;;  %7149 = vmatprep.subr.bf16.mxu1 %v13017_v42  ;;  %v13101_v5 = vld [vmem:[%s17944_s5 + $0x84] ss:$16 sps:$4 sm:$0xff]   ;;  %v13099_v42 = vld [vmem:[%s17944_s5 + $0x80] ss:$16 sps:$4 sm:$0xff]  }
 0x512   : > { %7733 = vmatprep.subr.bf16.mxu0 %v13020_v24  ;;  %v13102_v24 = vld [vmem:[%s17944_s5 + $0xa0] ss:$16 sps:$4 sm:$0xff]  }
 0x514   : > { %7150 = vmatpush1.bf16.msra.mxu1 %v13015_v49  ;;  %v13107_v49 = vld [vmem:[%s17944_s5 + $0xc4] ss:$16 sps:$4 sm:$0xff]  }
 0x515   : > { %7734 = vmatpush1.bf16.msra.mxu0 %v13018_v44  ;;  %7151 = vmatprep.subr.bf16.mxu1 %v13023_v28  ;;  %v13105_v44 = vld [vmem:[%s17944_s5 + $0xc0] ss:$16 sps:$4 sm:$0xff]   ;;  %v13113_v28 = vld [vmem:[%s17944_s5 + $0x104] ss:$16 sps:$4 sm:$0xff]  }
 0x516   : > { %7735 = vmatprep.subr.bf16.mxu0 %v13026_v56  ;;  %v13111_v56 = vld [vmem:[%s17944_s5 + $0x100] ss:$16 sps:$4 sm:$0xff]  }
 0x518   : > { %7152 = vmatpush1.bf16.msra.mxu1 %v13021_v9  ;;  %v13114_v9 = vld [vmem:[%s17944_s5 + $0x120] ss:$16 sps:$4 sm:$0xff]  }
 0x519   : > { %7736 = vmatpush1.bf16.msra.mxu0 %v13024_v3  ;;  %7153 = vmatprep.subr.bf16.mxu1 %v13029_v38  ;;  %v13119_v3 = vld [vmem:[%s17944_s5 + $0x144] ss:$16 sps:$4 sm:$0xff]   ;;  %v13117_v38 = vld [vmem:[%s17944_s5 + $0x140] ss:$16 sps:$4 sm:$0xff]  }
 0x51a   : > { %7737 = vmatprep.subr.bf16.mxu0 %v13032_v6  ;;  %v13122_v6 = vld [vmem:[%s17944_s5 + $0x164] ss:$16 sps:$4 sm:$0xff]  }
 0x51c   : > { %7154 = vmatpush1.bf16.msra.mxu1 %v13027_v12  ;;  %v13120_v12 = vld [vmem:[%s17944_s5 + $0x160] ss:$16 sps:$4 sm:$0xff]  }
 0x51d   : > { %7738 = vmatpush1.bf16.msra.mxu0 %v13030_v58  ;;  %7155 = vmatprep.subr.bf16.mxu1 %v13035_v7  ;;  %v13125_v58 = vld [vmem:[%s17944_s5 + $0x184] ss:$16 sps:$4 sm:$0xff]   ;;  %v13123_v7 = vld [vmem:[%s17944_s5 + $0x180] ss:$16 sps:$4 sm:$0xff]  }
 0x51e   : > { %7739 = vmatprep.subr.bf16.mxu0 %v13038_v23  ;;  %v13128_v23 = vld [vmem:[%s17944_s5 + $0x1a4] ss:$16 sps:$4 sm:$0xff]  }
 0x520   : > { %7156 = vmatpush1.bf16.msra.mxu1 %v13033_v52  ;;  %v13126_v52 = vld [vmem:[%s17944_s5 + $0x1a0] ss:$16 sps:$4 sm:$0xff]  }
 0x521   : > { %7740 = vmatpush1.bf16.msra.mxu0 %v13036_v11  ;;  %7198 = vmatprep.subr.bf16.mxu1 %v13041_v25  ;;  %v13131_v11 = vld [vmem:[%s17944_s5 + $0x1c4] ss:$16 sps:$4 sm:$0xff]   ;;  %v13129_v25 = vld [vmem:[%s17944_s5 + $0x1c0] ss:$16 sps:$4 sm:$0xff]  }
 0x522   : > { %7782 = vmatprep.subr.bf16.mxu0 %v13044_v33  ;;  %v13134_v33 = vld [vmem:[%s17944_s5 + $0x1e4] ss:$16 sps:$4 sm:$0xff]  }
 0x523   : > { %7158 = vmatmul.mubr.bf16.vlgmr.msra.gmra.mrb[48].mxu1 %v15147_v26 }
 0x524   : > { %7742 = vmatmul.mubr.bf16.vlgmr.msra.gmra.mrb[144].mxu0 %v15147_v26  ;;  %7167 = vmatprep.mubr.bf16.mxu1 %v15678_v48  ;;  %v13056_v26 = vld [vmem:[%s17942_s3 + $0xe4c] ss:$16 sps:$4 sm:$0xff]  }
 0x525   : > { %7199 = vmatpush1.bf16.msra.mxu1 %v13039_v20  ;;  %7751 = vmatprep.mubr.bf16.mxu0 %v15678_v48  ;;  %v13051_v48 = vld [vmem:[%s17942_s3 + $0xe40] ss:$16 sps:$4 sm:$0xff]  }
 0x526   : > { %7783 = vmatpush1.bf16.msra.mxu0 %v13042_v45  ;;  %7200 = vmatprep.subr.bf16.mxu1 %v13047_v47  ;;  %v13132_v20 = vld [vmem:[%s17944_s5 + $0x1e0] ss:$16 sps:$4 sm:$0xff]   ;;  %v13137_v45 = vld [vmem:[%s17944_s5 + $0x204] ss:$16 sps:$4 sm:$0xff]  }
 0x527   : > { %7784 = vmatprep.subr.bf16.mxu0 %v13050_v17 }
 0x529   : > { %7201 = vmatpush1.bf16.msra.mxu1 %v13045_v0 }
 0x52a   : > { %7785 = vmatpush1.bf16.msra.mxu0 %v13048_v39  ;;  %7202 = vmatprep.subr.bf16.mxu1 %v13053_v14  ;;  %v7879_v39 = vld [vmem:[%s17943_s4] sm:$0x3] }
 0x52b   : > { %7168 = vmatmul.mubr.bf16.gmra.mrb[52].mxu1 %v15207_v32  ;;  %7786 = vmatprep.subr.bf16.mxu0 %v13056_v26 }
 0x52c   : > { %7752 = vmatmul.mubr.bf16.gmra.mrb[148].mxu0 %v15207_v32  ;;  %7177 = vmatprep.mubr.bf16.mxu1 %v15756_v30  ;;  %v13068_v32 = vld [vmem:[%s17942_s3 + $0xe8c] ss:$16 sps:$4 sm:$0xff]  }
 0x52d   : > { %7203 = vmatpush1.bf16.msra.mxu1 %v13051_v48  ;;  %7761 = vmatprep.mubr.bf16.mxu0 %v15756_v30  ;;  %v13063_v30 = vld [vmem:[%s17942_s3 + $0xe80] ss:$16 sps:$4 sm:$0xff]  }
 0x52e   : > { %7787 = vmatpush1.bf16.msra.mxu0 %v13054_v21  ;;  %7204 = vmatprep.subr.bf16.mxu1 %v13059_v59 }
 0x52f   : > { %7788 = vmatprep.subr.bf16.mxu0 %v13062_v18 }
 0x531   : > { %7205 = vmatpush1.bf16.msra.mxu1 %v13057_v15  ;;  %v18157_v15 = vld [vmem:[#allocation70_spill] sm:$0xff] }
 0x532   : > { %7789 = vmatpush1.bf16.msra.mxu0 %v13060_v46  ;;  %7206 = vmatprep.subr.bf16.mxu1 %v13065_v37  ;;  %v17047_v46 = vrot.slane %v7879_v39, %v18157_v15 }
 0x533   : > { %7178 = vmatmul.mubr.bf16.gmra.mrb[56].mxu1 %v15286_v35  ;;  %7790 = vmatprep.subr.bf16.mxu0 %v13068_v32 }
 0x534   : > { %7762 = vmatmul.mubr.bf16.gmra.mrb[152].mxu0 %v15286_v35  ;;  %7187 = vmatprep.mubr.bf16.mxu1 %v15839_v2  ;;  %v13080_v35 = vld [vmem:[%s17942_s3 + $0xecc] ss:$16 sps:$4 sm:$0xff]  }
 0x535   : > { %7207 = vmatpush1.bf16.msra.mxu1 %v13063_v30  ;;  %7771 = vmatprep.mubr.bf16.mxu0 %v15839_v2  ;;  %v13075_v2 = vld [vmem:[%s17942_s3 + $0xec0] ss:$16 sps:$4 sm:$0xff]  }
 0x536   : > { %7791 = vmatpush1.bf16.msra.mxu0 %v13066_v61  ;;  %7208 = vmatprep.subr.bf16.mxu1 %v13071_v62  ;;  %v17050_v61 = vrot.slane %v7879_v39, %v15429_v31 }
 0x537   : > { %7792 = vmatprep.subr.bf16.mxu0 %v13074_v29 }
 0x539   : > { %7209 = vmatpush1.bf16.msra.mxu1 %v13069_v22 }
 0x53a   : > { %7793 = vmatpush1.bf16.msra.mxu0 %v13072_v60  ;;  %7210 = vmatprep.subr.bf16.mxu1 %v13077_v50 }
 0x53b   : > { %7188 = vmatmul.mubr.bf16.gmra.mrb[60].mxu1 %v15336_v13  ;;  %7794 = vmatprep.subr.bf16.mxu0 %v13080_v35 }
 0x53c   : > { %7772 = vmatmul.mubr.bf16.gmra.mrb[156].mxu0 %v15336_v13  ;;  %7230 = vmatprep.mubr.bf16.mxu1 %v18087_v27  ;;  %v13087_v13 = vld [vmem:[%s17944_s5] ss:$16 sps:$4 sm:$0xff]  }
 0x53d   : > { %7211 = vmatpush1.bf16.msra.mxu1 %v13075_v2  ;;  %7814 = vmatprep.mubr.bf16.mxu0 %v18087_v27 }
 0x53e   : > { %7795 = vmatpush1.bf16.msra.mxu0 %v13078_v51  ;;  %7212 = vmatprep.subr.bf16.mxu1 %v13083_v43 }
 0x53f   : > { %7796 = vmatprep.subr.bf16.mxu0 %v13086_v36 }
 0x541   : > { %7213 = vmatpush1.bf16.msra.mxu1 %v13081_v57 }
 0x542   : > { %7797 = vmatpush1.bf16.msra.mxu0 %v13084_v34  ;;  %9473 = vmatprep.subr.bf16.mxu1 %v13089_v4 }
 0x544   : > { %7231 = vmatmul.mubr.bf16.vlgmr.msra.gmra.mrb[48].mxu1 %v15610_v1 }
 0x545   : > { %7815 = vmatmul.mubr.bf16.vlgmr.msra.gmra.mrb[144].mxu0 %v15610_v1  ;;  %7240 = vmatprep.mubr.bf16.mxu1 %v18087_v27  ;;  %v13098_v1 = vld [vmem:[%s17944_s5 + $0x64] ss:$16 sps:$4 sm:$0xff]  }
 0x546   : > { %7824 = vmatprep.mubr.bf16.mxu0 %v18087_v27  ;;  %9474 = vmatpush1.bf16.msra.mxu1 %v13087_v13 }
 0x547   : > { %9475 = vmatprep.subr.bf16.mxu1 %v13092_v10 }
 0x54a   : > { %9476 = vmatpush1.bf16.msra.mxu1 %v13090_v54 }
 0x54b   : > { %9477 = vmatprep.subr.bf16.mxu1 %v13095_v53 }
 0x54c   : > { %7241 = vmatmul.mubr.bf16.gmra.mrb[52].mxu1 %v15686_v63 }
 0x54d   : > { %7825 = vmatmul.mubr.bf16.gmra.mrb[148].mxu0 %v15686_v63  ;;  %7250 = vmatprep.mubr.bf16.mxu1 %v18087_v27  ;;  %v13104_v63 = vld [vmem:[%s17944_s5 + $0xa4] ss:$16 sps:$4 sm:$0xff]  }
 0x54e   : > { %7834 = vmatprep.mubr.bf16.mxu0 %v18087_v27  ;;  %9478 = vmatpush1.bf16.msra.mxu1 %v13093_v40 }
 0x54f   : > { %9479 = vmatprep.subr.bf16.mxu1 %v13098_v1 }
 0x552   : > { %9480 = vmatpush1.bf16.msra.mxu1 %v13096_v41  ;;  %v13135_v41 = vld [vmem:[%s17944_s5 + $0x200] ss:$16 sps:$4 sm:$0xff]  }
 0x553   : > { %9481 = vmatprep.subr.bf16.mxu1 %v13101_v5 }
 0x554   : > { %7251 = vmatmul.mubr.bf16.gmra.mrb[56].mxu1 %v15761_v8 }
 0x555   : > { %7835 = vmatmul.mubr.bf16.gmra.mrb[152].mxu0 %v15761_v8  ;;  %7260 = vmatprep.mubr.bf16.mxu1 %v18087_v27  ;;  %v13108_v8 = vld [vmem:[%s17944_s5 + $0xe0] ss:$16 sps:$4 sm:$0xff]  }
 0x556   : > { %7844 = vmatprep.mubr.bf16.mxu0 %v18087_v27  ;;  %9482 = vmatpush1.bf16.msra.mxu1 %v13099_v42  ;;  %v13110_v27 = vld [vmem:[%s17944_s5 + $0xe4] ss:$16 sps:$4 sm:$0xff]  }
 0x557   : > { %9483 = vmatprep.subr.bf16.mxu1 %v13104_v63  ;;  %v13140_v63 = vld [vmem:[%s17944_s5 + $0x224] ss:$16 sps:$4 sm:$0xff]  }
 0x55a   : > { %9484 = vmatpush1.bf16.msra.mxu1 %v13102_v24 }
 0x55b   : > { %9485 = vmatprep.subr.bf16.mxu1 %v13107_v49 }
 0x55c   : > { %7261 = vmatmul.mubr.bf16.gmra.mrb[60].mxu1 %v15844_v19 }
 0x55d   : > { %7845 = vmatmul.mubr.bf16.gmra.mrb[156].mxu0 %v15844_v19  ;;  %v13116_v19 = vld [vmem:[%s17944_s5 + $0x124] ss:$16 sps:$4 sm:$0xff]  }
 0x55e   : > { %9486 = vmatpush1.bf16.msra.mxu1 %v13105_v44 }
 0x55f   : > { %9487 = vmatprep.subr.bf16.mxu1 %v13110_v27 }
 0x562   : > { %9488 = vmatpush1.bf16.msra.mxu1 %v13108_v8 }
 0x563   : > { %9489 = vmatprep.subr.bf16.mxu1 %v13113_v28 }
 0x566   : > { %9490 = vmatpush1.bf16.msra.mxu1 %v13111_v56  ;;  %v13138_v56 = vld [vmem:[%s17944_s5 + $0x220] ss:$16 sps:$4 sm:$0xff]  }
 0x567   : > { %9491 = vmatprep.subr.bf16.mxu1 %v13116_v19 }
 0x56a   : > { %9492 = vmatpush1.bf16.msra.mxu1 %v13114_v9 }
 0x56b   : > { %9493 = vmatprep.subr.bf16.mxu1 %v13119_v3  ;;  %v13143_v3 = vld [vmem:[%s17944_s5 + $0x244] ss:$16 sps:$4 sm:$0xff]  }
 0x56e   : > { %9494 = vmatpush1.bf16.msra.mxu1 %v13117_v38 }
 0x56f   : > { %9495 = vmatprep.subr.bf16.mxu1 %v13122_v6 }
 0x572   : > { %9496 = vmatpush1.bf16.msra.mxu1 %v13120_v12 }
 0x573   : > { %9497 = vmatprep.subr.bf16.mxu1 %v13125_v58 }
 0x576   : > { %9498 = vmatpush1.bf16.msra.mxu1 %v13123_v7 }
 0x577   : > { %9499 = vmatprep.subr.bf16.mxu1 %v13128_v23 }
 0x57a   : > { %9500 = vmatpush1.bf16.msra.mxu1 %v13126_v52 }
 0x57b   : > { %9501 = vmatprep.subr.bf16.mxu1 %v13131_v11 }
 0x57e   : > { %9502 = vmatpush1.bf16.msra.mxu1 %v13129_v25  ;;  %v13141_v25 = vld [vmem:[%s17944_s5 + $0x240] ss:$16 sps:$4 sm:$0xff]  }
 0x57f   : > { %9503 = vmatprep.subr.bf16.mxu1 %v13134_v33 }
 0x582   : > { %9504 = vmatpush1.bf16.msra.mxu1 %v13132_v20 }
 0x583   : > { %9514 = vmatprep.subr.bf16.mxu1 %v13137_v45  ;;  %v13146_v45 = vld [vmem:[%s17944_s5 + $0x264] ss:$16 sps:$4 sm:$0xff]  }
 0x617   : > { %v7232_v47 = vpop.f32.mrb[48].mxu1 }
 0x618   : > { %v7816_v17 = vpop.f32.mrb[144].mxu0  ;;  %v7234_v0 = vpop.f32.mrb[49].mxu1 }
 0x619   : > { %v7818_v14 = vpop.f32.mrb[145].mxu0  ;;  %v7236_v26 = vpop.f32.mrb[50].mxu1 }
 0x61a   : > { %v7855_v48 = vmax.f32 %v7232_v47, %v7236_v26  ;;  %v7820_v21 = vpop.f32.mrb[146].mxu0  ;;  %v7238_v59 = vpop.f32.mrb[51].mxu1 }
 0x61b   : > { %v7857_v18 = vmax.f32 %v7816_v17, %v7820_v21  ;;  %v7856_v37 = vmax.f32 %v7234_v0, %v7238_v59  ;;  %v7822_v32 = vpop.f32.mrb[147].mxu0 }
 0x61c   : > { %v7858_v30 = vmax.f32 %v7818_v14, %v7822_v32 }
 0x61d   : > { %v7871_v62 = vmax.f32 %v7855_v48, %v7857_v18  ;;  %v13144_v48 = vld [vmem:[%s17944_s5 + $0x260] ss:$16 sps:$4 sm:$0xff]   ;;  %v13149_v18 = vld [vmem:[%s17944_s5 + $0x284] ss:$16 sps:$4 sm:$0xff]  }
 0x61e   : > { %v7872_v29 = vmax.f32 %v7856_v37, %v7858_v30 }
 0x61f   : > { %v7891_v22 = vadd.f32 %v17047_v46, %v7871_v62  ;;  %v7242_v60 = vpop.f32.mrb[52].mxu1 }
 0x620   : > { %v7892_v50 = vadd.f32 %v17050_v61, %v7872_v29  ;;  %v7826_v35 = vpop.f32.mrb[148].mxu0  ;;  %v7244_v2 = vpop.f32.mrb[53].mxu1 }
 0x621   : > { %v7899_v51 = vmax.f32 %v7891_v22, 0.0  ;;  %v7828_v43 = vpop.f32.mrb[149].mxu0  ;;  %v7246_v36 = vpop.f32.mrb[54].mxu1 }
 0x622   : > { %v7859_v57 = vmax.f32 %v7242_v60, %v7246_v36  ;;  %v7830_v34 = vpop.f32.mrb[150].mxu0  ;;  %v7248_v4 = vpop.f32.mrb[55].mxu1  ;;  %v7900_v13 = vmax.f32 %v7892_v50, 0.0  ;;  %v13147_v50 = vld [vmem:[%s17944_s5 + $0x280] ss:$16 sps:$4 sm:$0xff]  }
 0x623   : > { %v7861_v10 = vmax.f32 %v7826_v35, %v7830_v34  ;;  %v7860_v54 = vmax.f32 %v7244_v2, %v7248_v4  ;;  %v7832_v53 = vpop.f32.mrb[151].mxu0  ;;  %v17059_v5 = vpack.c.bf16 %v7899_v51, %v7899_v51  ;;  %v13152_v2 = vld [vmem:[%s17944_s5 + $0x2a4] ss:$16 sps:$4 sm:$0xff]   ;;  %v13153_v4 = vld [vmem:[%s17944_s5 + $0x2c0] ss:$16 sps:$4 sm:$0xff]  }
 0x624   : > { %v7862_v40 = vmax.f32 %v7828_v43, %v7832_v53  ;;  %v17054_v1 = vpack.c.bf16 %v7900_v13, %v7900_v13  ;;  %v13155_v34 = vld [vmem:[%s17944_s5 + $0x2c4] ss:$16 sps:$4 sm:$0xff]   ;;  %v13162_v53 = vld [vmem:[%s17944_s5 + $0x320] ss:$16 sps:$4 sm:$0xff]  }
 0x625   : > { %v7873_v42 = vmax.f32 %v7859_v57, %v7861_v10  ;;  %v13150_v57 = vld [vmem:[%s17944_s5 + $0x2a0] ss:$16 sps:$4 sm:$0xff]   ;;  %v13161_v13 = vld [vmem:[%s17944_s5 + $0x304] ss:$16 sps:$4 sm:$0xff]  }
 0x626   : > { %v7874_v24 = vmax.f32 %v7860_v54, %v7862_v40  ;;  %9505 = vmatprep.mubr.bf16.mxu1 %v17054_v1  ;;  %v13159_v10 = vld [vmem:[%s17944_s5 + $0x300] ss:$16 sps:$4 sm:$0xff]   ;;  %v13164_v54 = vld [vmem:[%s17944_s5 + $0x324] ss:$16 sps:$4 sm:$0xff]  }
 0x627   : > { %v17066_v49 = vadd.f32 %v17047_v46, %v7873_v42  ;;  %9506 = vmatmul.mubr.bf16.vlgmr.msra.gmra.mrb[64].mxu1 %v17059_v5  ;;  %v7252_v44 = vpop.f32.mrb[56].mxu1  ;;  %v13167_v40 = vld [vmem:[%s17944_s5 + $0x344] ss:$16 sps:$4 sm:$0xff]  }
 0x628   : > { %v7894_v27 = vadd.f32 %v17050_v61, %v7874_v24  ;;  %9515 = vmatpush1.bf16.msra.mxu1 %v13135_v41  ;;  %v7836_v8 = vpop.f32.mrb[152].mxu0  ;;  %v7254_v28 = vpop.f32.mrb[57].mxu1  ;;  %v13165_v41 = vld [vmem:[%s17944_s5 + $0x340] ss:$16 sps:$4 sm:$0xff]   ;;  %v13170_v42 = vld [vmem:[%s17944_s5 + $0x364] ss:$16 sps:$4 sm:$0xff]  }
 0x629   : > { %v7838_v19 = vpop.f32.mrb[153].mxu0  ;;  %v7256_v9 = vpop.f32.mrb[58].mxu1  ;;  %9516 = vmatprep.subr.bf16.mxu1 %v13140_v63  ;;  %v13168_v63 = vld [vmem:[%s17944_s5 + $0x360] ss:$16 sps:$4 sm:$0xff]   ;;  %v13173_v24 = vld [vmem:[%s17944_s5 + $0x384] ss:$16 sps:$4 sm:$0xff]  }
 0x62a   : > { %v7863_v38 = vmax.f32 %v7252_v44, %v7256_v9  ;;  %v7840_v6 = vpop.f32.mrb[154].mxu0  ;;  %v7258_v12 = vpop.f32.mrb[59].mxu1  ;;  %v7902_v58 = vmax.f32 %v7894_v27, 0.0  ;;  %v13171_v44 = vld [vmem:[%s17944_s5 + $0x380] ss:$16 sps:$4 sm:$0xff]  }
 0x62b   : > { %v7865_v7 = vmax.f32 %v7836_v8, %v7840_v6  ;;  %v7864_v23 = vmax.f32 %v7254_v28, %v7258_v12  ;;  %v7842_v52 = vpop.f32.mrb[155].mxu0  ;;  %v13176_v27 = vld [vmem:[%s17944_s5 + $0x3a4] ss:$16 sps:$4 sm:$0xff]   ;;  %v13174_v8 = vld [vmem:[%s17944_s5 + $0x3a0] ss:$16 sps:$4 sm:$0xff]  }
 0x62c   : > { %v7866_v11 = vmax.f32 %v7838_v19, %v7842_v52  ;;  %9517 = vmatpush1.bf16.msra.mxu1 %v13138_v56  ;;  %v17079_v33 = vpack.c.bf16 %v7902_v58, %v7902_v58  ;;  %v13179_v28 = vld [vmem:[%s17944_s5 + $0x3c4] ss:$16 sps:$4 sm:$0xff]   ;;  %v13177_v56 = vld [vmem:[%s17944_s5 + $0x3c0] ss:$16 sps:$4 sm:$0xff]  }
 0x62d   : > { %v7875_v20 = vmax.f32 %v7863_v38, %v7865_v7  ;;  %9518 = vmatprep.subr.bf16.mxu1 %v13143_v3  ;;  %v13182_v19 = vld [vmem:[%s17944_s5 + $0x3e4] ss:$16 sps:$4 sm:$0xff]   ;;  %v13180_v9 = vld [vmem:[%s17944_s5 + $0x3e0] ss:$16 sps:$4 sm:$0xff]   ;;  %v7901_v3 = vmax.f32 %v17066_v49, 0.0 }
 0x62e   : > { %v7876_v47 = vmax.f32 %v7864_v23, %v7866_v11  ;;  %9546 = vmatprep.mubr.bf16.mxu1 %v17079_v33  ;;  %v13185_v38 = vld [vmem:[%s17944_s5 + $0x404] ss:$16 sps:$4 sm:$0xff]   ;;  %v13183_v12 = vld [vmem:[%s17944_s5 + $0x400] ss:$16 sps:$4 sm:$0xff]  }
 0x62f   : > { %v17086_v17 = vadd.f32 %v17047_v46, %v7875_v20  ;;  %v7262_v0 = vpop.f32.mrb[60].mxu1  ;;  %v17180_v58 = vpack.c.bf16 %v7901_v3, %v7901_v3  ;;  %v13188_v7 = vld [vmem:[%s17944_s5 + $0x424] ss:$16 sps:$4 sm:$0xff]   ;;  %v13186_v23 = vld [vmem:[%s17944_s5 + $0x420] ss:$16 sps:$4 sm:$0xff]  }
 0x630   : > { %v17089_v39 = vadd.f32 %v17050_v61, %v7876_v47  ;;  %9519 = vmatpush1.bf16.msra.mxu1 %v13141_v25  ;;  %v7846_v14 = vpop.f32.mrb[156].mxu0  ;;  %v7264_v26 = vpop.f32.mrb[61].mxu1  ;;  %v13191_v52 = vld [vmem:[%s17944_s5 + $0x444] ss:$16 sps:$4 sm:$0xff]   ;;  %v13189_v11 = vld [vmem:[%s17944_s5 + $0x440] ss:$16 sps:$4 sm:$0xff]  }
 0x631   : > { %v7848_v21 = vpop.f32.mrb[157].mxu0  ;;  %v7266_v59 = vpop.f32.mrb[62].mxu1  ;;  %9520 = vmatprep.subr.bf16.mxu1 %v13146_v45  ;;  %v13194_v25 = vld [vmem:[%s17944_s5 + $0x464] ss:$16 sps:$4 sm:$0xff]   ;;  %v13192_v20 = vld [vmem:[%s17944_s5 + $0x460] ss:$16 sps:$4 sm:$0xff]  }
 0x632   : > { %v7867_v37 = vmax.f32 %v7262_v0, %v7266_v59  ;;  %v7850_v32 = vpop.f32.mrb[158].mxu0  ;;  %v7268_v30 = vpop.f32.mrb[63].mxu1  ;;  %v7904_v6 = vmax.f32 %v17089_v39, 0.0  ;;  %v13197_v45 = vld [vmem:[%s17944_s5 + $0x484] ss:$16 sps:$4 sm:$0xff]  }
 0x633   : > { %v7869_v62 = vmax.f32 %v7846_v14, %v7850_v32  ;;  %v7868_v29 = vmax.f32 %v7264_v26, %v7268_v30  ;;  %v7852_v22 = vpop.f32.mrb[159].mxu0  ;;  %v13195_v47 = vld [vmem:[%s17944_s5 + $0x480] ss:$16 sps:$4 sm:$0xff]   ;;  %v13200_v0 = vld [vmem:[%s17944_s5 + $0x4a4] ss:$16 sps:$4 sm:$0xff]  }
 0x634   : > { %v7870_v60 = vmax.f32 %v7848_v21, %v7852_v22  ;;  %9521 = vmatpush1.bf16.msra.mxu1 %v13144_v48  ;;  %v17185_v49 = vpack.c.bf16 %v7904_v6, %v7904_v6  ;;  %v13198_v39 = vld [vmem:[%s17944_s5 + $0x4a0] ss:$16 sps:$4 sm:$0xff]   ;;  %v13203_v14 = vld [vmem:[%s17944_s5 + $0x4c4] ss:$16 sps:$4 sm:$0xff]  }
 0x635   : > { %v7877_v35 = vmax.f32 %v7867_v37, %v7869_v62  ;;  %9522 = vmatprep.subr.bf16.mxu1 %v13149_v18  ;;  %v13201_v26 = vld [vmem:[%s17944_s5 + $0x4c0] ss:$16 sps:$4 sm:$0xff]   ;;  %v13206_v48 = vld [vmem:[%s17944_s5 + $0x4e4] ss:$16 sps:$4 sm:$0xff]  }
 0x636   : > { %v7878_v51 = vmax.f32 %v7868_v29, %v7870_v60  ;;  %v13204_v21 = vld [vmem:[%s17944_s5 + $0x4e0] ss:$16 sps:$4 sm:$0xff]   ;;  %v13209_v59 = vld [vmem:[%s17944_s5 + $0x504] ss:$16 sps:$4 sm:$0xff]  }
 0x637   : > { %v17104_v43 = vadd.f32 %v17047_v46, %v7877_v35  ;;  %v13158_v46 = vld [vmem:[%s17944_s5 + $0x2e4] ss:$16 sps:$4 sm:$0xff]   ;;  %v13207_v18 = vld [vmem:[%s17944_s5 + $0x500] ss:$16 sps:$4 sm:$0xff]  }
 0x638   : > { %v17107_v36 = vadd.f32 %v17050_v61, %v7878_v51  ;;  %9523 = vmatpush1.bf16.msra.mxu1 %v13147_v50  ;;  %v13156_v61 = vld [vmem:[%s17944_s5 + $0x2e0] ss:$16 sps:$4 sm:$0xff]   ;;  %v13212_v37 = vld [vmem:[%s17944_s5 + $0x524] ss:$16 sps:$4 sm:$0xff]  }
 0x639   : > { %9524 = vmatprep.subr.bf16.mxu1 %v13152_v2  ;;  %v13210_v32 = vld [vmem:[%s17944_s5 + $0x520] ss:$16 sps:$4 sm:$0xff]   ;;  %v13215_v30 = vld [vmem:[%s17944_s5 + $0x544] ss:$16 sps:$4 sm:$0xff]  }
 0x63a   : > { %v13213_v62 = vld [vmem:[%s17944_s5 + $0x540] ss:$16 sps:$4 sm:$0xff]   ;;  %v13218_v29 = vld [vmem:[%s17944_s5 + $0x564] ss:$16 sps:$4 sm:$0xff]  }
 0x63b   : > { %v13216_v22 = vld [vmem:[%s17944_s5 + $0x560] ss:$16 sps:$4 sm:$0xff]   ;;  %v13221_v60 = vld [vmem:[%s17944_s5 + $0x584] ss:$16 sps:$4 sm:$0xff]  }
 0x63c   : > { %9525 = vmatpush1.bf16.msra.mxu1 %v13150_v57  ;;  %v13219_v50 = vld [vmem:[%s17944_s5 + $0x580] ss:$16 sps:$4 sm:$0xff]   ;;  %v13224_v35 = vld [vmem:[%s17944_s5 + $0x5a4] ss:$16 sps:$4 sm:$0xff]  }
 0x63d   : > { %9526 = vmatprep.subr.bf16.mxu1 %v13155_v34  ;;  %v13222_v2 = vld [vmem:[%s17944_s5 + $0x5a0] ss:$16 sps:$4 sm:$0xff]   ;;  %v13227_v51 = vld [vmem:[%s17944_s5 + $0x5c4] ss:$16 sps:$4 sm:$0xff]  }
 0x63e   : > { %v13225_v57 = vld [vmem:[%s17944_s5 + $0x5c0] ss:$16 sps:$4 sm:$0xff]   ;;  %v13230_v34 = vld [vmem:[%s17944_s5 + $0x5e4] ss:$16 sps:$4 sm:$0xff]  }
 0x63f   : > { %v13257_v3 = vld [vmem:[%s17944_s5 + $0x704] ss:$16 sps:$4 sm:$0xff]  }
 0x640   : > { %9527 = vmatpush1.bf16.msra.mxu1 %v13153_v4  ;;  %v13228_v4 = vld [vmem:[%s17944_s5 + $0x5e0] ss:$16 sps:$4 sm:$0xff]   ;;  %v13260_v6 = vld [vmem:[%s17944_s5 + $0x724] ss:$16 sps:$4 sm:$0xff]  }
 0x641   : > { %9528 = vmatprep.subr.bf16.mxu1 %v13158_v46  ;;  %v7903_v46 = vmax.f32 %v17086_v17, 0.0 }
 0x644   : > { %9529 = vmatpush1.bf16.msra.mxu1 %v13156_v61  ;;  %v13233_v61 = vld [vmem:[%s17944_s5 + $0x604] ss:$16 sps:$4 sm:$0xff]  }
 0x645   : > { %9530 = vmatprep.subr.bf16.mxu1 %v13161_v13  ;;  %v7906_v13 = vmax.f32 %v17107_v36, 0.0  ;;  %v13234_v36 = vld [vmem:[%s17944_s5 + $0x620] ss:$16 sps:$4 sm:$0xff]  }
 0x647   : > { %v17289_v17 = vpack.c.bf16 %v7906_v13, %v7906_v13  ;;  %v13311_v13 = vld [vmem:[%s17944_s5 + $0x14c] ss:$16 sps:$4 sm:$0xff]  }
 0x648   : > { %9531 = vmatpush1.bf16.msra.mxu1 %v13159_v10  ;;  %v13231_v10 = vld [vmem:[%s17944_s5 + $0x600] ss:$16 sps:$4 sm:$0xff]  }
 0x649   : > { %9532 = vmatprep.subr.bf16.mxu1 %v13164_v54  ;;  %v17284_v54 = vpack.c.bf16 %v7903_v46, %v7903_v46  ;;  %v13308_v46 = vld [vmem:[%s17944_s5 + $0x12c] ss:$16 sps:$4 sm:$0xff]  }
 0x64c   : > { %9533 = vmatpush1.bf16.msra.mxu1 %v13162_v53  ;;  %v13236_v53 = vld [vmem:[%s17944_s5 + $0x624] ss:$16 sps:$4 sm:$0xff]  }
 0x64d   : > { %9534 = vmatprep.subr.bf16.mxu1 %v13167_v40  ;;  %v13239_v40 = vld [vmem:[%s17944_s5 + $0x644] ss:$16 sps:$4 sm:$0xff]  }
 0x650   : > { %9535 = vmatpush1.bf16.msra.mxu1 %v13165_v41  ;;  %v13237_v41 = vld [vmem:[%s17944_s5 + $0x640] ss:$16 sps:$4 sm:$0xff]  }
 0x651   : > { %9536 = vmatprep.subr.bf16.mxu1 %v13170_v42  ;;  %v13242_v42 = vld [vmem:[%s17944_s5 + $0x664] ss:$16 sps:$4 sm:$0xff]  }
 0x654   : > { %9537 = vmatpush1.bf16.msra.mxu1 %v13168_v63  ;;  %v13240_v63 = vld [vmem:[%s17944_s5 + $0x660] ss:$16 sps:$4 sm:$0xff]  }
 0x655   : > { %9538 = vmatprep.subr.bf16.mxu1 %v13173_v24  ;;  %v13245_v24 = vld [vmem:[%s17944_s5 + $0x684] ss:$16 sps:$4 sm:$0xff]  }
 0x658   : > { %9539 = vmatpush1.bf16.msra.mxu1 %v13171_v44  ;;  %v13243_v44 = vld [vmem:[%s17944_s5 + $0x680] ss:$16 sps:$4 sm:$0xff]  }
 0x659   : > { %9540 = vmatprep.subr.bf16.mxu1 %v13176_v27  ;;  %v13248_v27 = vld [vmem:[%s17944_s5 + $0x6a4] ss:$16 sps:$4 sm:$0xff]  }
 0x65c   : > { %9541 = vmatpush1.bf16.msra.mxu1 %v13174_v8  ;;  %v13246_v8 = vld [vmem:[%s17944_s5 + $0x6a0] ss:$16 sps:$4 sm:$0xff]  }
 0x65d   : > { %9542 = vmatprep.subr.bf16.mxu1 %v13179_v28  ;;  %v13251_v28 = vld [vmem:[%s17944_s5 + $0x6c4] ss:$16 sps:$4 sm:$0xff]  }
 0x660   : > { %9543 = vmatpush1.bf16.msra.mxu1 %v13177_v56  ;;  %v13249_v56 = vld [vmem:[%s17944_s5 + $0x6c0] ss:$16 sps:$4 sm:$0xff]  }
 0x661   : > { %9544 = vmatprep.subr.bf16.mxu1 %v13182_v19  ;;  %v13254_v19 = vld [vmem:[%s17944_s5 + $0x6e4] ss:$16 sps:$4 sm:$0xff]  }
 0x664   : > { %9545 = vmatpush1.bf16.msra.mxu1 %v13180_v9  ;;  %v13252_v9 = vld [vmem:[%s17944_s5 + $0x6e0] ss:$16 sps:$4 sm:$0xff]  }
 0x665   : > { %9555 = vmatprep.subr.bf16.mxu1 %v13185_v38  ;;  %v13255_v38 = vld [vmem:[%s17944_s5 + $0x700] ss:$16 sps:$4 sm:$0xff]  }
 0x667   : > { %9547 = vmatmul.mubr.bf16.vlgmr.msra.gmra.mrb[64].mxu1 %v17180_v58 }
 0x668   : > { %9556 = vmatpush1.bf16.msra.mxu1 %v13183_v12  ;;  %9587 = vmatprep.mubr.bf16.mxu1 %v17185_v49  ;;  %v13258_v12 = vld [vmem:[%s17944_s5 + $0x720] ss:$16 sps:$4 sm:$0xff]  }
 0x669   : > { %9557 = vmatprep.subr.bf16.mxu1 %v13188_v7  ;;  %v13263_v7 = vld [vmem:[%s17944_s5 + $0x744] ss:$16 sps:$4 sm:$0xff]  }
 0x66c   : > { %9558 = vmatpush1.bf16.msra.mxu1 %v13186_v23  ;;  %v13261_v23 = vld [vmem:[%s17944_s5 + $0x740] ss:$16 sps:$4 sm:$0xff]  }
 0x66d   : > { %9559 = vmatprep.subr.bf16.mxu1 %v13191_v52  ;;  %v13266_v52 = vld [vmem:[%s17944_s5 + $0x764] ss:$16 sps:$4 sm:$0xff]  }
 0x670   : > { %9560 = vmatpush1.bf16.msra.mxu1 %v13189_v11  ;;  %v13264_v11 = vld [vmem:[%s17944_s5 + $0x760] ss:$16 sps:$4 sm:$0xff]  }
 0x671   : > { %9561 = vmatprep.subr.bf16.mxu1 %v13194_v25  ;;  %v13269_v25 = vld [vmem:[%s17944_s5 + $0x784] ss:$16 sps:$4 sm:$0xff]  }
 0x674   : > { %9562 = vmatpush1.bf16.msra.mxu1 %v13192_v20  ;;  %v13267_v20 = vld [vmem:[%s17944_s5 + $0x780] ss:$16 sps:$4 sm:$0xff]  }
 0x675   : > { %9563 = vmatprep.subr.bf16.mxu1 %v13197_v45  ;;  %v13272_v45 = vld [vmem:[%s17944_s5 + $0x7a4] ss:$16 sps:$4 sm:$0xff]  }
 0x678   : > { %9564 = vmatpush1.bf16.msra.mxu1 %v13195_v47  ;;  %v13270_v47 = vld [vmem:[%s17944_s5 + $0x7a0] ss:$16 sps:$4 sm:$0xff]  }
 0x679   : > { %9565 = vmatprep.subr.bf16.mxu1 %v13200_v0  ;;  %v13275_v0 = vld [vmem:[%s17944_s5 + $0x7c4] ss:$16 sps:$4 sm:$0xff]  }
 0x67c   : > { %9566 = vmatpush1.bf16.msra.mxu1 %v13198_v39  ;;  %v13273_v39 = vld [vmem:[%s17944_s5 + $0x7c0] ss:$16 sps:$4 sm:$0xff]  }
 0x67d   : > { %9567 = vmatprep.subr.bf16.mxu1 %v13203_v14  ;;  %v13278_v14 = vld [vmem:[%s17944_s5 + $0x7e4] ss:$16 sps:$4 sm:$0xff]  }
 0x680   : > { %9568 = vmatpush1.bf16.msra.mxu1 %v13201_v26  ;;  %v13276_v26 = vld [vmem:[%s17944_s5 + $0x7e0] ss:$16 sps:$4 sm:$0xff]  }
 0x681   : > { %9569 = vmatprep.subr.bf16.mxu1 %v13206_v48  ;;  %v7905_v48 = vmax.f32 %v17104_v43, 0.0  ;;  %v13282_v43 = vld [vmem:[%s17944_s5 + $0x28] ss:$16 sps:$4 sm:$0xff]  }
 0x684   : > { %9570 = vmatpush1.bf16.msra.mxu1 %v13204_v21  ;;  %v13281_v21 = vld [vmem:[%s17944_s5 + $0xc] ss:$16 sps:$4 sm:$0xff]  }
 0x685   : > { %9571 = vmatprep.subr.bf16.mxu1 %v13209_v59  ;;  %v13279_v59 = vld [vmem:[%s17944_s5 + $0x8] ss:$16 sps:$4 sm:$0xff]  }
 0x688   : > { %9572 = vmatpush1.bf16.msra.mxu1 %v13207_v18  ;;  %v17387_v18 = vpack.c.bf16 %v7905_v48, %v7905_v48  ;;  %v13449_v48 = vld [vmem:[%s17946_s7 + $0x28] sm:$0xff]  }
 0x689   : > { %9573 = vmatprep.subr.bf16.mxu1 %v13212_v37  ;;  %v13284_v37 = vld [vmem:[%s17944_s5 + $0x2c] ss:$16 sps:$4 sm:$0xff]  }
 0x68c   : > { %9574 = vmatpush1.bf16.msra.mxu1 %v13210_v32  ;;  %v13287_v32 = vld [vmem:[%s17944_s5 + $0x4c] ss:$16 sps:$4 sm:$0xff]  }
 0x68d   : > { %9575 = vmatprep.subr.bf16.mxu1 %v13215_v30  ;;  %v13285_v30 = vld [vmem:[%s17944_s5 + $0x48] ss:$16 sps:$4 sm:$0xff]  }
 0x690   : > { %9576 = vmatpush1.bf16.msra.mxu1 %v13213_v62  ;;  %v13290_v62 = vld [vmem:[%s17944_s5 + $0x6c] ss:$16 sps:$4 sm:$0xff]  }
 0x691   : > { %9577 = vmatprep.subr.bf16.mxu1 %v13218_v29  ;;  %v13293_v29 = vld [vmem:[%s17944_s5 + $0x8c] ss:$16 sps:$4 sm:$0xff]  }
 0x694   : > { %9578 = vmatpush1.bf16.msra.mxu1 %v13216_v22  ;;  %v13291_v22 = vld [vmem:[%s17944_s5 + $0x88] ss:$16 sps:$4 sm:$0xff]  }
 0x695   : > { %9579 = vmatprep.subr.bf16.mxu1 %v13221_v60  ;;  %v13296_v60 = vld [vmem:[%s17944_s5 + $0xac] ss:$16 sps:$4 sm:$0xff]  }
 0x698   : > { %9580 = vmatpush1.bf16.msra.mxu1 %v13219_v50  ;;  %v13294_v50 = vld [vmem:[%s17944_s5 + $0xa8] ss:$16 sps:$4 sm:$0xff]  }
 0x699   : > { %9581 = vmatprep.subr.bf16.mxu1 %v13224_v35  ;;  %v13299_v35 = vld [vmem:[%s17944_s5 + $0xcc] ss:$16 sps:$4 sm:$0xff]  }
 0x69c   : > { %9582 = vmatpush1.bf16.msra.mxu1 %v13222_v2  ;;  %v13297_v2 = vld [vmem:[%s17944_s5 + $0xc8] ss:$16 sps:$4 sm:$0xff]  }
 0x69d   : > { %9583 = vmatprep.subr.bf16.mxu1 %v13227_v51  ;;  %v13302_v51 = vld [vmem:[%s17944_s5 + $0xec] ss:$16 sps:$4 sm:$0xff]  }
 0x6a0   : > { %9584 = vmatpush1.bf16.msra.mxu1 %v13225_v57  ;;  %v13300_v57 = vld [vmem:[%s17944_s5 + $0xe8] ss:$16 sps:$4 sm:$0xff]  }
 0x6a1   : > { %9585 = vmatprep.subr.bf16.mxu1 %v13230_v34  ;;  %v13305_v34 = vld [vmem:[%s17944_s5 + $0x10c] ss:$16 sps:$4 sm:$0xff]  }
 0x6a4   : > { %9586 = vmatpush1.bf16.msra.mxu1 %v13228_v4  ;;  %v13303_v4 = vld [vmem:[%s17944_s5 + $0x108] ss:$16 sps:$4 sm:$0xff]  }
 0x6a5   : > { %9596 = vmatprep.subr.bf16.mxu1 %v13233_v61  ;;  %v13306_v61 = vld [vmem:[%s17944_s5 + $0x128] ss:$16 sps:$4 sm:$0xff]  }
 0x6a7   : > { %9588 = vmatmul.mubr.bf16.vlgmr.msra.gmra.mrb[64].mxu1 %v17284_v54 }
 0x6a8   : > { %9597 = vmatpush1.bf16.msra.mxu1 %v13231_v10  ;;  %9628 = vmatprep.mubr.bf16.mxu1 %v17289_v17  ;;  %v13309_v10 = vld [vmem:[%s17944_s5 + $0x148] ss:$16 sps:$4 sm:$0xff]  }
 0x6a9   : > { %9598 = vmatprep.subr.bf16.mxu1 %v13236_v53  ;;  %v13314_v53 = vld [vmem:[%s17944_s5 + $0x16c] ss:$16 sps:$4 sm:$0xff]  }
 0x6ac   : > { %9599 = vmatpush1.bf16.msra.mxu1 %v13234_v36  ;;  %v13312_v36 = vld [vmem:[%s17944_s5 + $0x168] ss:$16 sps:$4 sm:$0xff]  }
 0x6ad   : > { %9600 = vmatprep.subr.bf16.mxu1 %v13239_v40  ;;  %v13317_v40 = vld [vmem:[%s17944_s5 + $0x18c] ss:$16 sps:$4 sm:$0xff]  }
 0x6b0   : > { %9601 = vmatpush1.bf16.msra.mxu1 %v13237_v41  ;;  %v13315_v41 = vld [vmem:[%s17944_s5 + $0x188] ss:$16 sps:$4 sm:$0xff]  }
 0x6b1   : > { %9602 = vmatprep.subr.bf16.mxu1 %v13242_v42  ;;  %v13320_v42 = vld [vmem:[%s17944_s5 + $0x1ac] ss:$16 sps:$4 sm:$0xff]  }
 0x6b4   : > { %9603 = vmatpush1.bf16.msra.mxu1 %v13240_v63  ;;  %v13318_v63 = vld [vmem:[%s17944_s5 + $0x1a8] ss:$16 sps:$4 sm:$0xff]  }
 0x6b5   : > { %9604 = vmatprep.subr.bf16.mxu1 %v13245_v24  ;;  %v13323_v24 = vld [vmem:[%s17944_s5 + $0x1cc] ss:$16 sps:$4 sm:$0xff]  }
 0x6b8   : > { %9605 = vmatpush1.bf16.msra.mxu1 %v13243_v44  ;;  %v13321_v44 = vld [vmem:[%s17944_s5 + $0x1c8] ss:$16 sps:$4 sm:$0xff]  }
 0x6b9   : > { %9606 = vmatprep.subr.bf16.mxu1 %v13248_v27  ;;  %v13326_v27 = vld [vmem:[%s17944_s5 + $0x1ec] ss:$16 sps:$4 sm:$0xff]  }
 0x6bc   : > { %9607 = vmatpush1.bf16.msra.mxu1 %v13246_v8  ;;  %v13324_v8 = vld [vmem:[%s17944_s5 + $0x1e8] ss:$16 sps:$4 sm:$0xff]  }
 0x6bd   : > { %9608 = vmatprep.subr.bf16.mxu1 %v13251_v28  ;;  %v13329_v28 = vld [vmem:[%s17944_s5 + $0x20c] ss:$16 sps:$4 sm:$0xff]  }
 0x6c0   : > { %9609 = vmatpush1.bf16.msra.mxu1 %v13249_v56  ;;  %v13423_v56 = vld [vmem:[%s17946_s7 + $0x40] sm:$0xff]  }
 0x6c1   : > { %9610 = vmatprep.subr.bf16.mxu1 %v13254_v19  ;;  %v13424_v19 = vld [vmem:[%s17946_s7] sm:$0xff]   ;;  %11354 = vmatprep.subr.bf16.mxu0 %v13423_v56  ;;  %v13392_v56 = vld [vmem:[%s17944_s5 + $0x4ac] ss:$16 sps:$4 sm:$0xff]  }
 0x6c2   : > { %11355 = vmatpush3.bf16.msra.mxu0 %v13424_v19  ;;  %v13390_v19 = vld [vmem:[%s17944_s5 + $0x4a8] ss:$16 sps:$4 sm:$0xff]  }
 0x6c4   : > { %9611 = vmatpush1.bf16.msra.mxu1 %v13252_v9  ;;  %v13327_v9 = vld [vmem:[%s17944_s5 + $0x208] ss:$16 sps:$4 sm:$0xff]  }
 0x6c5   : > { %9612 = vmatprep.subr.bf16.mxu1 %v13257_v3  ;;  %v13332_v3 = vld [vmem:[%s17944_s5 + $0x22c] ss:$16 sps:$4 sm:$0xff]  }
 0x6c8   : > { %9613 = vmatpush1.bf16.msra.mxu1 %v13255_v38  ;;  %v13428_v38 = vld [vmem:[%s17946_s7 + $0x48] sm:$0xff]  }
 0x6c9   : > { %9614 = vmatprep.subr.bf16.mxu1 %v13260_v6  ;;  %v13429_v6 = vld [vmem:[%s17946_s7 + $0x8] sm:$0xff]   ;;  %11356 = vmatprep.subr.bf16.mxu0 %v13428_v38 }
 0x6ca   : > { %11357 = vmatpush3.bf16.msra.mxu0 %v13429_v6  ;;  %v13398_v38 = vld [vmem:[%s17944_s5 + $0x4ec] ss:$16 sps:$4 sm:$0xff]   ;;  %v13396_v6 = vld [vmem:[%s17944_s5 + $0x4e8] ss:$16 sps:$4 sm:$0xff]  }
 0x6cc   : > { %9615 = vmatpush1.bf16.msra.mxu1 %v13258_v12  ;;  %v13330_v12 = vld [vmem:[%s17944_s5 + $0x228] ss:$16 sps:$4 sm:$0xff]  }
 0x6cd   : > { %9616 = vmatprep.subr.bf16.mxu1 %v13263_v7  ;;  %v13335_v7 = vld [vmem:[%s17944_s5 + $0x24c] ss:$16 sps:$4 sm:$0xff]  }
 0x6d0   : > { %9617 = vmatpush1.bf16.msra.mxu1 %v13261_v23  ;;  %v13433_v23 = vld [vmem:[%s17946_s7 + $0x50] sm:$0xff]  }
 0x6d1   : > { %9618 = vmatprep.subr.bf16.mxu1 %v13266_v52  ;;  %11358 = vmatprep.subr.bf16.mxu0 %v13433_v23  ;;  %v13338_v52 = vld [vmem:[%s17944_s5 + $0x26c] ss:$16 sps:$4 sm:$0xff]  }
 0x6d2   : > { %v13404_v23 = vld [vmem:[%s17944_s5 + $0x52c] ss:$16 sps:$4 sm:$0xff]  }
 0x6d4   : > { %9619 = vmatpush1.bf16.msra.mxu1 %v13264_v11  ;;  %v13438_v11 = vld [vmem:[%s17946_s7 + $0x58] sm:$0xff]  }
 0x6d5   : > { %9620 = vmatprep.subr.bf16.mxu1 %v13269_v25  ;;  %v13439_v25 = vld [vmem:[%s17946_s7 + $0x18] sm:$0xff]  }
 0x6d8   : > { %9621 = vmatpush1.bf16.msra.mxu1 %v13267_v20  ;;  %v13336_v20 = vld [vmem:[%s17944_s5 + $0x268] ss:$16 sps:$4 sm:$0xff]  }
 0x6d9   : > { %9622 = vmatprep.subr.bf16.mxu1 %v13272_v45  ;;  %v13341_v45 = vld [vmem:[%s17944_s5 + $0x28c] ss:$16 sps:$4 sm:$0xff]  }
 0x6dc   : > { %9623 = vmatpush1.bf16.msra.mxu1 %v13270_v47  ;;  %v13443_v47 = vld [vmem:[%s17946_s7 + $0x60] sm:$0xff]  }
 0x6dd   : > { %9624 = vmatprep.subr.bf16.mxu1 %v13275_v0  ;;  %v13444_v0 = vld [vmem:[%s17946_s7 + $0x20] sm:$0xff]  }
 0x6e0   : > { %9625 = vmatpush1.bf16.msra.mxu1 %v13273_v39  ;;  %v13339_v39 = vld [vmem:[%s17944_s5 + $0x288] ss:$16 sps:$4 sm:$0xff]  }
 0x6e1   : > { %9626 = vmatprep.subr.bf16.mxu1 %v13278_v14  ;;  %v13344_v14 = vld [vmem:[%s17944_s5 + $0x2ac] ss:$16 sps:$4 sm:$0xff]  }
 0x6e4   : > { %9627 = vmatpush1.bf16.msra.mxu1 %v13276_v26  ;;  %v13448_v26 = vld [vmem:[%s17946_s7 + $0x68] sm:$0xff]  }
 0x6e5   : > { %9637 = vmatprep.subr.bf16.mxu1 %v13281_v21  ;;  %v13342_v21 = vld [vmem:[%s17944_s5 + $0x2a8] ss:$16 sps:$4 sm:$0xff]  }
 0x6e7   : > { %9629 = vmatmul.mubr.bf16.vlgmr.msra.gmra.mrb[64].mxu1 %v17387_v18 }
 0x6e8   : > { %9638 = vmatpush1.bf16.msra.mxu1 %v13279_v59  ;;  %9669 = vmatprep.mubr.bf16.mxu1 %v17054_v1  ;;  %v13288_v1 = vld [vmem:[%s17944_s5 + $0x68] ss:$16 sps:$4 sm:$0xff]   ;;  %v13347_v59 = vld [vmem:[%s17944_s5 + $0x2cc] ss:$16 sps:$4 sm:$0xff]  }
 0x6e9   : > { %9639 = vmatprep.subr.bf16.mxu1 %v13284_v37  ;;  %v13453_v37 = vld [vmem:[%s17946_s7 + $0x70] sm:$0xff]  }
 0x6ec   : > { %9640 = vmatpush1.bf16.msra.mxu1 %v13282_v43  ;;  %v13454_v43 = vld [vmem:[%s17946_s7 + $0x30] sm:$0xff]  }
 0x6ed   : > { %9641 = vmatprep.subr.bf16.mxu1 %v13287_v32  ;;  %v13345_v32 = vld [vmem:[%s17944_s5 + $0x2c8] ss:$16 sps:$4 sm:$0xff]  }
 0x6f0   : > { %9642 = vmatpush1.bf16.msra.mxu1 %v13285_v30  ;;  %v13350_v30 = vld [vmem:[%s17944_s5 + $0x2ec] ss:$16 sps:$4 sm:$0xff]  }
 0x6f1   : > { %9643 = vmatprep.subr.bf16.mxu1 %v13290_v62  ;;  %v13458_v62 = vld [vmem:[%s17946_s7 + $0x78] sm:$0xff]  }
 0x6f4   : > { %9644 = vmatpush1.bf16.msra.mxu1 %v13288_v1  ;;  %v13459_v1 = vld [vmem:[%s17946_s7 + $0x38] sm:$0xff]  }
 0x6f5   : > { %9645 = vmatprep.subr.bf16.mxu1 %v13293_v29  ;;  %v13348_v29 = vld [vmem:[%s17944_s5 + $0x2e8] ss:$16 sps:$4 sm:$0xff]  }
 0x6f8   : > { %9646 = vmatpush1.bf16.msra.mxu1 %v13291_v22  ;;  %v13353_v22 = vld [vmem:[%s17944_s5 + $0x30c] ss:$16 sps:$4 sm:$0xff]  }
 0x6f9   : > { %9647 = vmatprep.subr.bf16.mxu1 %v13296_v60  ;;  %v13351_v60 = vld [vmem:[%s17944_s5 + $0x308] ss:$16 sps:$4 sm:$0xff]  }
 0x6fc   : > { %9648 = vmatpush1.bf16.msra.mxu1 %v13294_v50  ;;  %v13356_v50 = vld [vmem:[%s17944_s5 + $0x32c] ss:$16 sps:$4 sm:$0xff]  }
 0x6fd   : > { %9649 = vmatprep.subr.bf16.mxu1 %v13299_v35  ;;  %v13354_v35 = vld [vmem:[%s17944_s5 + $0x328] ss:$16 sps:$4 sm:$0xff]  }
 0x700   : > { %9650 = vmatpush1.bf16.msra.mxu1 %v13297_v2  ;;  %v13359_v2 = vld [vmem:[%s17944_s5 + $0x34c] ss:$16 sps:$4 sm:$0xff]  }
 0x701   : > { %9651 = vmatprep.subr.bf16.mxu1 %v13302_v51  ;;  %v13357_v51 = vld [vmem:[%s17944_s5 + $0x348] ss:$16 sps:$4 sm:$0xff]  }
 0x704   : > { %9652 = vmatpush1.bf16.msra.mxu1 %v13300_v57  ;;  %v13362_v57 = vld [vmem:[%s17944_s5 + $0x36c] ss:$16 sps:$4 sm:$0xff]  }
 0x705   : > { %9653 = vmatprep.subr.bf16.mxu1 %v13305_v34  ;;  %v13360_v34 = vld [vmem:[%s17944_s5 + $0x368] ss:$16 sps:$4 sm:$0xff]  }
 0x708   : > { %9654 = vmatpush1.bf16.msra.mxu1 %v13303_v4  ;;  %v13365_v4 = vld [vmem:[%s17944_s5 + $0x38c] ss:$16 sps:$4 sm:$0xff]  }
 0x709   : > { %9655 = vmatprep.subr.bf16.mxu1 %v13308_v46  ;;  %v13363_v46 = vld [vmem:[%s17944_s5 + $0x388] ss:$16 sps:$4 sm:$0xff]  }
 0x70c   : > { %9656 = vmatpush1.bf16.msra.mxu1 %v13306_v61  ;;  %v13368_v61 = vld [vmem:[%s17944_s5 + $0x3ac] ss:$16 sps:$4 sm:$0xff]  }
 0x70d   : > { %9657 = vmatprep.subr.bf16.mxu1 %v13311_v13  ;;  %v13366_v13 = vld [vmem:[%s17944_s5 + $0x3a8] ss:$16 sps:$4 sm:$0xff]  }
 0x710   : > { %9658 = vmatpush1.bf16.msra.mxu1 %v13309_v10  ;;  %v13371_v10 = vld [vmem:[%s17944_s5 + $0x3cc] ss:$16 sps:$4 sm:$0xff]  }
 0x711   : > { %9659 = vmatprep.subr.bf16.mxu1 %v13314_v53  ;;  %v13369_v53 = vld [vmem:[%s17944_s5 + $0x3c8] ss:$16 sps:$4 sm:$0xff]  }
 0x714   : > { %9660 = vmatpush1.bf16.msra.mxu1 %v13312_v36  ;;  %v13374_v36 = vld [vmem:[%s17944_s5 + $0x3ec] ss:$16 sps:$4 sm:$0xff]  }
 0x715   : > { %9661 = vmatprep.subr.bf16.mxu1 %v13317_v40  ;;  %v13372_v40 = vld [vmem:[%s17944_s5 + $0x3e8] ss:$16 sps:$4 sm:$0xff]  }
 0x718   : > { %9662 = vmatpush1.bf16.msra.mxu1 %v13315_v41  ;;  %v13377_v41 = vld [vmem:[%s17944_s5 + $0x40c] ss:$16 sps:$4 sm:$0xff]  }
 0x719   : > { %9663 = vmatprep.subr.bf16.mxu1 %v13320_v42  ;;  %v13375_v42 = vld [vmem:[%s17944_s5 + $0x408] ss:$16 sps:$4 sm:$0xff]  }
 0x71c   : > { %9664 = vmatpush1.bf16.msra.mxu1 %v13318_v63  ;;  %v13380_v63 = vld [vmem:[%s17944_s5 + $0x42c] ss:$16 sps:$4 sm:$0xff]  }
 0x71d   : > { %9665 = vmatprep.subr.bf16.mxu1 %v13323_v24  ;;  %v13378_v24 = vld [vmem:[%s17944_s5 + $0x428] ss:$16 sps:$4 sm:$0xff]  }
 0x720   : > { %9666 = vmatpush1.bf16.msra.mxu1 %v13321_v44  ;;  %v13383_v44 = vld [vmem:[%s17944_s5 + $0x44c] ss:$16 sps:$4 sm:$0xff]  }
 0x721   : > { %9667 = vmatprep.subr.bf16.mxu1 %v13326_v27  ;;  %v13381_v27 = vld [vmem:[%s17944_s5 + $0x448] ss:$16 sps:$4 sm:$0xff]  }
 0x724   : > { %9668 = vmatpush1.bf16.msra.mxu1 %v13324_v8  ;;  %v13389_v8 = vld [vmem:[%s17944_s5 + $0x48c] ss:$16 sps:$4 sm:$0xff]  }
 0x725   : > { %9678 = vmatprep.subr.bf16.mxu1 %v13329_v28  ;;  %v13387_v28 = vld [vmem:[%s17944_s5 + $0x488] ss:$16 sps:$4 sm:$0xff]  }
 0x727   : > { %9670 = vmatmul.mubr.bf16.vlgmr.msra.gmra.mrb[68].mxu1 %v17059_v5  ;;  %v13434_v5 = vld [vmem:[%s17946_s7 + $0x10] sm:$0xff]  }
 0x728   : > { %9679 = vmatpush1.bf16.msra.mxu1 %v13327_v9  ;;  %9710 = vmatprep.mubr.bf16.mxu1 %v17079_v33  ;;  %v13333_v33 = vld [vmem:[%s17944_s5 + $0x248] ss:$16 sps:$4 sm:$0xff]   ;;  %v13395_v9 = vld [vmem:[%s17944_s5 + $0x4cc] ss:$16 sps:$4 sm:$0xff]  }
 0x729   : > { %9680 = vmatprep.subr.bf16.mxu1 %v13332_v3  ;;  %11359 = vmatpush3.bf16.msra.mxu0 %v13434_v5  ;;  %v13393_v3 = vld [vmem:[%s17944_s5 + $0x4c8] ss:$16 sps:$4 sm:$0xff]  }
 0x72a   : > { %11360 = vmatprep.subr.bf16.mxu0 %v13438_v11  ;;  %v13402_v5 = vld [vmem:[%s17944_s5 + $0x528] ss:$16 sps:$4 sm:$0xff]   ;;  %v13410_v11 = vld [vmem:[%s17944_s5 + $0x56c] ss:$16 sps:$4 sm:$0xff]  }
 0x72c   : > { %9681 = vmatpush1.bf16.msra.mxu1 %v13330_v12  ;;  %v13401_v12 = vld [vmem:[%s17944_s5 + $0x50c] ss:$16 sps:$4 sm:$0xff]  }
 0x72d   : > { %9682 = vmatprep.subr.bf16.mxu1 %v13335_v7  ;;  %11361 = vmatpush3.bf16.msra.mxu0 %v13439_v25  ;;  %v13399_v7 = vld [vmem:[%s17944_s5 + $0x508] ss:$16 sps:$4 sm:$0xff]  }
 0x72e   : > { %11362 = vmatprep.subr.bf16.mxu0 %v13443_v47  ;;  %v13408_v25 = vld [vmem:[%s17944_s5 + $0x568] ss:$16 sps:$4 sm:$0xff]   ;;  %v13416_v47 = vld [vmem:[%s17944_s5 + $0x5ac] ss:$16 sps:$4 sm:$0xff]  }
 0x730   : > { %9683 = vmatpush1.bf16.msra.mxu1 %v13333_v33  ;;  %v13407_v33 = vld [vmem:[%s17944_s5 + $0x54c] ss:$16 sps:$4 sm:$0xff]  }
 0x731   : > { %9684 = vmatprep.subr.bf16.mxu1 %v13338_v52  ;;  %11363 = vmatpush3.bf16.msra.mxu0 %v13444_v0  ;;  %v13405_v52 = vld [vmem:[%s17944_s5 + $0x548] ss:$16 sps:$4 sm:$0xff]  }
 0x732   : > { %11364 = vmatprep.subr.bf16.mxu0 %v13448_v26  ;;  %v13414_v0 = vld [vmem:[%s17944_s5 + $0x5a8] ss:$16 sps:$4 sm:$0xff]   ;;  %v13422_v26 = vld [vmem:[%s17944_s5 + $0x5ec] ss:$16 sps:$4 sm:$0xff]  }
 0x734   : > { %9685 = vmatpush1.bf16.msra.mxu1 %v13336_v20  ;;  %v13413_v20 = vld [vmem:[%s17944_s5 + $0x58c] ss:$16 sps:$4 sm:$0xff]  }
 0x735   : > { %9686 = vmatprep.subr.bf16.mxu1 %v13341_v45  ;;  %11365 = vmatpush3.bf16.msra.mxu0 %v13449_v48  ;;  %v13411_v45 = vld [vmem:[%s17944_s5 + $0x588] ss:$16 sps:$4 sm:$0xff]  }
 0x736   : > { %11366 = vmatprep.subr.bf16.mxu0 %v13453_v37  ;;  %v13420_v48 = vld [vmem:[%s17944_s5 + $0x5e8] ss:$16 sps:$4 sm:$0xff]   ;;  %v13432_v37 = vld [vmem:[%s17944_s5 + $0x62c] ss:$16 sps:$4 sm:$0xff]  }
 0x738   : > { %9687 = vmatpush1.bf16.msra.mxu1 %v13339_v39  ;;  %v13419_v39 = vld [vmem:[%s17944_s5 + $0x5cc] ss:$16 sps:$4 sm:$0xff]  }
 0x739   : > { %9688 = vmatprep.subr.bf16.mxu1 %v13344_v14  ;;  %11367 = vmatpush3.bf16.msra.mxu0 %v13454_v43  ;;  %v13417_v14 = vld [vmem:[%s17944_s5 + $0x5c8] ss:$16 sps:$4 sm:$0xff]  }
 0x73a   : > { %11368 = vmatprep.subr.bf16.mxu0 %v13458_v62  ;;  %v13430_v43 = vld [vmem:[%s17944_s5 + $0x628] ss:$16 sps:$4 sm:$0xff]   ;;  %v13447_v62 = vld [vmem:[%s17944_s5 + $0x68c] ss:$16 sps:$4 sm:$0xff]  }
 0x73c   : > { %9689 = vmatpush1.bf16.msra.mxu1 %v13342_v21  ;;  %v13427_v21 = vld [vmem:[%s17944_s5 + $0x60c] ss:$16 sps:$4 sm:$0xff]  }
 0x73d   : > { %9690 = vmatprep.subr.bf16.mxu1 %v13347_v59  ;;  %11369 = vmatpush3.bf16.msra.mxu0 %v13459_v1  ;;  %v13425_v59 = vld [vmem:[%s17944_s5 + $0x608] ss:$16 sps:$4 sm:$0xff]  }
 0x73e   : > { %v13445_v1 = vld [vmem:[%s17944_s5 + $0x688] ss:$16 sps:$4 sm:$0xff]  }
 0x740   : > { %9691 = vmatpush1.bf16.msra.mxu1 %v13345_v32  ;;  %v13437_v32 = vld [vmem:[%s17944_s5 + $0x64c] ss:$16 sps:$4 sm:$0xff]  }
 0x741   : > { %9692 = vmatprep.subr.bf16.mxu1 %v13350_v30  ;;  %v13435_v30 = vld [vmem:[%s17944_s5 + $0x648] ss:$16 sps:$4 sm:$0xff]  }
 0x744   : > { %9693 = vmatpush1.bf16.msra.mxu1 %v13348_v29  ;;  %v17760_v29 = vld [vmem:[%s17945_s6] sm:$0xf] }
 0x745   : > { %9694 = vmatprep.subr.bf16.mxu1 %v13353_v22  ;;  %v13452_v22 = vld [vmem:[%s17944_s5 + $0x6ac] ss:$16 sps:$4 sm:$0xff]  }
 0x748   : > { %9695 = vmatpush1.bf16.msra.mxu1 %v13351_v60  ;;  %v8176_v60 = vrot.slane %v17760_v29, %v18157_v15  ;;  %v13455_v15 = vld [vmem:[%s17944_s5 + $0x6c8] ss:$16 sps:$4 sm:$0xff]  }
 0x749   : > { %9696 = vmatprep.subr.bf16.mxu1 %v13356_v50  ;;  %v8180_v50 = vrot.slane %v17760_v29, %v15429_v31 }
 0x74c   : > { %9697 = vmatpush1.bf16.msra.mxu1 %v13354_v35  ;;  %v13450_v35 = vld [vmem:[%s17944_s5 + $0x6a8] ss:$16 sps:$4 sm:$0xff]  }
 0x74d   : > { %9698 = vmatprep.subr.bf16.mxu1 %v13359_v2  ;;  %v13457_v2 = vld [vmem:[%s17944_s5 + $0x6cc] ss:$16 sps:$4 sm:$0xff]  }
 0x750   : > { %9699 = vmatpush1.bf16.msra.mxu1 %v13357_v51 }
 0x751   : > { %9700 = vmatprep.subr.bf16.mxu1 %v13362_v57 }
 0x754   : > { %9701 = vmatpush1.bf16.msra.mxu1 %v13360_v34 }
 0x755   : > { %9702 = vmatprep.subr.bf16.mxu1 %v13365_v4 }
 0x758   : > { %9703 = vmatpush1.bf16.msra.mxu1 %v13363_v46 }
 0x759   : > { %9704 = vmatprep.subr.bf16.mxu1 %v13368_v61 }
 0x75c   : > { %9705 = vmatpush1.bf16.msra.mxu1 %v13366_v13  ;;  %v13462_v13 = vld [vmem:[%s17944_s5 + $0x6ec] ss:$16 sps:$4 sm:$0xff]  }
 0x75d   : > { %9706 = vmatprep.subr.bf16.mxu1 %v13371_v10 }
 0x760   : > { %9707 = vmatpush1.bf16.msra.mxu1 %v13369_v53 }
 0x761   : > { %9708 = vmatprep.subr.bf16.mxu1 %v13374_v36  ;;  %v13460_v36 = vld [vmem:[%s17944_s5 + $0x6e8] ss:$16 sps:$4 sm:$0xff]  }
 0x764   : > { %9709 = vmatpush1.bf16.msra.mxu1 %v13372_v40 }
 0x765   : > { %9719 = vmatprep.subr.bf16.mxu1 %v13377_v41  ;;  %v13465_v41 = vld [vmem:[%s17944_s5 + $0x70c] ss:$16 sps:$4 sm:$0xff]  }
 0x767   : > { %9711 = vmatmul.mubr.bf16.vlgmr.msra.gmra.mrb[68].mxu1 %v17180_v58  ;;  %v13386_v58 = vld [vmem:[%s17944_s5 + $0x46c] ss:$16 sps:$4 sm:$0xff]  }
 0x768   : > { %9720 = vmatpush1.bf16.msra.mxu1 %v13375_v42  ;;  %9751 = vmatprep.mubr.bf16.mxu1 %v17185_v49  ;;  %v13384_v49 = vld [vmem:[%s17944_s5 + $0x468] ss:$16 sps:$4 sm:$0xff]  }
 0x769   : > { %9721 = vmatprep.subr.bf16.mxu1 %v13380_v63  ;;  %v13463_v42 = vld [vmem:[%s17944_s5 + $0x708] ss:$16 sps:$4 sm:$0xff]   ;;  %v13468_v63 = vld [vmem:[%s17944_s5 + $0x72c] ss:$16 sps:$4 sm:$0xff]  }
 0x76c   : > { %9722 = vmatpush1.bf16.msra.mxu1 %v13378_v24  ;;  %v13466_v24 = vld [vmem:[%s17944_s5 + $0x728] ss:$16 sps:$4 sm:$0xff]  }
 0x76d   : > { %9723 = vmatprep.subr.bf16.mxu1 %v13383_v44  ;;  %v13471_v44 = vld [vmem:[%s17944_s5 + $0x74c] ss:$16 sps:$4 sm:$0xff]  }
 0x770   : > { %9724 = vmatpush1.bf16.msra.mxu1 %v13381_v27  ;;  %v13469_v27 = vld [vmem:[%s17944_s5 + $0x748] ss:$16 sps:$4 sm:$0xff]  }
 0x771   : > { %9725 = vmatprep.subr.bf16.mxu1 %v13386_v58  ;;  %v13474_v58 = vld [vmem:[%s17944_s5 + $0x76c] ss:$16 sps:$4 sm:$0xff]  }
 0x774   : > { %9726 = vmatpush1.bf16.msra.mxu1 %v13384_v49  ;;  %v13472_v49 = vld [vmem:[%s17944_s5 + $0x768] ss:$16 sps:$4 sm:$0xff]  }
 0x775   : > { %9727 = vmatprep.subr.bf16.mxu1 %v13389_v8  ;;  %v13477_v8 = vld [vmem:[%s17944_s5 + $0x78c] ss:$16 sps:$4 sm:$0xff]  }
 0x778   : > { %9728 = vmatpush1.bf16.msra.mxu1 %v13387_v28  ;;  %v13475_v28 = vld [vmem:[%s17944_s5 + $0x788] ss:$16 sps:$4 sm:$0xff]  }
 0x779   : > { %9729 = vmatprep.subr.bf16.mxu1 %v13392_v56  ;;  %v13480_v56 = vld [vmem:[%s17944_s5 + $0x7ac] ss:$16 sps:$4 sm:$0xff]  }
 0x77c   : > { %9730 = vmatpush1.bf16.msra.mxu1 %v13390_v19  ;;  %v13478_v19 = vld [vmem:[%s17944_s5 + $0x7a8] ss:$16 sps:$4 sm:$0xff]  }
 0x77d   : > { %9731 = vmatprep.subr.bf16.mxu1 %v13395_v9  ;;  %v13483_v9 = vld [vmem:[%s17944_s5 + $0x7cc] ss:$16 sps:$4 sm:$0xff]  }
 0x780   : > { %9732 = vmatpush1.bf16.msra.mxu1 %v13393_v3  ;;  %v13481_v3 = vld [vmem:[%s17944_s5 + $0x7c8] ss:$16 sps:$4 sm:$0xff]  }
 0x781   : > { %9733 = vmatprep.subr.bf16.mxu1 %v13398_v38  ;;  %v13486_v38 = vld [vmem:[%s17944_s5 + $0x7ec] ss:$16 sps:$4 sm:$0xff]  }
 0x784   : > { %9734 = vmatpush1.bf16.msra.mxu1 %v13396_v6  ;;  %v13484_v6 = vld [vmem:[%s17944_s5 + $0x7e8] ss:$16 sps:$4 sm:$0xff]  }
 0x785   : > { %9735 = vmatprep.subr.bf16.mxu1 %v13401_v12  ;;  %v13487_v12 = vld [vmem:[%s17946_s7 + $0xc0] sm:$0xff]  }
 0x786   : > { %11376 = vmatprep.subr.bf16.mxu0 %v13487_v12 }
 0x788   : > { %9736 = vmatpush1.bf16.msra.mxu1 %v13399_v7  ;;  %v13488_v7 = vld [vmem:[%s17946_s7 + $0x80] sm:$0xff]  }
 0x789   : > { %9737 = vmatprep.subr.bf16.mxu1 %v13404_v23  ;;  %v13489_v23 = vld [vmem:[%s17946_s7 + $0xc8] sm:$0xff]  }
 0x78c   : > { %9738 = vmatpush1.bf16.msra.mxu1 %v13402_v5  ;;  %v13490_v5 = vld [vmem:[%s17946_s7 + $0x88] sm:$0xff]  }
 0x78d   : > { %9739 = vmatprep.subr.bf16.mxu1 %v13407_v33  ;;  %v13492_v33 = vld [vmem:[%s17946_s7 + $0x90] sm:$0xff]  }
 0x790   : > { %9740 = vmatpush1.bf16.msra.mxu1 %v13405_v52  ;;  %v13493_v52 = vld [vmem:[%s17946_s7 + $0xd8] sm:$0xff]  }
 0x791   : > { %9741 = vmatprep.subr.bf16.mxu1 %v13410_v11  ;;  %v13494_v11 = vld [vmem:[%s17946_s7 + $0x98] sm:$0xff]  }
 0x794   : > { %9742 = vmatpush1.bf16.msra.mxu1 %v13408_v25  ;;  %v13495_v25 = vld [vmem:[%s17946_s7 + $0xe0] sm:$0xff]  }
 0x795   : > { %9743 = vmatprep.subr.bf16.mxu1 %v13413_v20  ;;  %v13496_v20 = vld [vmem:[%s17946_s7 + $0xa0] sm:$0xff]  }
 0x798   : > { %9744 = vmatpush1.bf16.msra.mxu1 %v13411_v45  ;;  %v13497_v45 = vld [vmem:[%s17946_s7 + $0xe8] sm:$0xff]  }
 0x799   : > { %9745 = vmatprep.subr.bf16.mxu1 %v13416_v47  ;;  %v13498_v47 = vld [vmem:[%s17946_s7 + $0xa8] sm:$0xff]  }
 0x79c   : > { %9746 = vmatpush1.bf16.msra.mxu1 %v13414_v0  ;;  %v13499_v0 = vld [vmem:[%s17946_s7 + $0xf0] sm:$0xff]  }
 0x79d   : > { %9747 = vmatprep.subr.bf16.mxu1 %v13419_v39  ;;  %v13500_v39 = vld [vmem:[%s17946_s7 + $0xb0] sm:$0xff]  }
 0x7a0   : > { %9748 = vmatpush1.bf16.msra.mxu1 %v13417_v14  ;;  %v13501_v14 = vld [vmem:[%s17946_s7 + $0xf8] sm:$0xff]  }
 0x7a1   : > { %9749 = vmatprep.subr.bf16.mxu1 %v13422_v26  ;;  %v13502_v26 = vld [vmem:[%s17946_s7 + $0xb8] sm:$0xff]  }
 0x7a4   : > { %9750 = vmatpush1.bf16.msra.mxu1 %v13420_v48 }
 0x7a5   : > { %9760 = vmatprep.subr.bf16.mxu1 %v13427_v21 }
 0x7a7   : > { %9752 = vmatmul.mubr.bf16.vlgmr.msra.gmra.mrb[68].mxu1 %v17284_v54  ;;  %v13442_v54 = vld [vmem:[%s17944_s5 + $0x66c] ss:$16 sps:$4 sm:$0xff]  }
 0x7a8   : > { %9761 = vmatpush1.bf16.msra.mxu1 %v13425_v59  ;;  %9792 = vmatprep.mubr.bf16.mxu1 %v17289_v17  ;;  %v13440_v17 = vld [vmem:[%s17944_s5 + $0x668] ss:$16 sps:$4 sm:$0xff]  }
 0x7a9   : > { %9762 = vmatprep.subr.bf16.mxu1 %v13432_v37 }
 0x7ac   : > { %9763 = vmatpush1.bf16.msra.mxu1 %v13430_v43 }
 0x7ad   : > { %9764 = vmatprep.subr.bf16.mxu1 %v13437_v32  ;;  %v8187_v32 = vsub.s32 3, %v14987_v16  ;;  %v11284_v16 = vld [vmem:[%s17947_s8] ss:$0 sm:$0xff] }
 0x7b0   : > { %9765 = vmatpush1.bf16.msra.mxu1 %v13435_v30  ;;  %v8184_v30 = vrot.slane %v17760_v29, %v3556_v55 }
 0x7b1   : > { %9766 = vmatprep.subr.bf16.mxu1 %v13442_v54  ;;  %v8188_v54 = vrot.slane %v17760_v29, %v8187_v32 }
 0x7b4   : > { %9767 = vmatpush1.bf16.msra.mxu1 %v13440_v17 }
 0x7b5   : > { %9768 = vmatprep.subr.bf16.mxu1 %v13447_v62 }
 0x7b8   : > { %9769 = vmatpush1.bf16.msra.mxu1 %v13445_v1 }
 0x7b9   : > { %9770 = vmatprep.subr.bf16.mxu1 %v13452_v22 }
 0x7ba   : > { %v9630_v51 = vpop.f32.mrb[64].mxu1 }
 0x7bb   : > { %v11446_v57 = vadd.f32 %v9630_v51, %v8176_v60  ;;  %v9632_v34 = vpop.f32.mrb[65].mxu1 }
 0x7bc   : > { %v11447_v4 = vadd.f32 %v9632_v34, %v8180_v50  ;;  %v9634_v46 = vpop.f32.mrb[66].mxu1  ;;  %9771 = vmatpush1.bf16.msra.mxu1 %v13450_v35 }
 0x7bd   : > { %v9801_v31 = vmax.f32 %v11446_v57, 0.0  ;;  %v9635_v61 = vpop.f32.mrb[67].mxu1  ;;  %9772 = vmatprep.subr.bf16.mxu1 %v13457_v2 }
 0x7be   : > { %v9802_v10 = vmax.f32 %v11447_v4, 0.0 }
 0x7bf   : > { %v9805_v40 = vpack.c.bf16 %v9801_v31, %v9801_v31 }
 0x7c0   : > { %v9806_v53 = vpack.c.bf16 %v9802_v10, %v9802_v10  ;;  %9773 = vmatpush1.bf16.msra.mxu1 %v13455_v15 }
 0x7c1   : > { %9774 = vmatprep.subr.bf16.mxu1 %v13462_v13 }
 0x7c2   : > { %10104 = vmatprep.mubr.bf16.mxu0 %v9806_v53 }
 0x7c3   : > { %10105 = vmatmul.mubr.bf16.vlgmr.msra.gmra.mrb[160].mxu0 %v9805_v40 }
 0x7c4   : > { %9775 = vmatpush1.bf16.msra.mxu1 %v13460_v36  ;;  %11377 = vmatpush3.bf16.msra.mxu0 %v13488_v7 }
 0x7c5   : > { %9776 = vmatprep.subr.bf16.mxu1 %v13465_v41  ;;  %11378 = vmatprep.subr.bf16.mxu0 %v13489_v23 }
 0x7c8   : > { %9777 = vmatpush1.bf16.msra.mxu1 %v13463_v42  ;;  %11379 = vmatpush3.bf16.msra.mxu0 %v13490_v5 }
 0x7c9   : > { %9778 = vmatprep.subr.bf16.mxu1 %v13468_v63 }
 0x7cc   : > { %9779 = vmatpush1.bf16.msra.mxu1 %v13466_v24 }
 0x7cd   : > { %9780 = vmatprep.subr.bf16.mxu1 %v13471_v44 }
 0x7d0   : > { %9781 = vmatpush1.bf16.msra.mxu1 %v13469_v27 }
 0x7d1   : > { %9782 = vmatprep.subr.bf16.mxu1 %v13474_v58 }
 0x7d4   : > { %9783 = vmatpush1.bf16.msra.mxu1 %v13472_v49 }
 0x7d5   : > { %9784 = vmatprep.subr.bf16.mxu1 %v13477_v8 }
 0x7d8   : > { %9785 = vmatpush1.bf16.msra.mxu1 %v13475_v28 }
 0x7d9   : > { %9786 = vmatprep.subr.bf16.mxu1 %v13480_v56 }
 0x7dc   : > { %9787 = vmatpush1.bf16.msra.mxu1 %v13478_v19 }
 0x7dd   : > { %9788 = vmatprep.subr.bf16.mxu1 %v13483_v9 }
 0x7e0   : > { %9789 = vmatpush1.bf16.msra.mxu1 %v13481_v3 }
 0x7e1   : > { %9790 = vmatprep.subr.bf16.mxu1 %v13486_v38 }
 0x7e4   : > { %9791 = vmatpush1.bf16.msra.mxu1 %v13484_v6 }
 0x7e7   : > { %9793 = vmatmul.mubr.bf16.vlgmr.msra.gmra.mrb[68].mxu1 %v17387_v18  ;;  %v13491_v18 = vld [vmem:[%s17946_s7 + $0xd0] sm:$0xff]  }
 0x7e8   : > { %11380 = vmatprep.subr.bf16.mxu0 %v13491_v18 }
 0x7e9   : > { %11381 = vmatpush3.bf16.msra.mxu0 %v13492_v33 }
 0x7ea   : > { %11382 = vmatprep.subr.bf16.mxu0 %v13493_v52 }
 0x7ed   : > { %11383 = vmatpush3.bf16.msra.mxu0 %v13494_v11 }
 0x7ee   : > { %11384 = vmatprep.subr.bf16.mxu0 %v13495_v25 }
 0x7f1   : > { %11385 = vmatpush3.bf16.msra.mxu0 %v13496_v20 }
 0x7f2   : > { %11386 = vmatprep.subr.bf16.mxu0 %v13497_v45 }
 0x7f5   : > { %11387 = vmatpush3.bf16.msra.mxu0 %v13498_v47 }
 0x7f6   : > { %11388 = vmatprep.subr.bf16.mxu0 %v13499_v0 }
 0x7f9   : > { %11389 = vmatpush3.bf16.msra.mxu0 %v13500_v39 }
 0x7fa   : > { %11390 = vmatprep.subr.bf16.mxu0 %v13501_v14 }
 0x7fd   : > { %11391 = vmatpush3.bf16.msra.mxu0 %v13502_v26 }
 0x896   : > { %v11370_v48 = vpop.f32.mrb[160].mxu0 }
 0x897   : > { %v11371_v21 = vpop.f32.mrb[161].mxu0 }
 0x898   : > { %v11372_v59 = vadd.f32 %v11371_v21, %v11370_v48  ;;  %v11373_v37 = vpop.f32.mrb[162].mxu0 }
 0x899   : > { %v11374_v43 = vpop.f32.mrb[163].mxu0 }
 0x89a   : > { %v10107_v29 = vadd.f32 %v11372_v59, %v11284_v16 }
 0x8ba   : > { %v9794_v17 = vpop.f32.mrb[68].mxu1 }
 0x8bb   : > { %v11448_v62 = vadd.f32 %v9794_v17, %v8184_v30  ;;  %v9796_v1 = vpop.f32.mrb[69].mxu1 }
 0x8bc   : > { %v11449_v22 = vadd.f32 %v9796_v1, %v8188_v54  ;;  %v9798_v60 = vpop.f32.mrb[70].mxu1 }
 0x8bd   : > { %v9803_v50 = vmax.f32 %v11448_v62, 0.0  ;;  %v9799_v35 = vpop.f32.mrb[71].mxu1 }
 0x8be   : > { %v9804_v2 = vmax.f32 %v11449_v22, 0.0 }
 0x8bf   : > { %v9807_v57 = vpack.c.bf16 %v9803_v50, %v9803_v50 }
 0x8c0   : > { %v9808_v51 = vpack.c.bf16 %v9804_v2, %v9804_v2 }
 0x8c2   : > { %10144 = vmatprep.mubr.bf16.mxu0 %v9808_v51 }
 0x8c3   : > { %10145 = vmatmul.mubr.bf16.vlgmr.msra.gmra.mrb[164].mxu0 %v9807_v57 }
 0x996   : > { %v11392_v34 = vpop.f32.mrb[164].mxu0 }
 0x997   : > { %v11393_v55 = vpop.f32.mrb[165].mxu0 }
 0x998   : > { %v11394_v4 = vadd.f32 %v11393_v55, %v11392_v34  ;;  %v11395_v46 = vpop.f32.mrb[166].mxu0 }
 0x999   : > { %v11396_v15 = vpop.f32.mrb[167].mxu0 }
 0x99a   : > { %v10147_v31 = vadd.f32 %v11394_v4, %v10107_v29 }
 0x99c   : > { %10152 = vmax.xlane.f32.xlu0 %v10147_v31 }
 0xa29   : > { %v10153_v61 = vpop.xlane.xlu0 %10152 }
 0xa2a   : > { %v10154_v13 = vsub.f32 %v10147_v31, %v10153_v61 }
 0xa2c   : > { %v10155_v10 = vmul.f32 1.442695, %v10154_v13 }
 0xa2e   : > { %13503 = vpow2.f32 %v10155_v10 }
 0xa38   : > { %v13504_v53 = vpop.eup %13503 }
 0xa39   : > { %10157 = vadd.xlane.f32.xlu0 %v13504_v53 }
 0xac6   : > { %v10158_v36 = vpop.xlane.xlu0 %10157 }
 0xac7   : > { %13505 = vlog2.f32 %v10158_v36 }
 0xad1   : > { %v13506_v40 = vpop.eup %13505 }
 0xad2   : > { %v10160_v41 = vmul.f32 0.6931472, %v13506_v40 }
 0xad4   : > { %v10161_v42 = vsub.f32 %v10154_v13, %v10160_v41 }
 0xad6   : > { %10162 = vst [vmem:[%s479_s27] sm:$0xff] %v10161_v42 }
 0xad7   : > { %13520 = shalt.err (!%p13517_p5)
}
 0xad8   : > { %s13521_s17 = scalar_lea.hbm %s17895_s14, 128  ;;  %s13525_s27 = scalar_lea.hbm %s17948_s9, 256 }
 0xad9   : > { %p13522_p7 = scmp.ne.s32.totalorder %s17895_s14, %s13521_s17  ;;  %p13526_p12 = scmp.lt.u32.totalorder %s17895_s14, %s17948_s9 }
 0xada   : > { %p13527_p13 = scmp.lt.u32.totalorder %s13525_s27, %s13521_s17  ;;  %p13529_p1 = scmp.lt.u32.totalorder %s13521_s17, %s17895_s14 }
 0xadb   : > { %p13523_p10 = pnand %p13522_p7, %p13661_p6 }
 0xadc   : > { %p13528_p0 = por %p13527_p13, %p13526_p12 }
 0xadd   : > { %p13524_p11 = pneg %p13523_p10 }
 0xade   : > { %p13530_p2 = por %p13529_p1, %p13528_p0 }
 0xae0   : > { %p13531_p3 = pnand %p13530_p2, %p13524_p11 }
 0xae2   : > { %13534 = shalt.err (!%p13531_p3)
}
 0xae3   : > { %11940 = dma.vmem_to_hbm [thread:$0]  (%p13661_p6), %s17897_s21, 128, %s17895_s14, %s10164_s16  }
 0xae4 PF: > { %s10189_s22 = sand.u32 1, %s13557_s30   ;;  %p11943_p4 = pnand %p10244_p9, %p13665_p8 }
 0xae5   : > { %s10190_s13 = scalar_lea.sflag [#allocation4], %s10189_s22 }
 0xae6   : > { %13552 = dma.done.wait (!%p11943_p4), %s10190_s13, 128  }
 0xae7   : > { %13554 = vsyncadd (!%p11943_p4), %s10190_s13, 4294967168  ;;  %p19_p5 = scmp.ge.s32.totalorder %s13646_s15, 4   ;;  %s18158_s30 = smov %s13561_s10 }
 0xae8   : > { %s18159_s10 = smov %s13565_s11  ;;  %s18160_s11 = smov %s13659_s18 }
 0xae9   : > { %s18161_s12 = smov %s13646_s15  ;;  %21 = sbr.rel (!%p19_p5) target bundleno = 3 (0x3), region = 137 }
 0xaf0   :  { %10195 = vsyncpa [#allocation4], 1 }
 0xaf1   :  { %10197 = vsyncpa [#allocation4 + $0x1], 1 }

</bundles_post_ra>
